<compile_context>
chip_gen: v6e
topology: v6e:2x2x1
jax: 0.10.0
libtpu: 0.0.40
codegen_flags: <defaults>
</compile_context>

<pallas_src>
import functools

import jax
import jax.numpy as jnp
from jax.experimental import pallas as pl
from jax.experimental.pallas import tpu as pltpu


def _round_up(x, m):
    return ((x + m - 1) // m) * m


def _cdiv(a, b):
    return (a + b - 1) // b


# ---------------------------------------------------------------------------
# Pallas kernel: fused im2col + matmul + bias + ReLU (full contraction / step)
# ---------------------------------------------------------------------------
def _conv_bias_relu_kernel(x_ref, w_ref, b_ref, o_ref, acc_ref, *,
                           kh_size, kw_size, stride):
    # x_ref:   (Hp, Wp, Cinp)        bf16  one padded image, resident per batch
    # w_ref:   (Kh*Kw, Cinp, Coutp)  bf16  fully resident weight
    # b_ref:   (1, Coutp)            f32
    # o_ref:   (th, Wo, Coutp)       out_dtype
    # acc_ref: (th*Wo, Coutp)        f32 VMEM scratch
    th, wo, coutp = o_ref.shape
    cinp = x_ref.shape[-1]
    h0 = pl.program_id(1) * (th * stride)

    acc_ref[...] = jnp.zeros_like(acc_ref)
    for t in range(kh_size * kw_size):
        ki = t // kw_size
        kj = t % kw_size
        if stride == 1:
            win = x_ref[pl.ds(h0 + ki, th), pl.ds(kj, wo), :]
        else:
            win = x_ref[pl.ds(h0 + ki, th, stride), pl.ds(kj, wo, stride), :]
        acc_ref[...] += jnp.dot(win.reshape(th * wo, cinp), w_ref[t],
                                preferred_element_type=jnp.float32)

    out = jnp.maximum(acc_ref[...] + b_ref[...], 0.0)
    o_ref[...] = out.reshape(th, wo, coutp).astype(o_ref.dtype)


def conv_module_forward(x, weight, bias, *, stride=1, padding=1,
                        target_rows=512, out_dtype=jnp.float32,
                        compute_dtype=jnp.bfloat16):
    """ConvModule forward: Conv2d (dilation=1, groups=1) + bias + ReLU.

    x:      (N, Cin, H, W)      float32, NCHW (PyTorch convention)
    weight: (Cout, Cin, Kh, Kw) float32
    bias:   (Cout,)             float32
    returns (N, Cout, Ho, Wo)   float32 (cast from out_dtype)
    """
    n, cin, h, w = x.shape
    cout, cin_w, kh, kw = weight.shape
    assert cin_w == cin, "groups != 1 not supported"  # TODO(synk): grouped conv
    ho = (h + 2 * padding - kh) // stride + 1
    wo = (w + 2 * padding - kw) // stride + 1

    taps = kh * kw
    coutp = _round_up(cout, 128)   # lane-dense output / MXU columns
    cinp = _round_up(cin, 8)       # mild sublane alignment of the contraction

    # ----- generation-aware VMEM budget -----
    try:
        vmem_cap = int(pltpu.get_tpu_info().vmem_capacity_bytes)
    except Exception:
        vmem_cap = 64 * 1024 * 1024          # conservative fallback (v7x size)
    budget = int(0.80 * vmem_cap)            # leave headroom for Mosaic scratch

    def _footprint(th_):
        hp_ = max((_round_up(ho, th_) - 1) * stride + kh, h + 2 * padding)
        wp_ = max((wo - 1) * stride + kw, w + 2 * padding)
        img = hp_ * wp_ * cinp * 2           # bf16 image (double-buffered)
        wgt = taps * cinp * coutp * 2        # bf16 weight
        bia = coutp * 4
        oblk = th_ * wo * coutp * jnp.dtype(out_dtype).itemsize
        acc = th_ * wo * coutp * 4
        return 2 * (img + wgt + bia) + 2 * oblk + acc

    # ----- choose the output-row tile th -----
    th = max(1, min(ho, max(1, target_rows // max(1, wo))))
    while th > 1 and _footprint(th) > budget:
        th = max(1, th // 2)

    n_h = _cdiv(ho, th)
    # Balance the "parallel" grid across v7x's two TensorCores (harmless on the
    # single-core v5e/v6e beyond a little extra per-step overhead).
    if (n * n_h) % 2 == 1 and n_h < ho:
        n_h += 1
        th = _cdiv(ho, n_h)
    hop = th * n_h                                   # padded output rows

    hp_total = max((hop - 1) * stride + kh, h + 2 * padding)
    wp_total = max((wo - 1) * stride + kw, w + 2 * padding)

    # ----- layout prep (the only wrapper-side HBM traffic: ~1-2x input) -----
    x_nhwc = jnp.transpose(x, (0, 2, 3, 1)).astype(compute_dtype)
    x_pad = jnp.pad(x_nhwc, ((0, 0),
                             (padding, hp_total - h - padding),
                             (padding, wp_total - w - padding),
                             (0, cinp - cin)))

    # weight (Cout, Cin, Kh, Kw) -> (Kh*Kw, Cinp, Coutp), bf16
    w_t = jnp.transpose(weight, (2, 3, 1, 0)).reshape(taps, cin, cout)
    w_t = jnp.pad(w_t, ((0, 0), (0, cinp - cin),
                        (0, coutp - cout))).astype(compute_dtype)
    # bias: (1, Coutp), f32 (added to the f32 accumulator)
    b2d = jnp.pad(bias.reshape(1, cout),
                  ((0, 0), (0, coutp - cout))).astype(jnp.float32)

    need = _footprint(th)
    vmem_limit = int(min(budget, max(32 * 1024 * 1024, int(1.5 * need))))

    kernel = functools.partial(_conv_bias_relu_kernel,
                               kh_size=kh, kw_size=kw, stride=stride)

    out_pad = pl.pallas_call(
        kernel,
        out_shape=jax.ShapeDtypeStruct((n, hop, wo, coutp), out_dtype),
        grid_spec=pltpu.PrefetchScalarGridSpec(
            num_scalar_prefetch=0,
            grid=(n, n_h),
            in_specs=[
                # full padded image per batch element: fetched once per n
                # (index_map is constant over the row-tile axis)
                pl.BlockSpec((None, hp_total, wp_total, cinp),
                             lambda ni, hi: (ni, 0, 0, 0)),
                # weight: single resident block, fetched once
                pl.BlockSpec((taps, cinp, coutp), lambda ni, hi: (0, 0, 0)),
                # bias: resident
                pl.BlockSpec((1, coutp), lambda ni, hi: (0, 0)),
            ],
            out_specs=pl.BlockSpec((None, th, wo, coutp),
                                   lambda ni, hi: (ni, hi, 0, 0)),
            scratch_shapes=[pltpu.VMEM((th * wo, coutp), jnp.float32)],
        ),
        compiler_params=pltpu.CompilerParams(
            dimension_semantics=("parallel", "parallel"),
            vmem_limit_bytes=vmem_limit,
        ),
    )(x_pad, w_t, b2d)

    # un-pad and relayout back to NCHW (PyTorch convention)
    out = out_pad[:, :ho, :, :cout].astype(jnp.float32).transpose(0, 3, 1, 2)
    return out


# ---------------------------------------------------------------------------
# Reference (plain JAX) for sanity checking
# ---------------------------------------------------------------------------
def _reference(x, weight, bias, *, stride=1, padding=1):
    out = jax.lax.conv_general_dilated(
        x, weight,
        window_strides=(stride, stride),
        padding=((padding, padding), (padding, padding)),
        dimension_numbers=("NCHW", "OIHW", "NCHW"),
    )
    out = out + bias.reshape(1, -1, 1, 1)
    return jnp.maximum(out, 0.0)


if __name__ == "__main__":
    key = jax.random.PRNGKey(0)
    kx, kw_, kb = jax.random.split(key, 3)

    # Small ConvModule: in_channels=4, out_channels=8, kernel_size=3,
    # stride=1, padding=1, bias=True (auto, no norm), activation='relu'.
    N, Cin, H, W = 2, 4, 16, 16
    Cout, Kh, Kw = 8, 3, 3

    x = jax.random.normal(kx, (N, Cin, H, W), dtype=jnp.float32)
    fan_in = Cin * Kh * Kw
    bound = 1.0 / jnp.sqrt(fan_in)
    weight = jax.random.uniform(kw_, (Cout, Cin, Kh, Kw), jnp.float32, -bound, bound)
    bias = jax.random.uniform(kb, (Cout,), jnp.float32, -bound, bound)

    fwd = jax.jit(functools.partial(conv_module_forward, stride=1, padding=1))
    out = jax.block_until_ready(fwd(x, weight, bias))

    # Exact-dtype reference: kernel computes on bf16-cast inputs with f32
    # accumulation, so compare against the same-rounded inputs in an f32 conv.
    x_r = x.astype(jnp.bfloat16).astype(jnp.float32)
    w_r = weight.astype(jnp.bfloat16).astype(jnp.float32)
    ref_bf16 = _reference(x_r, w_r, bias, stride=1, padding=1)
    ref_f32 = _reference(x, weight, bias, stride=1, padding=1)

    assert out.shape == (N, Cout, H, W), out.shape
    assert jnp.allclose(out, ref_bf16, atol=1e-3, rtol=1e-3), \
        float(jnp.max(jnp.abs(out - ref_bf16)))
    # loose sanity check against the full-f32 reference (bf16 rounding error)
    assert jnp.allclose(out, ref_f32, atol=5e-2, rtol=5e-2), \
        float(jnp.max(jnp.abs(out - ref_f32)))

    print("KERNEL_OK")
</pallas_src>

<mosaic_0001>
module attributes {stable_mosaic.version = 11 : i64} {
  func.func @_conv_bias_relu_kernel(%arg0: i32, %arg1: i32, %arg2: memref<1x18x18x8xbf16, #tpu.memory_space<vmem>>, %arg3: memref<9x8x128xbf16, #tpu.memory_space<vmem>>, %arg4: memref<1x128xf32, #tpu.memory_space<vmem>>, %arg5: memref<1x16x16x128xf32, #tpu.memory_space<vmem>>, %arg6: memref<256x128xf32, #tpu.memory_space<vmem>>) attributes {dimension_semantics = [#tpu.dimension_semantics<parallel>, #tpu.dimension_semantics<parallel>], iteration_bounds = array<i64: 2, 1>, scalar_prefetch = 0 : i64, scratch_operands = 1 : i64, tpu.core_type = #tpu.core_type<tc>, window_params = [{transform_indices = @transform_0, window_bounds = array<i64: 1, 18, 18, 8>}, {pipeline_mode = #tpu.pipeline_mode<synchronous>, transform_indices = @transform_1, window_bounds = array<i64: 9, 8, 128>}, {pipeline_mode = #tpu.pipeline_mode<synchronous>, transform_indices = @transform_2, window_bounds = array<i64: 1, 128>}, {transform_indices = @transform_3, window_bounds = array<i64: 1, 16, 16, 128>}]} {
    %c16_i32 = arith.constant 16 : i32
    %0 = arith.muli %arg1, %c16_i32 : i32
    %cst = arith.constant 0.000000e+00 : f32
    %1 = vector.broadcast %cst : f32 to vector<256x128xf32>
    %c0 = arith.constant 0 : index
    %c0_0 = arith.constant 0 : index
    %2 = vector.load %arg6[%c0, %c0_0] : memref<256x128xf32, #tpu.memory_space<vmem>>, vector<256x128xf32>
    tpu.vector_store %arg6[%c0, %c0_0], %1 {strides = array<i32>} : memref<256x128xf32, #tpu.memory_space<vmem>>, vector<256x128xf32>,
    %c0_i32 = arith.constant 0 : i32
    %3 = arith.addi %0, %c0_i32 : i32
    %c0_1 = arith.constant 0 : index
    %4 = arith.index_cast %3 : i32 to index
    %c0_2 = arith.constant 0 : index
    %c0_3 = arith.constant 0 : index
    %5 = vector.load %arg2[%c0_1, %4, %c0_2, %c0_3] : memref<1x18x18x8xbf16, #tpu.memory_space<vmem>>, vector<1x16x16x8xbf16>
    %6 = vector.shape_cast %5 : vector<1x16x16x8xbf16> to vector<16x16x8xbf16>
    %c0_4 = arith.constant 0 : index
    %c0_5 = arith.constant 0 : index
    %7 = vector.load %arg6[%c0_4, %c0_5] : memref<256x128xf32, #tpu.memory_space<vmem>>, vector<256x128xf32>
    %8 = vector.shape_cast %6 : vector<16x16x8xbf16> to vector<256x8xbf16>
    %c0_6 = arith.constant 0 : index
    %c0_7 = arith.constant 0 : index
    %c0_8 = arith.constant 0 : index
    %9 = vector.load %arg3[%c0_6, %c0_7, %c0_8] : memref<9x8x128xbf16, #tpu.memory_space<vmem>>, vector<1x8x128xbf16>
    %10 = vector.shape_cast %9 : vector<1x8x128xbf16> to vector<8x128xbf16>
    %cst_9 = arith.constant dense<0.000000e+00> : vector<256x128xf32>
    %11 = tpu.matmul %8, %10, %cst_9 {dimension_numbers = #tpu.dot_dimension_numbers<[1], [0], [0], [1], [0, 0, 1, 1], [], []>} : vector<256x8xbf16>, vector<8x128xbf16>, vector<256x128xf32> -> vector<256x128xf32>
    %12 = arith.addf %7, %11 : vector<256x128xf32>
    %c0_10 = arith.constant 0 : index
    %c0_11 = arith.constant 0 : index
    %13 = vector.load %arg6[%c0_10, %c0_11] : memref<256x128xf32, #tpu.memory_space<vmem>>, vector<256x128xf32>
    tpu.vector_store %arg6[%c0_10, %c0_11], %12 {strides = array<i32>} : memref<256x128xf32, #tpu.memory_space<vmem>>, vector<256x128xf32>,
    %c0_i32_12 = arith.constant 0 : i32
    %14 = arith.addi %0, %c0_i32_12 : i32
    %c0_13 = arith.constant 0 : index
    %15 = arith.index_cast %14 : i32 to index
    %c1 = arith.constant 1 : index
    %c0_14 = arith.constant 0 : index
    %16 = vector.load %arg2[%c0_13, %15, %c1, %c0_14] : memref<1x18x18x8xbf16, #tpu.memory_space<vmem>>, vector<1x16x16x8xbf16>
    %17 = vector.shape_cast %16 : vector<1x16x16x8xbf16> to vector<16x16x8xbf16>
    %c0_15 = arith.constant 0 : index
    %c0_16 = arith.constant 0 : index
    %18 = vector.load %arg6[%c0_15, %c0_16] : memref<256x128xf32, #tpu.memory_space<vmem>>, vector<256x128xf32>
    %19 = vector.shape_cast %17 : vector<16x16x8xbf16> to vector<256x8xbf16>
    %c1_17 = arith.constant 1 : index
    %c0_18 = arith.constant 0 : index
    %c0_19 = arith.constant 0 : index
    %20 = vector.load %arg3[%c1_17, %c0_18, %c0_19] : memref<9x8x128xbf16, #tpu.memory_space<vmem>>, vector<1x8x128xbf16>
    %21 = vector.shape_cast %20 : vector<1x8x128xbf16> to vector<8x128xbf16>
    %cst_20 = arith.constant dense<0.000000e+00> : vector<256x128xf32>
    %22 = tpu.matmul %19, %21, %cst_20 {dimension_numbers = #tpu.dot_dimension_numbers<[1], [0], [0], [1], [0, 0, 1, 1], [], []>} : vector<256x8xbf16>, vector<8x128xbf16>, vector<256x128xf32> -> vector<256x128xf32>
    %23 = arith.addf %18, %22 : vector<256x128xf32>
    %c0_21 = arith.constant 0 : index
    %c0_22 = arith.constant 0 : index
    %24 = vector.load %arg6[%c0_21, %c0_22] : memref<256x128xf32, #tpu.memory_space<vmem>>, vector<256x128xf32>
    tpu.vector_store %arg6[%c0_21, %c0_22], %23 {strides = array<i32>} : memref<256x128xf32, #tpu.memory_space<vmem>>, vector<256x128xf32>,
    %c0_i32_23 = arith.constant 0 : i32
    %25 = arith.addi %0, %c0_i32_23 : i32
    %c0_24 = arith.constant 0 : index
    %26 = arith.index_cast %25 : i32 to index
    %c2 = arith.constant 2 : index
    %c0_25 = arith.constant 0 : index
    %27 = vector.load %arg2[%c0_24, %26, %c2, %c0_25] : memref<1x18x18x8xbf16, #tpu.memory_space<vmem>>, vector<1x16x16x8xbf16>
    %28 = vector.shape_cast %27 : vector<1x16x16x8xbf16> to vector<16x16x8xbf16>
    %c0_26 = arith.constant 0 : index
    %c0_27 = arith.constant 0 : index
    %29 = vector.load %arg6[%c0_26, %c0_27] : memref<256x128xf32, #tpu.memory_space<vmem>>, vector<256x128xf32>
    %30 = vector.shape_cast %28 : vector<16x16x8xbf16> to vector<256x8xbf16>
    %c2_28 = arith.constant 2 : index
    %c0_29 = arith.constant 0 : index
    %c0_30 = arith.constant 0 : index
    %31 = vector.load %arg3[%c2_28, %c0_29, %c0_30] : memref<9x8x128xbf16, #tpu.memory_space<vmem>>, vector<1x8x128xbf16>
    %32 = vector.shape_cast %31 : vector<1x8x128xbf16> to vector<8x128xbf16>
    %cst_31 = arith.constant dense<0.000000e+00> : vector<256x128xf32>
    %33 = tpu.matmul %30, %32, %cst_31 {dimension_numbers = #tpu.dot_dimension_numbers<[1], [0], [0], [1], [0, 0, 1, 1], [], []>} : vector<256x8xbf16>, vector<8x128xbf16>, vector<256x128xf32> -> vector<256x128xf32>
    %34 = arith.addf %29, %33 : vector<256x128xf32>
    %c0_32 = arith.constant 0 : index
    %c0_33 = arith.constant 0 : index
    %35 = vector.load %arg6[%c0_32, %c0_33] : memref<256x128xf32, #tpu.memory_space<vmem>>, vector<256x128xf32>
    tpu.vector_store %arg6[%c0_32, %c0_33], %34 {strides = array<i32>} : memref<256x128xf32, #tpu.memory_space<vmem>>, vector<256x128xf32>,
    %c1_i32 = arith.constant 1 : i32
    %36 = arith.addi %0, %c1_i32 : i32
    %c0_34 = arith.constant 0 : index
    %37 = arith.index_cast %36 : i32 to index
    %c0_35 = arith.constant 0 : index
    %c0_36 = arith.constant 0 : index
    %38 = vector.load %arg2[%c0_34, %37, %c0_35, %c0_36] : memref<1x18x18x8xbf16, #tpu.memory_space<vmem>>, vector<1x16x16x8xbf16>
    %39 = vector.shape_cast %38 : vector<1x16x16x8xbf16> to vector<16x16x8xbf16>
    %c0_37 = arith.constant 0 : index
    %c0_38 = arith.constant 0 : index
    %40 = vector.load %arg6[%c0_37, %c0_38] : memref<256x128xf32, #tpu.memory_space<vmem>>, vector<256x128xf32>
    %41 = vector.shape_cast %39 : vector<16x16x8xbf16> to vector<256x8xbf16>
    %c3 = arith.constant 3 : index
    %c0_39 = arith.constant 0 : index
    %c0_40 = arith.constant 0 : index
    %42 = vector.load %arg3[%c3, %c0_39, %c0_40] : memref<9x8x128xbf16, #tpu.memory_space<vmem>>, vector<1x8x128xbf16>
    %43 = vector.shape_cast %42 : vector<1x8x128xbf16> to vector<8x128xbf16>
    %cst_41 = arith.constant dense<0.000000e+00> : vector<256x128xf32>
    %44 = tpu.matmul %41, %43, %cst_41 {dimension_numbers = #tpu.dot_dimension_numbers<[1], [0], [0], [1], [0, 0, 1, 1], [], []>} : vector<256x8xbf16>, vector<8x128xbf16>, vector<256x128xf32> -> vector<256x128xf32>
    %45 = arith.addf %40, %44 : vector<256x128xf32>
    %c0_42 = arith.constant 0 : index
    %c0_43 = arith.constant 0 : index
    %46 = vector.load %arg6[%c0_42, %c0_43] : memref<256x128xf32, #tpu.memory_space<vmem>>, vector<256x128xf32>
    tpu.vector_store %arg6[%c0_42, %c0_43], %45 {strides = array<i32>} : memref<256x128xf32, #tpu.memory_space<vmem>>, vector<256x128xf32>,
    %c1_i32_44 = arith.constant 1 : i32
    %47 = arith.addi %0, %c1_i32_44 : i32
    %c0_45 = arith.constant 0 : index
    %48 = arith.index_cast %47 : i32 to index
    %c1_46 = arith.constant 1 : index
    %c0_47 = arith.constant 0 : index
    %49 = vector.load %arg2[%c0_45, %48, %c1_46, %c0_47] : memref<1x18x18x8xbf16, #tpu.memory_space<vmem>>, vector<1x16x16x8xbf16>
    %50 = vector.shape_cast %49 : vector<1x16x16x8xbf16> to vector<16x16x8xbf16>
    %c0_48 = arith.constant 0 : index
    %c0_49 = arith.constant 0 : index
    %51 = vector.load %arg6[%c0_48, %c0_49] : memref<256x128xf32, #tpu.memory_space<vmem>>, vector<256x128xf32>
    %52 = vector.shape_cast %50 : vector<16x16x8xbf16> to vector<256x8xbf16>
    %c4 = arith.constant 4 : index
    %c0_50 = arith.constant 0 : index
    %c0_51 = arith.constant 0 : index
    %53 = vector.load %arg3[%c4, %c0_50, %c0_51] : memref<9x8x128xbf16, #tpu.memory_space<vmem>>, vector<1x8x128xbf16>
    %54 = vector.shape_cast %53 : vector<1x8x128xbf16> to vector<8x128xbf16>
    %cst_52 = arith.constant dense<0.000000e+00> : vector<256x128xf32>
    %55 = tpu.matmul %52, %54, %cst_52 {dimension_numbers = #tpu.dot_dimension_numbers<[1], [0], [0], [1], [0, 0, 1, 1], [], []>} : vector<256x8xbf16>, vector<8x128xbf16>, vector<256x128xf32> -> vector<256x128xf32>
    %56 = arith.addf %51, %55 : vector<256x128xf32>
    %c0_53 = arith.constant 0 : index
    %c0_54 = arith.constant 0 : index
    %57 = vector.load %arg6[%c0_53, %c0_54] : memref<256x128xf32, #tpu.memory_space<vmem>>, vector<256x128xf32>
    tpu.vector_store %arg6[%c0_53, %c0_54], %56 {strides = array<i32>} : memref<256x128xf32, #tpu.memory_space<vmem>>, vector<256x128xf32>,
    %c1_i32_55 = arith.constant 1 : i32
    %58 = arith.addi %0, %c1_i32_55 : i32
    %c0_56 = arith.constant 0 : index
    %59 = arith.index_cast %58 : i32 to index
    %c2_57 = arith.constant 2 : index
    %c0_58 = arith.constant 0 : index
    %60 = vector.load %arg2[%c0_56, %59, %c2_57, %c0_58] : memref<1x18x18x8xbf16, #tpu.memory_space<vmem>>, vector<1x16x16x8xbf16>
    %61 = vector.shape_cast %60 : vector<1x16x16x8xbf16> to vector<16x16x8xbf16>
    %c0_59 = arith.constant 0 : index
    %c0_60 = arith.constant 0 : index
    %62 = vector.load %arg6[%c0_59, %c0_60] : memref<256x128xf32, #tpu.memory_space<vmem>>, vector<256x128xf32>
    %63 = vector.shape_cast %61 : vector<16x16x8xbf16> to vector<256x8xbf16>
    %c5 = arith.constant 5 : index
    %c0_61 = arith.constant 0 : index
    %c0_62 = arith.constant 0 : index
    %64 = vector.load %arg3[%c5, %c0_61, %c0_62] : memref<9x8x128xbf16, #tpu.memory_space<vmem>>, vector<1x8x128xbf16>
    %65 = vector.shape_cast %64 : vector<1x8x128xbf16> to vector<8x128xbf16>
    %cst_63 = arith.constant dense<0.000000e+00> : vector<256x128xf32>
    %66 = tpu.matmul %63, %65, %cst_63 {dimension_numbers = #tpu.dot_dimension_numbers<[1], [0], [0], [1], [0, 0, 1, 1], [], []>} : vector<256x8xbf16>, vector<8x128xbf16>, vector<256x128xf32> -> vector<256x128xf32>
    %67 = arith.addf %62, %66 : vector<256x128xf32>
    %c0_64 = arith.constant 0 : index
    %c0_65 = arith.constant 0 : index
    %68 = vector.load %arg6[%c0_64, %c0_65] : memref<256x128xf32, #tpu.memory_space<vmem>>, vector<256x128xf32>
    tpu.vector_store %arg6[%c0_64, %c0_65], %67 {strides = array<i32>} : memref<256x128xf32, #tpu.memory_space<vmem>>, vector<256x128xf32>,
    %c2_i32 = arith.constant 2 : i32
    %69 = arith.addi %0, %c2_i32 : i32
    %c0_66 = arith.constant 0 : index
    %70 = arith.index_cast %69 : i32 to index
    %c0_67 = arith.constant 0 : index
    %c0_68 = arith.constant 0 : index
    %71 = vector.load %arg2[%c0_66, %70, %c0_67, %c0_68] : memref<1x18x18x8xbf16, #tpu.memory_space<vmem>>, vector<1x16x16x8xbf16>
    %72 = vector.shape_cast %71 : vector<1x16x16x8xbf16> to vector<16x16x8xbf16>
    %c0_69 = arith.constant 0 : index
    %c0_70 = arith.constant 0 : index
    %73 = vector.load %arg6[%c0_69, %c0_70] : memref<256x128xf32, #tpu.memory_space<vmem>>, vector<256x128xf32>
    %74 = vector.shape_cast %72 : vector<16x16x8xbf16> to vector<256x8xbf16>
    %c6 = arith.constant 6 : index
    %c0_71 = arith.constant 0 : index
    %c0_72 = arith.constant 0 : index
    %75 = vector.load %arg3[%c6, %c0_71, %c0_72] : memref<9x8x128xbf16, #tpu.memory_space<vmem>>, vector<1x8x128xbf16>
    %76 = vector.shape_cast %75 : vector<1x8x128xbf16> to vector<8x128xbf16>
    %cst_73 = arith.constant dense<0.000000e+00> : vector<256x128xf32>
    %77 = tpu.matmul %74, %76, %cst_73 {dimension_numbers = #tpu.dot_dimension_numbers<[1], [0], [0], [1], [0, 0, 1, 1], [], []>} : vector<256x8xbf16>, vector<8x128xbf16>, vector<256x128xf32> -> vector<256x128xf32>
    %78 = arith.addf %73, %77 : vector<256x128xf32>
    %c0_74 = arith.constant 0 : index
    %c0_75 = arith.constant 0 : index
    %79 = vector.load %arg6[%c0_74, %c0_75] : memref<256x128xf32, #tpu.memory_space<vmem>>, vector<256x128xf32>
    tpu.vector_store %arg6[%c0_74, %c0_75], %78 {strides = array<i32>} : memref<256x128xf32, #tpu.memory_space<vmem>>, vector<256x128xf32>,
    %c2_i32_76 = arith.constant 2 : i32
    %80 = arith.addi %0, %c2_i32_76 : i32
    %c0_77 = arith.constant 0 : index
    %81 = arith.index_cast %80 : i32 to index
    %c1_78 = arith.constant 1 : index
    %c0_79 = arith.constant 0 : index
    %82 = vector.load %arg2[%c0_77, %81, %c1_78, %c0_79] : memref<1x18x18x8xbf16, #tpu.memory_space<vmem>>, vector<1x16x16x8xbf16>
    %83 = vector.shape_cast %82 : vector<1x16x16x8xbf16> to vector<16x16x8xbf16>
    %c0_80 = arith.constant 0 : index
    %c0_81 = arith.constant 0 : index
    %84 = vector.load %arg6[%c0_80, %c0_81] : memref<256x128xf32, #tpu.memory_space<vmem>>, vector<256x128xf32>
    %85 = vector.shape_cast %83 : vector<16x16x8xbf16> to vector<256x8xbf16>
    %c7 = arith.constant 7 : index
    %c0_82 = arith.constant 0 : index
    %c0_83 = arith.constant 0 : index
    %86 = vector.load %arg3[%c7, %c0_82, %c0_83] : memref<9x8x128xbf16, #tpu.memory_space<vmem>>, vector<1x8x128xbf16>
    %87 = vector.shape_cast %86 : vector<1x8x128xbf16> to vector<8x128xbf16>
    %cst_84 = arith.constant dense<0.000000e+00> : vector<256x128xf32>
    %88 = tpu.matmul %85, %87, %cst_84 {dimension_numbers = #tpu.dot_dimension_numbers<[1], [0], [0], [1], [0, 0, 1, 1], [], []>} : vector<256x8xbf16>, vector<8x128xbf16>, vector<256x128xf32> -> vector<256x128xf32>
    %89 = arith.addf %84, %88 : vector<256x128xf32>
    %c0_85 = arith.constant 0 : index
    %c0_86 = arith.constant 0 : index
    %90 = vector.load %arg6[%c0_85, %c0_86] : memref<256x128xf32, #tpu.memory_space<vmem>>, vector<256x128xf32>
    tpu.vector_store %arg6[%c0_85, %c0_86], %89 {strides = array<i32>} : memref<256x128xf32, #tpu.memory_space<vmem>>, vector<256x128xf32>,
    %c2_i32_87 = arith.constant 2 : i32
    %91 = arith.addi %0, %c2_i32_87 : i32
    %c0_88 = arith.constant 0 : index
    %92 = arith.index_cast %91 : i32 to index
    %c2_89 = arith.constant 2 : index
    %c0_90 = arith.constant 0 : index
    %93 = vector.load %arg2[%c0_88, %92, %c2_89, %c0_90] : memref<1x18x18x8xbf16, #tpu.memory_space<vmem>>, vector<1x16x16x8xbf16>
    %94 = vector.shape_cast %93 : vector<1x16x16x8xbf16> to vector<16x16x8xbf16>
    %c0_91 = arith.constant 0 : index
    %c0_92 = arith.constant 0 : index
    %95 = vector.load %arg6[%c0_91, %c0_92] : memref<256x128xf32, #tpu.memory_space<vmem>>, vector<256x128xf32>
    %96 = vector.shape_cast %94 : vector<16x16x8xbf16> to vector<256x8xbf16>
    %c8 = arith.constant 8 : index
    %c0_93 = arith.constant 0 : index
    %c0_94 = arith.constant 0 : index
    %97 = vector.load %arg3[%c8, %c0_93, %c0_94] : memref<9x8x128xbf16, #tpu.memory_space<vmem>>, vector<1x8x128xbf16>
    %98 = vector.shape_cast %97 : vector<1x8x128xbf16> to vector<8x128xbf16>
    %cst_95 = arith.constant dense<0.000000e+00> : vector<256x128xf32>
    %99 = tpu.matmul %96, %98, %cst_95 {dimension_numbers = #tpu.dot_dimension_numbers<[1], [0], [0], [1], [0, 0, 1, 1], [], []>} : vector<256x8xbf16>, vector<8x128xbf16>, vector<256x128xf32> -> vector<256x128xf32>
    %100 = arith.addf %95, %99 : vector<256x128xf32>
    %c0_96 = arith.constant 0 : index
    %c0_97 = arith.constant 0 : index
    %101 = vector.load %arg6[%c0_96, %c0_97] : memref<256x128xf32, #tpu.memory_space<vmem>>, vector<256x128xf32>
    tpu.vector_store %arg6[%c0_96, %c0_97], %100 {strides = array<i32>} : memref<256x128xf32, #tpu.memory_space<vmem>>, vector<256x128xf32>,
    %c0_98 = arith.constant 0 : index
    %c0_99 = arith.constant 0 : index
    %102 = vector.load %arg6[%c0_98, %c0_99] : memref<256x128xf32, #tpu.memory_space<vmem>>, vector<256x128xf32>
    %c0_100 = arith.constant 0 : index
    %c0_101 = arith.constant 0 : index
    %103 = vector.load %arg4[%c0_100, %c0_101] : memref<1x128xf32, #tpu.memory_space<vmem>>, vector<1x128xf32>
    %104 = vector.broadcast %103 : vector<1x128xf32> to vector<256x128xf32>
    %105 = arith.addf %102, %104 : vector<256x128xf32>
    %cst_102 = arith.constant 0.000000e+00 : f32
    %106 = vector.broadcast %cst_102 : f32 to vector<256x128xf32>
    %107 = arith.maximumf %105, %106 : vector<256x128xf32>
    %108 = vector.shape_cast %107 : vector<256x128xf32> to vector<16x16x128xf32>
    %c0_103 = arith.constant 0 : index
    %c0_104 = arith.constant 0 : index
    %c0_105 = arith.constant 0 : index
    %c0_106 = arith.constant 0 : index
    %109 = vector.load %arg5[%c0_103, %c0_104, %c0_105, %c0_106] : memref<1x16x16x128xf32, #tpu.memory_space<vmem>>, vector<1x16x16x128xf32>
    %110 = vector.shape_cast %109 : vector<1x16x16x128xf32> to vector<16x16x128xf32>
    %111 = vector.shape_cast %108 : vector<16x16x128xf32> to vector<1x16x16x128xf32>
    tpu.vector_store %arg5[%c0_103, %c0_104, %c0_105, %c0_106], %111 {strides = array<i32>} : memref<1x16x16x128xf32, #tpu.memory_space<vmem>>, vector<1x16x16x128xf32>,
    return
  }
  func.func @transform_0(%arg0: i32, %arg1: i32) -> (i32, i32, i32, i32) {
    %c0_i32 = arith.constant 0 : i32
    %c0_i32_0 = arith.constant 0 : i32
    %c0_i32_1 = arith.constant 0 : i32
    %c0_i32_2 = arith.constant 0 : i32
    return %arg0, %c0_i32, %c0_i32_0, %c0_i32_1 : i32, i32, i32, i32
  }
  func.func @transform_1(%arg0: i32, %arg1: i32) -> (i32, i32, i32) {
    %c0_i32 = arith.constant 0 : i32
    %c0_i32_0 = arith.constant 0 : i32
    %c0_i32_1 = arith.constant 0 : i32
    %c0_i32_2 = arith.constant 0 : i32
    return %c0_i32, %c0_i32_0, %c0_i32_1 : i32, i32, i32
  }
  func.func @transform_2(%arg0: i32, %arg1: i32) -> (i32, i32) {
    %c0_i32 = arith.constant 0 : i32
    %c0_i32_0 = arith.constant 0 : i32
    %c0_i32_1 = arith.constant 0 : i32
    return %c0_i32, %c0_i32_0 : i32, i32
  }
  func.func @transform_3(%arg0: i32, %arg1: i32) -> (i32, i32, i32, i32) {
    %c0_i32 = arith.constant 0 : i32
    %c0_i32_0 = arith.constant 0 : i32
    %c0_i32_1 = arith.constant 0 : i32
    return %arg0, %arg1, %c0_i32, %c0_i32_0 : i32, i32, i32, i32
  }
}

</mosaic_0001>

<bundles_post_ra>
// kernel: conv_module_forward.1
= control target key start
LH: loop header
LB: loop body
LE: loop exit
PB: predicated region body
PF: predicated region fallthrough
CT: control target
= control target key end

     0   :  { %s7014_s12 = smov 0   ;;  %s7016_s13 = smov 0   ;;  %s8746_s0 = inlined_call_operand.vmem [shape: bf16[2,18,18,8], index: 0, kind: input, shape index: {}]   ;;  %s8747_s1 = inlined_call_operand.vmem [shape: bf16[9,8,128], index: 1, kind: input, shape index: {}]   ;;  %s8748_s2 = inlined_call_operand.vmem [shape: f32[1,128], index: 2, kind: input, shape index: {}]   ;;  %s8749_s3 = inlined_call_operand.vmem [shape: f32[2,16,16,128], index: 3, kind: output, shape index: {}]  }
   0x1   :  { %s7018_s14 = smov 0  }
   0x2 LB: > { %s25_s15 = sadd.s32 1, %s6988_s13  ;;  %p5818_p0 = scmp.ge.s32.totalorder %s6992_s14, 1  ;;  %s6992_s14 = sphi %s7018_s14, %s13_s14   ;;  %s6988_s13 = sphi %s7016_s13, %s8855_s13   ;;  %s6984_s12 = sphi %s7014_s12, %s8854_s12  }
   0x3   : > { %p27_p1 = scmp.ge.s32.totalorder %s25_s15, 2  ;;  %p151_p2 = scmp.lt.s32.totalorder %s6992_s14, 3 }
   0x5   : > { %s8857_s15 = smov (%p27_p1, %s25_s15), 0  ;;  %p152_p3 = pnand %p5818_p0, %p151_p2 }
   0x7   : > { %155 = sbr.rel (%p152_p3) target bundleno = 549 (0x225), region = 32 }
   0xc   : > { %v297_v0 = vld [vmem:[%s8747_s1] sm:$0xf]  ;;  %vm427_vm0 = vcmask 1043456   ;;  %p180_p4 = scmp.lt.s32.totalorder %s6984_s12, 1  ;;  %v5854_v2 = vld [vmem:[%s8747_s1 + $0x4] sm:$0xf] }
   0xd   : > { %6888 = vmatprep.subr.msk.bf16.mxu1 %vm427_vm0, %v297_v0  ;;  %6887 = vmatprep.subr.msk.bf16.mxu0 %vm427_vm0, %v297_v0  ;;  %v429_v1 = vsel %vm427_vm0, %v297_v0, 0  ;;  %v5903_v3 = vld [vmem:[%s8747_s1 + $0x8] sm:$0xf]  ;;  %vm378_vm1 = vcmask 64512   ;;  %v5968_v8 = vld [vmem:[%s8747_s1 + $0xc] sm:$0xf] }
   0xe   : > { %6886 = vmatpush3.bf16.msra.mxu1 %v429_v1  ;;  %6580 = vmatpush3.bf16.msra.mxu0 %v429_v1  ;;  %s8859_s12 = smov (!%p180_p4, %s6984_s12), 1  ;;  %v1791_v7 = vsel %vm427_vm0, %v5903_v3, 0  ;;  %v1222_v10 = vsel %vm427_vm0, %v5854_v2, 0  ;;  %v6049_v11 = vld [vmem:[%s8747_s1 + $0x10] sm:$0xf]  ;;  %vm1577_vm2 = vcmask 1042432  }
   0xf   : > { %6889 = vmatprep.subr.msk.bf16.mxu1 %vm427_vm0, %v5854_v2  ;;  %6890 = vmatprep.subr.msk.bf16.mxu0 %vm427_vm0, %v5903_v3  ;;  %s6897_s22 = smul.u32 216, %s8859_s12  ;;  %vm736_vm3 = vsmask.f32 3328  ;;  %vm737_vm4 = vsmask.f32 7440  ;;  %vm1578_vm5 = vcmask 1046532  }
  0x10   : > { %v7084_v18 = vld [vmem:[%s8747_s1 + $0x14] sm:$0xf]  ;;  %v7089_v19 = vsel %vm427_vm0, %v5968_v8, 0  ;;  %v7094_v21 = vsel %vm427_vm0, %v6049_v11, 0  ;;  %vm7111_vm6 = vmor %vm1577_vm2, %vm1578_vm5  ;;  %s6425_s17 = sshll.u32 %s8859_s12, 8 }
  0x11   : > { %s7052_s25 = scalar_lea.vmem %s8746_s0, %s6897_s22  ;;  %v7100_v24 = vsel %vm427_vm0, %v7084_v18, 0  ;;  %vm7125_vm7 = vmor %vm736_vm3, %vm737_vm4  ;;  %s8614_s19 = scalar_lea.vmem %s8749_s3, %s6425_s17 }
  0x12   : > { %v6922_v4 = vld [vmem:[%s7052_s25] sm:$0xff]   ;;  %v6924_v6 = vld [vmem:[%s7052_s25 + $0xc] sm:$0xff]   ;;  %v6926_v12 = vld [vmem:[%s7052_s25 + $0x18] sm:$0xff]  }
  0x13   : > { %v6923_v5 = vld [vmem:[%s7052_s25 + $0x60] sm:$0xff]   ;;  %6581 = vmatprep.mubr.msk.bf16.mxu0 %vm378_vm1, %v6922_v4  ;;  %v6925_v9 = vld [vmem:[%s7052_s25 + $0x6c] sm:$0xff]   ;;  %v6927_v13 = vld [vmem:[%s7052_s25 + $0x78] sm:$0xff]  }
  0x14   : > { %6597 = vmatprep.mubr.msk.bf16.mxu1 %vm378_vm1, %v6923_v5  ;;  %6582 = vmatmul.mubr.msk.bf16.vlgmr.msra.gmra.mxu0 %vm378_vm1, %v6924_v6  ;;  %v6928_v14 = vld [vmem:[%s7052_s25 + $0x24] sm:$0xff]   ;;  %v6930_v16 = vld [vmem:[%s7052_s25 + $0x30] sm:$0xff]   ;;  %v6932_v20 = vld [vmem:[%s7052_s25 + $0x3c] sm:$0xff]  }
  0x15   : > { %6598 = vmatmul.mubr.msk.bf16.vlgmr.msra.gmra.mxu1 %vm378_vm1, %v6925_v9  ;;  %6648 = vmatpush3.bf16.msra.mxu0 %v1791_v7  ;;  %v6929_v15 = vld [vmem:[%s7052_s25 + $0x84] sm:$0xff]   ;;  %v6931_v17 = vld [vmem:[%s7052_s25 + $0x90] sm:$0xff]   ;;  %v6933_v22 = vld [vmem:[%s7052_s25 + $0x9c] sm:$0xff]  }
  0x16   : > { %6614 = vmatpush3.bf16.msra.mxu1 %v1222_v10  ;;  %6585 = vmatprep.mubr.msk.bf16.mxu0 %vm378_vm1, %v6926_v12  ;;  %v6934_v23 = vld [vmem:[%s7052_s25 + $0x48] sm:$0xff]   ;;  %v656_v26 = vld [vmem:[%s7052_s25] sm:$0xf]  ;;  %v657_v27 = vld [vmem:[%s7052_s25 + $0x4] sm:$0xf] }
  0x17   : > { %6601 = vmatprep.mubr.msk.bf16.mxu1 %vm378_vm1, %v6927_v13  ;;  %6891 = vmatprep.subr.msk.bf16.mxu1 %vm427_vm0, %v5968_v8  ;;  %v6935_v25 = vld [vmem:[%s7052_s25 + $0xa8] sm:$0xff]   ;;  %v740_v29 = vshrl.u32 %v656_v26, 16  ;;  %v743_v30 = vshll.u32 %v656_v26, 16  ;;  %v749_v31 = vshll.u32 %v657_v27, 16  ;;  %v753_v32 = vshrl.u32 %v657_v27, 16  ;;  %v6936_v2 = vld [vmem:[%s7052_s25 + $0x54] sm:$0xff]  }
  0x18   : > { %6892 = vmatprep.subr.msk.bf16.mxu0 %vm427_vm0, %v6049_v11  ;;  %v658_v28 = vld [vmem:[%s7052_s25 + $0x8] sm:$0x1]  ;;  %v1449_v33 = vld [vmem:[%s7052_s25] sm:$0xe]  ;;  %v1450_v35 = vld [vmem:[%s7052_s25 + $0x4] sm:$0xf] }
  0x19   : > { %v759_v34 = vshll.u32 %v658_v28, 16  ;;  %v1451_v36 = vld [vmem:[%s7052_s25 + $0x8] sm:$0x1]  ;;  %v5887_v37 = vrot.slane %v1449_v33, 9  ;;  %v742_v38 = vrot.slane %v740_v29, 4  ;;  %v745_v39 = vrot.slane %v743_v30, 5 }
  0x1a   : > { %v751_v40 = vrot.slane %v749_v31, 5  ;;  %v755_v41 = vrot.slane %v753_v32, 4  ;;  %v659_v43 = vld [vmem:[%s7052_s25 + $0xc] sm:$0xf]  ;;  %v1582_v45 = vrot.slane %v1450_v35, 5  ;;  %v1585_v46 = vrot.slane %v1451_v36, 5 }
  0x1b   : > { %v761_v44 = vrot.slane %v759_v34, 5  ;;  %v660_v47 = vld [vmem:[%s7052_s25 + $0x10] sm:$0xf]  ;;  %v764_v48 = vshrl.u32 %v659_v43, 16  ;;  %v746_v49 = vor.u32 %v745_v39, %v742_v38  ;;  %v661_v51 = vld [vmem:[%s7052_s25 + $0x14] sm:$0x1] }
  0x1c   : > { %6586 = vmatmul.mubr.msk.bf16.gmra.mxu0 %vm378_vm1, %v6928_v14  ;;  %v756_v50 = vor.u32 %v755_v41, %v751_v40  ;;  %v767_v52 = vshll.u32 %v659_v43, 16  ;;  %v773_v53 = vshll.u32 %v660_v47, 16  ;;  %v1452_v54 = vld [vmem:[%s7052_s25 + $0xc] sm:$0xe]  ;;  %v1583_v56 = vsel %vm7111_vm6, %v5887_v37, %v1582_v45  ;;  %v1453_v60 = vld [vmem:[%s7052_s25 + $0x10] sm:$0xf] }
  0x1d   : > { %6602 = vmatmul.mubr.msk.bf16.gmra.mxu1 %vm378_vm1, %v6929_v15  ;;  %6589 = vmatprep.mubr.msk.bf16.mxu0 %vm378_vm1, %v6930_v16  ;;  %v1584_v57 = vrot.slane %v1582_v45, 4  ;;  %v766_v58 = vrot.slane %v764_v48, 4  ;;  %v777_v59 = vshrl.u32 %v660_v47, 16  ;;  %v747_v61 = vrot.slane %v746_v49, 4  ;;  %v1454_v1 = vld [vmem:[%s7052_s25 + $0x14] sm:$0x1] }
  0x1e   : > { %6605 = vmatprep.mubr.msk.bf16.mxu1 %vm378_vm1, %v6931_v17  ;;  %v757_v62 = vrot.slane %v756_v50, 4  ;;  %v769_v63 = vrot.slane %v767_v52, 5  ;;  %v775_v0 = vrot.slane %v773_v53, 5  ;;  %v783_v5 = vshll.u32 %v661_v51, 16  ;;  %v662_v7 = vld [vmem:[%s7052_s25 + $0x18] sm:$0xf] }
  0x1f   : > { %v1586_v3 = vsel %vm7111_vm6, %v1584_v57, %v1585_v46  ;;  %v779_v4 = vrot.slane %v777_v59, 4  ;;  %v5888_v6 = vrot.slane %v1452_v54, 9  ;;  %v6937_v8 = vld [vmem:[%s7052_s25 + $0xb4] sm:$0xff]   ;;  %v752_v9 = vsel %vm7125_vm7, %v747_v61, %v751_v40  ;;  %v663_v13 = vld [vmem:[%s7052_s25 + $0x1c] sm:$0xf] }
  0x20   : > { %v762_v10 = vsel %vm7125_vm7, %v757_v62, %v761_v44  ;;  %v5904_v11 = vcombine.low %v1583_v56, %v1586_v3  ;;  %v770_v12 = vor.u32 %v769_v63, %v766_v58  ;;  %v785_v16 = vrot.slane %v783_v5, 5  ;;  %v1455_v27 = vld [vmem:[%s7052_s25 + $0x18] sm:$0xe]  ;;  %v1456_v32 = vld [vmem:[%s7052_s25 + $0x1c] sm:$0xf] }
  0x21   : > { %v5855_v14 = vcombine.low %v752_v9, %v762_v10  ;;  %v780_v15 = vor.u32 %v779_v4, %v775_v0  ;;  %v1589_v17 = vrot.slane %v1453_v60, 5  ;;  %v791_v26 = vshll.u32 %v662_v7, 16  ;;  %v1457_v37 = vld [vmem:[%s7052_s25 + $0x20] sm:$0x1]  ;;  %v665_v43 = vld [vmem:[%s7052_s25 + $0x24] sm:$0xf] }
  0x22   : > { %v797_v31 = vshll.u32 %v663_v13, 16  ;;  %v801_v36 = vshrl.u32 %v663_v13, 16  ;;  %v666_v48 = vld [vmem:[%s7052_s25 + $0x28] sm:$0xf]  ;;  %v5889_v50 = vrot.slane %v1455_v27, 9  ;;  %v1596_v51 = vrot.slane %v1456_v32, 5 }
  0x23   : > { %v781_v28 = vrot.slane %v780_v15, 4  ;;  %v1590_v29 = vsel %vm7111_vm6, %v5888_v6, %v1589_v17  ;;  %v1591_v30 = vrot.slane %v1589_v17, 4  ;;  %v793_v35 = vrot.slane %v791_v26, 5  ;;  %v667_v53 = vld [vmem:[%s7052_s25 + $0x2c] sm:$0x1] }
  0x24   : > { %6590 = vmatmul.mubr.msk.bf16.gmra.mxu0 %vm378_vm1, %v6932_v20  ;;  %v664_v20 = vld [vmem:[%s7052_s25 + $0x20] sm:$0x1]  ;;  %v799_v40 = vrot.slane %v797_v31, 5  ;;  %v803_v47 = vrot.slane %v801_v36, 4  ;;  %v1599_v52 = vrot.slane %v1457_v37, 5  ;;  %v812_v57 = vshrl.u32 %v665_v43, 16 }
  0x25   : > { %6606 = vmatmul.mubr.msk.bf16.gmra.mxu1 %vm378_vm1, %v6933_v22  ;;  %6593 = vmatprep.mubr.msk.bf16.mxu0 %vm378_vm1, %v6934_v23  ;;  %v771_v22 = vrot.slane %v770_v12, 4  ;;  %v1592_v23 = vrot.slane %v1454_v1, 5  ;;  %v786_v38 = vsel %vm7125_vm7, %v781_v28, %v785_v16  ;;  %v807_v41 = vshll.u32 %v664_v20, 16  ;;  %v1458_v59 = vld [vmem:[%s7052_s25 + $0x24] sm:$0xe] }
  0x26   : > { %6609 = vmatprep.mubr.msk.bf16.mxu1 %vm378_vm1, %v6935_v25  ;;  %v788_v25 = vshrl.u32 %v662_v7, 16  ;;  %v804_v56 = vor.u32 %v803_v47, %v799_v40  ;;  %v815_v58 = vshll.u32 %v665_v43, 16  ;;  %v1597_v60 = vsel %vm7111_vm6, %v5889_v50, %v1596_v51  ;;  %v1460_v5 = vld [vmem:[%s7052_s25 + $0x2c] sm:$0x1]  ;;  %v668_v10 = vld [vmem:[%s7052_s25 + $0x30] sm:$0xf] }
  0x27   : > { %v776_v33 = vsel %vm7125_vm7, %v771_v22, %v775_v0  ;;  %v1593_v39 = vsel %vm7111_vm6, %v1591_v30, %v1592_v23  ;;  %v809_v49 = vrot.slane %v807_v41, 5  ;;  %v1598_v61 = vrot.slane %v1596_v51, 4  ;;  %v1459_v0 = vld [vmem:[%s7052_s25 + $0x28] sm:$0xf]  ;;  %v669_v15 = vld [vmem:[%s7052_s25 + $0x34] sm:$0xf] }
  0x28   : > { %v790_v34 = vrot.slane %v788_v25, 4  ;;  %v5856_v44 = vcombine.low %v776_v33, %v786_v38  ;;  %v5905_v45 = vcombine.low %v1590_v29, %v1593_v39  ;;  %v821_v62 = vshll.u32 %v666_v48, 16  ;;  %v670_v23 = vld [vmem:[%s7052_s25 + $0x38] sm:$0x1]  ;;  %v1461_v28 = vld [vmem:[%s7052_s25 + $0x30] sm:$0xe] }
  0x29   : > { %v825_v63 = vshrl.u32 %v666_v48, 16  ;;  %v814_v3 = vrot.slane %v812_v57, 4  ;;  %v817_v4 = vrot.slane %v815_v58, 5  ;;  %v1600_v6 = vsel %vm7111_vm6, %v1598_v61, %v1599_v52  ;;  %v1462_v32 = vld [vmem:[%s7052_s25 + $0x34] sm:$0xf] }
  0x2a   : > { %v794_v46 = vor.u32 %v793_v35, %v790_v34  ;;  %v823_v7 = vrot.slane %v821_v62, 5  ;;  %v831_v9 = vshll.u32 %v667_v53, 16  ;;  %v5906_v12 = vcombine.low %v1597_v60, %v1600_v6  ;;  %v1463_v37 = vld [vmem:[%s7052_s25 + $0x38] sm:$0x1]  ;;  %v671_v41 = vld [vmem:[%s7052_s25 + $0x3c] sm:$0xf] }
  0x2b   : > { %v818_v13 = vor.u32 %v817_v4, %v814_v3  ;;  %v1603_v22 = vrot.slane %v1459_v0, 5  ;;  %v836_v26 = vshrl.u32 %v668_v10, 16  ;;  %v839_v27 = vshll.u32 %v668_v10, 16  ;;  %v672_v47 = vld [vmem:[%s7052_s25 + $0x40] sm:$0xf] }
  0x2c   : > { %6594 = vmatmul.mubr.msk.bf16.gmra.mxu0 %vm378_vm1, %v6936_v2  ;;  %v795_v54 = vrot.slane %v794_v46, 4  ;;  %v805_v2 = vrot.slane %v804_v56, 4  ;;  %v833_v20 = vrot.slane %v831_v9, 5  ;;  %v845_v31 = vshll.u32 %v669_v15, 16  ;;  %v673_v52 = vld [vmem:[%s7052_s25 + $0x44] sm:$0x1] }
  0x2d   : > { %6610 = vmatmul.mubr.msk.bf16.gmra.mxu1 %vm378_vm1, %v6937_v8  ;;  %6649 = vmatprep.mubr.msk.bf16.mxu0 %vm378_vm1, %v5904_v11  ;;  %v827_v8 = vrot.slane %v825_v63, 4  ;;  %v819_v25 = vrot.slane %v818_v13, 4  ;;  %v1605_v30 = vrot.slane %v1603_v22, 4  ;;  %v838_v34 = vrot.slane %v836_v26, 4  ;;  %v1464_v58 = vld [vmem:[%s7052_s25 + $0x3c] sm:$0xe] }
  0x2e   : > { %6615 = vmatprep.mubr.msk.bf16.mxu1 %vm378_vm1, %v5855_v14  ;;  %v800_v1 = vsel %vm7125_vm7, %v795_v54, %v799_v40  ;;  %v810_v11 = vsel %vm7125_vm7, %v805_v2, %v809_v49  ;;  %v5890_v14 = vrot.slane %v1458_v59, 9  ;;  %v841_v35 = vrot.slane %v839_v27, 5  ;;  %v1465_v63 = vld [vmem:[%s7052_s25 + $0x40] sm:$0xf]  ;;  %v1466_v4 = vld [vmem:[%s7052_s25 + $0x44] sm:$0x1] }
  0x2f   : > { %v5857_v16 = vcombine.low %v800_v1, %v810_v11  ;;  %v828_v17 = vor.u32 %v827_v8, %v823_v7  ;;  %v824_v33 = vsel %vm7125_vm7, %v819_v25, %v823_v7  ;;  %v849_v36 = vshrl.u32 %v669_v15, 16  ;;  %v674_v9 = vld [vmem:[%s7052_s25 + $0x48] sm:$0xf] }
  0x30   : > { %v1604_v29 = vsel %vm7111_vm6, %v5890_v14, %v1603_v22  ;;  %v847_v39 = vrot.slane %v845_v31, 5  ;;  %v855_v40 = vshll.u32 %v670_v23, 16  ;;  %v5891_v49 = vrot.slane %v1461_v28, 9  ;;  %v675_v14 = vld [vmem:[%s7052_s25 + $0x4c] sm:$0xf] }
  0x31   : > { %v851_v46 = vrot.slane %v849_v36, 4  ;;  %v1610_v50 = vrot.slane %v1462_v32, 5  ;;  %v1613_v51 = vrot.slane %v1463_v37, 5  ;;  %v860_v56 = vshrl.u32 %v671_v41, 16  ;;  %v676_v22 = vld [vmem:[%s7052_s25 + $0x50] sm:$0x1] }
  0x32   : > { %v857_v48 = vrot.slane %v855_v40, 5  ;;  %v863_v57 = vshll.u32 %v671_v41, 16  ;;  %v869_v61 = vshll.u32 %v672_v47, 16  ;;  %v873_v62 = vshrl.u32 %v672_v47, 16  ;;  %v1467_v27 = vld [vmem:[%s7052_s25 + $0x48] sm:$0xe] }
  0x33   : > { %v852_v54 = vor.u32 %v851_v46, %v847_v39  ;;  %v1611_v59 = vsel %vm7111_vm6, %v5891_v49, %v1610_v50  ;;  %v1612_v60 = vrot.slane %v1610_v50, 4  ;;  %v862_v2 = vrot.slane %v860_v56, 4  ;;  %v1468_v31 = vld [vmem:[%s7052_s25 + $0x4c] sm:$0xf]  ;;  %v1469_v36 = vld [vmem:[%s7052_s25 + $0x50] sm:$0x1] }
  0x34   : > { %6650 = vmatmul.mubr.msk.bf16.vlgmr.msra.gmra.mxu0 %vm378_vm1, %v5905_v45  ;;  %v842_v45 = vor.u32 %v841_v35, %v838_v34  ;;  %v865_v3 = vrot.slane %v863_v57, 5  ;;  %v871_v6 = vrot.slane %v869_v61, 5  ;;  %v875_v7 = vrot.slane %v873_v62, 4  ;;  %v677_v40 = vld [vmem:[%s7052_s25 + $0x54] sm:$0xf] }
  0x35   : > { %6616 = vmatmul.mubr.msk.bf16.vlgmr.msra.gmra.mxu1 %vm378_vm1, %v5856_v44  ;;  %6716 = vmatpush3.bf16.msra.mxu0 %v7094_v21  ;;  %v1606_v21 = vrot.slane %v1460_v5, 5  ;;  %v853_v1 = vrot.slane %v852_v54, 4  ;;  %v1614_v5 = vsel %vm7111_vm6, %v1612_v60, %v1613_v51  ;;  %v879_v8 = vshll.u32 %v673_v52, 16  ;;  %v678_v46 = vld [vmem:[%s7052_s25 + $0x58] sm:$0xf] }
  0x36   : > { %6682 = vmatpush3.bf16.msra.mxu1 %v7089_v19  ;;  %6653 = vmatprep.mubr.msk.bf16.mxu0 %vm378_vm1, %v5906_v12  ;;  %v829_v19 = vrot.slane %v828_v17, 4  ;;  %v843_v53 = vrot.slane %v842_v45, 4  ;;  %v5908_v11 = vcombine.low %v1611_v59, %v1614_v5  ;;  %v866_v12 = vor.u32 %v865_v3, %v862_v2  ;;  %v679_v51 = vld [vmem:[%s7052_s25 + $0x5c] sm:$0x1]  ;;  %v1470_v57 = vld [vmem:[%s7052_s25 + $0x54] sm:$0xe] }
  0x37   : > { %6893 = vmatprep.subr.msk.bf16.mxu1 %vm427_vm0, %v7084_v18  ;;  %6619 = vmatprep.mubr.msk.bf16.mxu1 %vm378_vm1, %v5857_v16  ;;  %v1607_v38 = vsel %vm7111_vm6, %v1605_v30, %v1606_v21  ;;  %v858_v10 = vsel %vm7125_vm7, %v853_v1, %v857_v48  ;;  %v5892_v13 = vrot.slane %v1464_v58, 9  ;;  %v876_v16 = vor.u32 %v875_v7, %v871_v6  ;;  %v1471_v62 = vld [vmem:[%s7052_s25 + $0x58] sm:$0xf]  ;;  %v1472_v3 = vld [vmem:[%s7052_s25 + $0x5c] sm:$0x1] }
  0x38   : > { %v834_v18 = vsel %vm7125_vm7, %v829_v19, %v833_v20  ;;  %v5907_v44 = vcombine.low %v1604_v29, %v1607_v38  ;;  %v848_v0 = vsel %vm7125_vm7, %v843_v53, %v847_v39  ;;  %v881_v17 = vrot.slane %v879_v8, 5  ;;  %v680_v8 = vld [vmem:[%s7052_s25 + $0x60] sm:$0xf] }
  0x39   : > { %v5858_v43 = vcombine.low %v824_v33, %v834_v18  ;;  %v5859_v15 = vcombine.low %v848_v0, %v858_v10  ;;  %v1617_v20 = vrot.slane %v1465_v63, 5  ;;  %v867_v23 = vrot.slane %v866_v12, 4 }
  0x3a   : > { %v1620_v25 = vrot.slane %v1466_v4, 5  ;;  %v884_v21 = vshrl.u32 %v674_v9, 16  ;;  %v887_v26 = vshll.u32 %v674_v9, 16  ;;  %v877_v28 = vrot.slane %v876_v16, 4 }
  0x3b   : > { %v1618_v19 = vsel %vm7111_vm6, %v5892_v13, %v1617_v20  ;;  %v1619_v29 = vrot.slane %v1617_v20, 4  ;;  %v893_v30 = vshll.u32 %v675_v14, 16  ;;  %v872_v32 = vsel %vm7125_vm7, %v867_v23, %v871_v6  ;;  %v681_v13 = vld [vmem:[%s7052_s25 + $0x64] sm:$0xf]  ;;  %v682_v20 = vld [vmem:[%s7052_s25 + $0x68] sm:$0x1] }
  0x3c   : > { %6654 = vmatmul.mubr.msk.bf16.gmra.mxu0 %vm378_vm1, %v5907_v44  ;;  %v886_v33 = vrot.slane %v884_v21, 4  ;;  %v889_v34 = vrot.slane %v887_v26, 5  ;;  %v897_v35 = vshrl.u32 %v675_v14, 16  ;;  %v882_v37 = vsel %vm7125_vm7, %v877_v28, %v881_v17  ;;  %v1473_v26 = vld [vmem:[%s7052_s25 + $0x60] sm:$0xe] }
  0x3d   : > { %6620 = vmatmul.mubr.msk.bf16.gmra.mxu1 %vm378_vm1, %v5858_v43  ;;  %6657 = vmatprep.mubr.msk.bf16.mxu0 %vm378_vm1, %v5908_v11  ;;  %v1621_v18 = vsel %vm7111_vm6, %v1619_v29, %v1620_v25  ;;  %v895_v38 = vrot.slane %v893_v30, 5  ;;  %v903_v39 = vshll.u32 %v676_v22, 16  ;;  %v5860_v41 = vcombine.low %v872_v32, %v882_v37  ;;  %v1474_v30 = vld [vmem:[%s7052_s25 + $0x64] sm:$0xf] }
  0x3e   : > { %6623 = vmatprep.mubr.msk.bf16.mxu1 %vm378_vm1, %v5859_v15  ;;  %v5909_v43 = vcombine.low %v1618_v19, %v1621_v18  ;;  %v890_v44 = vor.u32 %v889_v34, %v886_v33  ;;  %v899_v45 = vrot.slane %v897_v35, 4  ;;  %v5893_v48 = vrot.slane %v1467_v27, 9  ;;  %v1475_v35 = vld [vmem:[%s7052_s25 + $0x68] sm:$0x1] }
  0x3f   : > { %v905_v47 = vrot.slane %v903_v39, 5  ;;  %v1624_v49 = vrot.slane %v1468_v31, 5  ;;  %v1627_v50 = vrot.slane %v1469_v36, 5  ;;  %v908_v54 = vshrl.u32 %v677_v40, 16  ;;  %v683_v39 = vld [vmem:[%s7052_s25 + $0x6c] sm:$0xf] }
  0x40   : > { %v891_v52 = vrot.slane %v890_v44, 4  ;;  %v900_v53 = vor.u32 %v899_v45, %v895_v38  ;;  %v911_v56 = vshll.u32 %v677_v40, 16  ;;  %v917_v60 = vshll.u32 %v678_v46, 16  ;;  %v684_v45 = vld [vmem:[%s7052_s25 + $0x70] sm:$0xf] }
  0x41   : > { %v1625_v58 = vsel %vm7111_vm6, %v5893_v48, %v1624_v49  ;;  %v1626_v59 = vrot.slane %v1624_v49, 4  ;;  %v921_v61 = vshrl.u32 %v678_v46, 16  ;;  %v910_v1 = vrot.slane %v908_v54, 4 }
  0x42   : > { %v896_v63 = vsel %vm7125_vm7, %v891_v52, %v895_v38  ;;  %v901_v0 = vrot.slane %v900_v53, 4  ;;  %v913_v2 = vrot.slane %v911_v56, 5  ;;  %v919_v5 = vrot.slane %v917_v60, 5  ;;  %v1476_v56 = vld [vmem:[%s7052_s25 + $0x6c] sm:$0xe] }
  0x43   : > { %v1628_v4 = vsel %vm7111_vm6, %v1626_v59, %v1627_v50  ;;  %v923_v6 = vrot.slane %v921_v61, 4  ;;  %v927_v7 = vshll.u32 %v679_v51, 16  ;;  %v5894_v12 = vrot.slane %v1470_v57, 9  ;;  %v685_v50 = vld [vmem:[%s7052_s25 + $0x74] sm:$0x1] }
  0x44   : > { %6658 = vmatmul.mubr.msk.bf16.gmra.mxu0 %vm378_vm1, %v5909_v43  ;;  %v906_v9 = vsel %vm7125_vm7, %v901_v0, %v905_v47  ;;  %v5910_v10 = vcombine.low %v1625_v58, %v1628_v4  ;;  %v914_v11 = vor.u32 %v913_v2, %v910_v1  ;;  %v1631_v17 = vrot.slane %v1471_v62, 5  ;;  %v1477_v61 = vld [vmem:[%s7052_s25 + $0x70] sm:$0xf]  ;;  %v1478_v2 = vld [vmem:[%s7052_s25 + $0x74] sm:$0x1] }
  0x45   : > { %6624 = vmatmul.mubr.msk.bf16.gmra.mxu1 %vm378_vm1, %v5860_v41  ;;  %v5861_v14 = vcombine.low %v896_v63, %v906_v9  ;;  %v924_v15 = vor.u32 %v923_v6, %v919_v5  ;;  %v929_v16 = vrot.slane %v927_v7, 5  ;;  %v1634_v23 = vrot.slane %v1472_v3, 5  ;;  %v686_v7 = vld [vmem:[%s7052_s25 + $0x78] sm:$0xf] }
  0x46   : > { %6661 = vmatprep.mubr.msk.bf16.mxu0 %vm378_vm1, %v5910_v10  ;;  %v915_v22 = vrot.slane %v914_v11, 4  ;;  %v932_v25 = vshrl.u32 %v680_v8, 16  ;;  %v935_v21 = vshll.u32 %v680_v8, 16  ;;  %v1632_v28 = vsel %vm7111_vm6, %v5894_v12, %v1631_v17  ;;  %v687_v12 = vld [vmem:[%s7052_s25 + $0x7c] sm:$0xf] }
  0x47   : > { %6627 = vmatprep.mubr.msk.bf16.mxu1 %vm378_vm1, %v5861_v14  ;;  %v925_v27 = vrot.slane %v924_v15, 4  ;;  %v1633_v19 = vrot.slane %v1631_v17, 4  ;;  %v941_v29 = vshll.u32 %v681_v13, 16  ;;  %v945_v34 = vshrl.u32 %v681_v13, 16  ;;  %v688_v17 = vld [vmem:[%s7052_s25 + $0x80] sm:$0x1] }
  0x48   : > { %v920_v31 = vsel %vm7125_vm7, %v915_v22, %v919_v5  ;;  %v934_v32 = vrot.slane %v932_v25, 4  ;;  %v937_v33 = vrot.slane %v935_v21, 5  ;;  %v951_v38 = vshll.u32 %v682_v20, 16  ;;  %v1479_v21 = vld [vmem:[%s7052_s25 + $0x78] sm:$0xe] }
  0x49   : > { %v930_v36 = vsel %vm7125_vm7, %v925_v27, %v929_v16  ;;  %v1635_v37 = vsel %vm7111_vm6, %v1633_v19, %v1634_v23  ;;  %v943_v18 = vrot.slane %v941_v29, 5  ;;  %v947_v44 = vrot.slane %v945_v34, 4  ;;  %v1480_v29 = vld [vmem:[%s7052_s25 + $0x7c] sm:$0xf]  ;;  %v1481_v34 = vld [vmem:[%s7052_s25 + $0x80] sm:$0x1] }
  0x4a   : > { %v5862_v40 = vcombine.low %v920_v31, %v930_v36  ;;  %v5911_v41 = vcombine.low %v1632_v28, %v1635_v37  ;;  %v938_v43 = vor.u32 %v937_v33, %v934_v32  ;;  %v953_v46 = vrot.slane %v951_v38, 5  ;;  %v689_v38 = vld [vmem:[%s7052_s25 + $0x84] sm:$0xf] }
  0x4b   : > { %v5895_v47 = vrot.slane %v1473_v26, 9  ;;  %v1638_v48 = vrot.slane %v1474_v30, 5  ;;  %v1641_v49 = vrot.slane %v1475_v35, 5  ;;  %v948_v52 = vor.u32 %v947_v44, %v943_v18  ;;  %v690_v44 = vld [vmem:[%s7052_s25 + $0x88] sm:$0xf] }
  0x4c   : > { %6662 = vmatmul.mubr.msk.bf16.gmra.mxu0 %vm378_vm1, %v5911_v41  ;;  %v939_v51 = vrot.slane %v938_v43, 4  ;;  %v956_v53 = vshrl.u32 %v683_v39, 16  ;;  %v959_v54 = vshll.u32 %v683_v39, 16  ;;  %v965_v59 = vshll.u32 %v684_v45, 16 }
  0x4d   : > { %6628 = vmatmul.mubr.msk.bf16.gmra.mxu1 %vm378_vm1, %v5862_v40  ;;  %v1639_v57 = vsel %vm7111_vm6, %v5895_v47, %v1638_v48  ;;  %v1640_v58 = vrot.slane %v1638_v48, 4  ;;  %v969_v60 = vshrl.u32 %v684_v45, 16  ;;  %v949_v63 = vrot.slane %v948_v52, 4 }
  0x4e   : > { %v944_v62 = vsel %vm7125_vm7, %v939_v51, %v943_v18  ;;  %v958_v0 = vrot.slane %v956_v53, 4  ;;  %v961_v1 = vrot.slane %v959_v54, 5  ;;  %v967_v4 = vrot.slane %v965_v59, 5  ;;  %v1482_v54 = vld [vmem:[%s7052_s25 + $0x84] sm:$0xe] }
  0x4f   : > { %v1642_v3 = vsel %vm7111_vm6, %v1640_v58, %v1641_v49  ;;  %v971_v5 = vrot.slane %v969_v60, 4  ;;  %v975_v6 = vshll.u32 %v685_v50, 16  ;;  %v954_v8 = vsel %vm7125_vm7, %v949_v63, %v953_v46  ;;  %v691_v49 = vld [vmem:[%s7052_s25 + $0x8c] sm:$0x1]  ;;  %v1483_v60 = vld [vmem:[%s7052_s25 + $0x88] sm:$0xf] }
  0x50   : > { %v5912_v9 = vcombine.low %v1639_v57, %v1642_v3  ;;  %v962_v10 = vor.u32 %v961_v1, %v958_v0  ;;  %v5896_v11 = vrot.slane %v1476_v56, 9  ;;  %v5863_v13 = vcombine.low %v944_v62, %v954_v8  ;;  %v1484_v1 = vld [vmem:[%s7052_s25 + $0x8c] sm:$0x1] }
  0x51   : > { %v972_v14 = vor.u32 %v971_v5, %v967_v4  ;;  %v977_v15 = vrot.slane %v975_v6, 5  ;;  %v1645_v16 = vrot.slane %v1477_v61, 5  ;;  %v1648_v22 = vrot.slane %v1478_v2, 5  ;;  %v692_v6 = vld [vmem:[%s7052_s25 + $0x90] sm:$0xf] }
  0x52   : > { %6665 = vmatprep.mubr.msk.bf16.mxu0 %vm378_vm1, %v5912_v9  ;;  %v963_v20 = vrot.slane %v962_v10, 4  ;;  %v980_v23 = vshrl.u32 %v686_v7, 16  ;;  %v983_v25 = vshll.u32 %v686_v7, 16  ;;  %6631 = vmatprep.mubr.msk.bf16.mxu1 %vm378_vm1, %v5863_v13  ;;  %v989_v19 = vshll.u32 %v687_v12, 16 }
  0x53   : > { %v973_v26 = vrot.slane %v972_v14, 4  ;;  %v1646_v27 = vsel %vm7111_vm6, %v5896_v11, %v1645_v16  ;;  %v1647_v28 = vrot.slane %v1645_v16, 4  ;;  %v993_v33 = vshrl.u32 %v687_v12, 16  ;;  %v693_v11 = vld [vmem:[%s7052_s25 + $0x94] sm:$0xf] }
  0x54   : > { %v968_v30 = vsel %vm7125_vm7, %v963_v20, %v967_v4  ;;  %v982_v31 = vrot.slane %v980_v23, 4  ;;  %v985_v32 = vrot.slane %v983_v25, 5  ;;  %v991_v37 = vrot.slane %v989_v19, 5  ;;  %v694_v12 = vld [vmem:[%s7052_s25 + $0x98] sm:$0x1] }
  0x55   : > { %v978_v35 = vsel %vm7125_vm7, %v973_v26, %v977_v15  ;;  %v1649_v36 = vsel %vm7111_vm6, %v1647_v28, %v1648_v22  ;;  %v999_v18 = vshll.u32 %v688_v17, 16  ;;  %v995_v43 = vrot.slane %v993_v33, 4  ;;  %v1485_v25 = vld [vmem:[%s7052_s25 + $0x90] sm:$0xe] }
  0x56   : > { %v5864_v39 = vcombine.low %v968_v30, %v978_v35  ;;  %v5913_v40 = vcombine.low %v1646_v27, %v1649_v36  ;;  %v986_v41 = vor.u32 %v985_v32, %v982_v31  ;;  %v5897_v46 = vrot.slane %v1479_v21, 9  ;;  %v1486_v21 = vld [vmem:[%s7052_s25 + $0x94] sm:$0xf] }
  0x57   : > { %v1001_v45 = vrot.slane %v999_v18, 5  ;;  %v1652_v47 = vrot.slane %v1480_v29, 5  ;;  %v1655_v48 = vrot.slane %v1481_v34, 5  ;;  %v996_v51 = vor.u32 %v995_v43, %v991_v37  ;;  %v1487_v29 = vld [vmem:[%s7052_s25 + $0x98] sm:$0x1] }
  0x58   : > { %6632 = vmatmul.mubr.msk.bf16.gmra.mxu1 %vm378_vm1, %v5864_v39  ;;  %6666 = vmatmul.mubr.msk.bf16.gmra.mxu0 %vm378_vm1, %v5913_v40  ;;  %v987_v50 = vrot.slane %v986_v41, 4  ;;  %v1004_v52 = vshrl.u32 %v689_v38, 16  ;;  %v1007_v53 = vshll.u32 %v689_v38, 16  ;;  %v1013_v58 = vshll.u32 %v690_v44, 16  ;;  %v695_v34 = vld [vmem:[%s7052_s25 + $0x9c] sm:$0xf] }
  0x59   : > { %v1653_v56 = vsel %vm7111_vm6, %v5897_v46, %v1652_v47  ;;  %v1654_v57 = vrot.slane %v1652_v47, 4  ;;  %v1017_v59 = vshrl.u32 %v690_v44, 16  ;;  %v997_v62 = vrot.slane %v996_v51, 4  ;;  %v696_v43 = vld [vmem:[%s7052_s25 + $0xa0] sm:$0xf] }
  0x5a   : > { %v992_v61 = vsel %vm7125_vm7, %v987_v50, %v991_v37  ;;  %v1006_v63 = vrot.slane %v1004_v52, 4  ;;  %v1009_v0 = vrot.slane %v1007_v53, 5  ;;  %v1015_v3 = vrot.slane %v1013_v58, 5  ;;  %v697_v44 = vld [vmem:[%s7052_s25 + $0xa4] sm:$0x1] }
  0x5b   : > { %v1656_v2 = vsel %vm7111_vm6, %v1654_v57, %v1655_v48  ;;  %v1019_v4 = vrot.slane %v1017_v59, 4  ;;  %v1023_v5 = vshll.u32 %v691_v49, 16  ;;  %v1002_v7 = vsel %vm7125_vm7, %v997_v62, %v1001_v45  ;;  %v1488_v49 = vld [vmem:[%s7052_s25 + $0x9c] sm:$0xe] }
  0x5c   : > { %v5914_v8 = vcombine.low %v1653_v56, %v1656_v2  ;;  %v1010_v9 = vor.u32 %v1009_v0, %v1006_v63  ;;  %v5898_v10 = vrot.slane %v1482_v54, 9  ;;  %v5865_v13 = vcombine.low %v992_v61, %v1002_v7  ;;  %v1489_v54 = vld [vmem:[%s7052_s25 + $0xa0] sm:$0xf]  ;;  %v7333_v56 = vld [vmem:[%s8747_s1 + $0x18] sm:$0xf] }
  0x5d   : > { %v1020_v14 = vor.u32 %v1019_v4, %v1015_v3  ;;  %v1025_v15 = vrot.slane %v1023_v5, 5  ;;  %v1659_v16 = vrot.slane %v1483_v60, 5  ;;  %v1662_v20 = vrot.slane %v1484_v1, 5  ;;  %v1490_v61 = vld [vmem:[%s7052_s25 + $0xa4] sm:$0x1]  ;;  %6894 = vmatprep.subr.msk.bf16.mxu0 %vm427_vm0, %v7333_v56 }
  0x5e   : > { %6669 = vmatprep.mubr.msk.bf16.mxu0 %vm378_vm1, %v5914_v8  ;;  %v1011_v17 = vrot.slane %v1010_v9, 4  ;;  %v1028_v22 = vshrl.u32 %v692_v6, 16  ;;  %v1031_v23 = vshll.u32 %v692_v6, 16  ;;  %6635 = vmatprep.mubr.msk.bf16.mxu1 %vm378_vm1, %v5865_v13  ;;  %v1037_v19 = vshll.u32 %v693_v11, 16  ;;  %v698_v6 = vld [vmem:[%s7052_s25 + $0xa8] sm:$0xf] }
  0x5f   : > { %v1021_v26 = vrot.slane %v1020_v14, 4  ;;  %v1660_v27 = vsel %vm7111_vm6, %v5898_v10, %v1659_v16  ;;  %v1661_v28 = vrot.slane %v1659_v16, 4  ;;  %v1041_v33 = vshrl.u32 %v693_v11, 16  ;;  %v699_v11 = vld [vmem:[%s7052_s25 + $0xac] sm:$0xf] }
  0x60   : > { %v1016_v30 = vsel %vm7125_vm7, %v1011_v17, %v1015_v3  ;;  %v1030_v31 = vrot.slane %v1028_v22, 4  ;;  %v1033_v32 = vrot.slane %v1031_v23, 5  ;;  %v1039_v37 = vrot.slane %v1037_v19, 5 }
  0x61   : > { %v1026_v35 = vsel %vm7125_vm7, %v1021_v26, %v1025_v15  ;;  %v1663_v36 = vsel %vm7111_vm6, %v1661_v28, %v1662_v20  ;;  %v1047_v18 = vshll.u32 %v694_v12, 16  ;;  %v1043_v41 = vrot.slane %v1041_v33, 4  ;;  %v700_v12 = vld [vmem:[%s7052_s25 + $0xb0] sm:$0x1] }
  0x62   : > { %v5866_v38 = vcombine.low %v1016_v30, %v1026_v35  ;;  %v5915_v39 = vcombine.low %v1660_v27, %v1663_v36  ;;  %v1034_v40 = vor.u32 %v1033_v32, %v1030_v31  ;;  %v5899_v46 = vrot.slane %v1485_v25, 9  ;;  %v1491_v25 = vld [vmem:[%s7052_s25 + $0xa8] sm:$0xe] }
  0x63   : > { %v1049_v45 = vrot.slane %v1047_v18, 5  ;;  %v1666_v47 = vrot.slane %v1486_v21, 5  ;;  %v1669_v48 = vrot.slane %v1487_v29, 5  ;;  %v1044_v51 = vor.u32 %v1043_v41, %v1039_v37  ;;  %v1492_v21 = vld [vmem:[%s7052_s25 + $0xac] sm:$0xf] }
  0x64   : > { %6636 = vmatmul.mubr.msk.bf16.gmra.mxu1 %vm378_vm1, %v5866_v38  ;;  %6670 = vmatmul.mubr.msk.bf16.gmra.mxu0 %vm378_vm1, %v5915_v39  ;;  %v1035_v50 = vrot.slane %v1034_v40, 4  ;;  %v1052_v52 = vshrl.u32 %v695_v34, 16  ;;  %v1055_v53 = vshll.u32 %v695_v34, 16  ;;  %v1061_v59 = vshll.u32 %v696_v43, 16  ;;  %v1493_v29 = vld [vmem:[%s7052_s25 + $0xb0] sm:$0x1] }
  0x65   : > { %v1667_v57 = vsel %vm7111_vm6, %v5899_v46, %v1666_v47  ;;  %v1668_v58 = vrot.slane %v1666_v47, 4  ;;  %v1065_v60 = vshrl.u32 %v696_v43, 16  ;;  %v1045_v63 = vrot.slane %v1044_v51, 4  ;;  %v701_v34 = vld [vmem:[%s7052_s25 + $0xb4] sm:$0xf] }
  0x66   : > { %v1040_v62 = vsel %vm7125_vm7, %v1035_v50, %v1039_v37  ;;  %v1054_v0 = vrot.slane %v1052_v52, 4  ;;  %v1057_v1 = vrot.slane %v1055_v53, 5  ;;  %v1063_v3 = vrot.slane %v1061_v59, 5  ;;  %v702_v43 = vld [vmem:[%s7052_s25 + $0xb8] sm:$0xf] }
  0x67   : > { %v1670_v2 = vsel %vm7111_vm6, %v1668_v58, %v1669_v48  ;;  %v1067_v4 = vrot.slane %v1065_v60, 4  ;;  %v1071_v5 = vshll.u32 %v697_v44, 16  ;;  %v1050_v7 = vsel %vm7125_vm7, %v1045_v63, %v1049_v45  ;;  %v703_v44 = vld [vmem:[%s7052_s25 + $0xbc] sm:$0x1] }
  0x68   : > { %v5916_v8 = vcombine.low %v1667_v57, %v1670_v2  ;;  %v1058_v9 = vor.u32 %v1057_v1, %v1054_v0  ;;  %v5900_v10 = vrot.slane %v1488_v49, 9  ;;  %v5867_v13 = vcombine.low %v1040_v62, %v1050_v7  ;;  %v1494_v49 = vld [vmem:[%s7052_s25 + $0xb4] sm:$0xe]  ;;  %v1496_v1 = vld [vmem:[%s7052_s25 + $0xbc] sm:$0x1] }
  0x69   : > { %v1068_v14 = vor.u32 %v1067_v4, %v1063_v3  ;;  %v1073_v15 = vrot.slane %v1071_v5, 5  ;;  %v1673_v16 = vrot.slane %v1489_v54, 5  ;;  %v1676_v20 = vrot.slane %v1490_v61, 5  ;;  %v1495_v54 = vld [vmem:[%s7052_s25 + $0xb8] sm:$0xf] }
  0x6a   : > { %6673 = vmatprep.mubr.msk.bf16.mxu0 %vm378_vm1, %v5916_v8  ;;  %v1059_v17 = vrot.slane %v1058_v9, 4  ;;  %v1076_v22 = vshrl.u32 %v698_v6, 16  ;;  %v1079_v23 = vshll.u32 %v698_v6, 16  ;;  %6639 = vmatprep.mubr.msk.bf16.mxu1 %vm378_vm1, %v5867_v13  ;;  %v1085_v19 = vshll.u32 %v699_v11, 16  ;;  %v6001_v6 = vld [vmem:[%s7052_s25 + $0xc] sm:$0xf] }
  0x6b   : > { %v1069_v26 = vrot.slane %v1068_v14, 4  ;;  %v1674_v27 = vsel %vm7111_vm6, %v5900_v10, %v1673_v16  ;;  %v1675_v28 = vrot.slane %v1673_v16, 4  ;;  %v1089_v33 = vshrl.u32 %v699_v11, 16  ;;  %v6002_v11 = vld [vmem:[%s7052_s25 + $0x10] sm:$0xf] }
  0x6c   : > { %v1064_v30 = vsel %vm7125_vm7, %v1059_v17, %v1063_v3  ;;  %v1078_v31 = vrot.slane %v1076_v22, 4  ;;  %v1081_v32 = vrot.slane %v1079_v23, 5  ;;  %v1087_v37 = vrot.slane %v1085_v19, 5  ;;  %v6003_v16 = vld [vmem:[%s7052_s25 + $0x14] sm:$0x1] }
  0x6d   : > { %v1074_v35 = vsel %vm7125_vm7, %v1069_v26, %v1073_v15  ;;  %v1677_v36 = vsel %vm7111_vm6, %v1675_v28, %v1676_v20  ;;  %v1095_v18 = vshll.u32 %v700_v12, 16  ;;  %v1091_v41 = vrot.slane %v1089_v33, 4  ;;  %v6005_v19 = vld [vmem:[%s7052_s25 + $0x1c] sm:$0xf] }
  0x6e   : > { %v5868_v38 = vcombine.low %v1064_v30, %v1074_v35  ;;  %v5917_v39 = vcombine.low %v1674_v27, %v1677_v36  ;;  %v1082_v40 = vor.u32 %v1081_v32, %v1078_v31  ;;  %v5901_v46 = vrot.slane %v1491_v25, 9  ;;  %v6004_v25 = vld [vmem:[%s7052_s25 + $0x18] sm:$0xf]  ;;  %v6938_v30 = vld [vmem:[%s7052_s25 + $0xc] sm:$0xff]  }
  0x6f   : > { %v1097_v45 = vrot.slane %v1095_v18, 5  ;;  %v1680_v47 = vrot.slane %v1492_v21, 5  ;;  %v1683_v48 = vrot.slane %v1493_v29, 5  ;;  %v1092_v51 = vor.u32 %v1091_v41, %v1087_v37  ;;  %v6006_v18 = vld [vmem:[%s7052_s25 + $0x20] sm:$0x1] }
  0x70   : > { %6640 = vmatmul.mubr.msk.bf16.gmra.mxu1 %vm378_vm1, %v5868_v38  ;;  %6674 = vmatmul.mubr.msk.bf16.gmra.mxu0 %vm378_vm1, %v5917_v39  ;;  %v1083_v50 = vrot.slane %v1082_v40, 4  ;;  %v1100_v52 = vshrl.u32 %v701_v34, 16  ;;  %v1103_v53 = vshll.u32 %v701_v34, 16  ;;  %v1109_v59 = vshll.u32 %v702_v43, 16 }
  0x71   : > { %v1681_v57 = vsel %vm7111_vm6, %v5901_v46, %v1680_v47  ;;  %v1682_v58 = vrot.slane %v1680_v47, 4  ;;  %v1113_v60 = vshrl.u32 %v702_v43, 16  ;;  %v1093_v62 = vrot.slane %v1092_v51, 4  ;;  %v6007_v43 = vld [vmem:[%s7052_s25 + $0x24] sm:$0xf] }
  0x72   : > { %v1088_v61 = vsel %vm7125_vm7, %v1083_v50, %v1087_v37  ;;  %v1102_v63 = vrot.slane %v1100_v52, 4  ;;  %v1105_v0 = vrot.slane %v1103_v53, 5  ;;  %v1111_v3 = vrot.slane %v1109_v59, 5  ;;  %v6009_v59 = vld [vmem:[%s7052_s25 + $0x2c] sm:$0x1] }
  0x73   : > { %v1684_v2 = vsel %vm7111_vm6, %v1682_v58, %v1683_v48  ;;  %v1115_v4 = vrot.slane %v1113_v60, 4  ;;  %v1119_v5 = vshll.u32 %v703_v44, 16  ;;  %v1098_v7 = vsel %vm7125_vm7, %v1093_v62, %v1097_v45  ;;  %v6008_v44 = vld [vmem:[%s7052_s25 + $0x28] sm:$0xf] }
  0x74   : > { %v5918_v8 = vcombine.low %v1681_v57, %v1684_v2  ;;  %v1106_v9 = vor.u32 %v1105_v0, %v1102_v63  ;;  %v5902_v10 = vrot.slane %v1494_v49, 9  ;;  %v5869_v12 = vcombine.low %v1088_v61, %v1098_v7  ;;  %v6939_v0 = vld [vmem:[%s7052_s25 + $0x18] sm:$0xff]  }
  0x75   : > { %v1116_v13 = vor.u32 %v1115_v4, %v1111_v3  ;;  %v1121_v14 = vrot.slane %v1119_v5, 5  ;;  %v1687_v15 = vrot.slane %v1495_v54, 5  ;;  %v1690_v20 = vrot.slane %v1496_v1, 5  ;;  %v6010_v5 = vld [vmem:[%s7052_s25 + $0x30] sm:$0xf] }
  0x76   : > { %6677 = vmatprep.mubr.msk.bf16.mxu0 %vm378_vm1, %v5918_v8  ;;  %v1107_v17 = vrot.slane %v1106_v9, 4  ;;  %v2525_v22 = vshrl.u32 %v6001_v6, 16  ;;  %v2528_v23 = vshll.u32 %v6001_v6, 16  ;;  %6643 = vmatprep.mubr.msk.bf16.mxu1 %vm378_vm1, %v5869_v12  ;;  %v2534_v28 = vshll.u32 %v6002_v11, 16 }
  0x77   : > { %v1117_v21 = vrot.slane %v1116_v13, 4  ;;  %v1688_v26 = vsel %vm7111_vm6, %v5902_v10, %v1687_v15  ;;  %v1689_v27 = vrot.slane %v1687_v15, 4  ;;  %v2538_v33 = vshrl.u32 %v6002_v11, 16  ;;  %v6940_v11 = vld [vmem:[%s7052_s25 + $0x24] sm:$0xff]  }
  0x78   : > { %v1112_v29 = vsel %vm7125_vm7, %v1107_v17, %v1111_v3  ;;  %v2527_v31 = vrot.slane %v2525_v22, 4  ;;  %v2530_v32 = vrot.slane %v2528_v23, 5  ;;  %v2536_v36 = vrot.slane %v2534_v28, 5 }
  0x79   : > { %v1122_v34 = vsel %vm7125_vm7, %v1117_v21, %v1121_v14  ;;  %v1691_v35 = vsel %vm7111_vm6, %v1689_v27, %v1690_v20  ;;  %v2544_v37 = vshll.u32 %v6003_v16, 16  ;;  %v2540_v41 = vrot.slane %v2538_v33, 4  ;;  %v6011_v14 = vld [vmem:[%s7052_s25 + $0x34] sm:$0xf] }
  0x7a   : > { %v5870_v38 = vcombine.low %v1112_v29, %v1122_v34  ;;  %v5919_v39 = vcombine.low %v1688_v26, %v1691_v35  ;;  %v2531_v40 = vor.u32 %v2530_v32, %v2527_v31  ;;  %v2549_v46 = vshrl.u32 %v6004_v25, 16  ;;  %v6014_v35 = vld [vmem:[%s7052_s25 + $0x40] sm:$0xf] }
  0x7b   : > { %v2546_v45 = vrot.slane %v2544_v37, 5  ;;  %v2552_v47 = vshll.u32 %v6004_v25, 16  ;;  %v2558_v48 = vshll.u32 %v6005_v19, 16  ;;  %v2541_v50 = vor.u32 %v2540_v41, %v2536_v36  ;;  %v6012_v25 = vld [vmem:[%s7052_s25 + $0x38] sm:$0x1] }
  0x7c   : > { %6644 = vmatmul.mubr.msk.bf16.gmra.mxu1 %vm378_vm1, %v5870_v38  ;;  %6678 = vmatmul.mubr.msk.bf16.gmra.mxu0 %vm378_vm1, %v5919_v39  ;;  %v2532_v49 = vrot.slane %v2531_v40, 4  ;;  %v2562_v51 = vshrl.u32 %v6005_v19, 16  ;;  %v2568_v52 = vshll.u32 %v6006_v18, 16  ;;  %v2551_v53 = vrot.slane %v2549_v46, 4  ;;  %v6015_v39 = vld [vmem:[%s7052_s25 + $0x44] sm:$0x1] }
  0x7d   : > { %6683 = vmatprep.mubr.msk.bf16.mxu1 %vm378_vm1, %v6938_v30  ;;  %v2554_v54 = vrot.slane %v2552_v47, 5  ;;  %v2560_v57 = vrot.slane %v2558_v48, 5  ;;  %v3999_v58 = vsel %vm427_vm0, %v7333_v56, 0  ;;  %v2542_v61 = vrot.slane %v2541_v50, 4  ;;  %v6013_v30 = vld [vmem:[%s7052_s25 + $0x3c] sm:$0xf] }
  0x7e   : > { %v2537_v60 = vsel %vm7125_vm7, %v2532_v49, %v2536_v36  ;;  %v2564_v62 = vrot.slane %v2562_v51, 4  ;;  %v2570_v63 = vrot.slane %v2568_v52, 5  ;;  %v2573_v2 = vshrl.u32 %v6007_v43, 16  ;;  %v6016_v49 = vld [vmem:[%s7052_s25 + $0x48] sm:$0xf]  ;;  %v6942_v52 = vld [vmem:[%s7052_s25 + $0x3c] sm:$0xff]  }
  0x7f   : > { %v2555_v1 = vor.u32 %v2554_v54, %v2551_v53  ;;  %v2576_v3 = vshll.u32 %v6007_v43, 16  ;;  %v2582_v4 = vshll.u32 %v6008_v44, 16  ;;  %v2547_v6 = vsel %vm7125_vm7, %v2542_v61, %v2546_v45  ;;  %v6941_v45 = vld [vmem:[%s7052_s25 + $0x30] sm:$0xff]  }
  0x80   : > { %v2565_v7 = vor.u32 %v2564_v62, %v2560_v57  ;;  %v2586_v56 = vshrl.u32 %v6008_v44, 16  ;;  %v2592_v8 = vshll.u32 %v6009_v59, 16  ;;  %v6050_v9 = vcombine.low %v2537_v60, %v2547_v6 }
  0x81   : > { %v2556_v10 = vrot.slane %v2555_v1, 4  ;;  %v2575_v12 = vrot.slane %v2573_v2, 4  ;;  %v2578_v13 = vrot.slane %v2576_v3, 5  ;;  %v2584_v16 = vrot.slane %v2582_v4, 5 }
  0x82   : > { %v2566_v15 = vrot.slane %v2565_v7, 4  ;;  %v2588_v17 = vrot.slane %v2586_v56, 4  ;;  %v2594_v20 = vrot.slane %v2592_v8, 5  ;;  %6717 = vmatprep.mubr.msk.bf16.mxu0 %vm378_vm1, %v6050_v9  ;;  %v2597_v21 = vshrl.u32 %v6010_v5, 16  ;;  %v6019_v7 = vld [vmem:[%s7052_s25 + $0x54] sm:$0xf] }
  0x83   : > { %v2561_v22 = vsel %vm7125_vm7, %v2556_v10, %v2560_v57  ;;  %v2579_v23 = vor.u32 %v2578_v13, %v2575_v12  ;;  %v2600_v26 = vshll.u32 %v6010_v5, 16  ;;  %v2606_v19 = vshll.u32 %v6011_v14, 16  ;;  %v6017_v57 = vld [vmem:[%s7052_s25 + $0x4c] sm:$0xf] }
  0x84   : > { %6684 = vmatmul.mubr.msk.bf16.vlgmr.msra.gmra.mxu1 %vm378_vm1, %v6939_v0  ;;  %v2571_v27 = vsel %vm7125_vm7, %v2566_v15, %v2570_v63  ;;  %v2589_v28 = vor.u32 %v2588_v17, %v2584_v16  ;;  %v2610_v29 = vshrl.u32 %v6011_v14, 16  ;;  %v2599_v33 = vrot.slane %v2597_v21, 4  ;;  %v6018_v0 = vld [vmem:[%s7052_s25 + $0x50] sm:$0x1]  ;;  %v6943_v13 = vld [vmem:[%s7052_s25 + $0x48] sm:$0xff]  }
  0x85   : > { %v6051_v31 = vcombine.low %v2561_v22, %v2571_v27  ;;  %6750 = vmatpush3.bf16.msra.mxu1 %v7100_v24  ;;  %6687 = vmatprep.mubr.msk.bf16.mxu1 %vm378_vm1, %v6940_v11  ;;  %v2580_v32 = vrot.slane %v2579_v23, 4  ;;  %v2602_v34 = vrot.slane %v2600_v26, 5  ;;  %v2608_v37 = vrot.slane %v2606_v19, 5  ;;  %v6020_v11 = vld [vmem:[%s7052_s25 + $0x58] sm:$0xf] }
  0x86   : > { %v2590_v36 = vrot.slane %v2589_v28, 4  ;;  %v2612_v18 = vrot.slane %v2610_v29, 4  ;;  %v2616_v38 = vshll.u32 %v6012_v25, 16  ;;  %v2621_v41 = vshrl.u32 %v6013_v30, 16  ;;  %v6944_v22 = vld [vmem:[%s7052_s25 + $0x54] sm:$0xff]  }
  0x87   : > { %6718 = vmatmul.mubr.msk.bf16.vlgmr.msra.gmra.mxu0 %vm378_vm1, %v6051_v31  ;;  %v2585_v40 = vsel %vm7125_vm7, %v2580_v32, %v2584_v16  ;;  %v2603_v24 = vor.u32 %v2602_v34, %v2599_v33  ;;  %v2624_v43 = vshll.u32 %v6013_v30, 16  ;;  %v2630_v48 = vshll.u32 %v6014_v35, 16  ;;  %v6021_v23 = vld [vmem:[%s7052_s25 + $0x5c] sm:$0x1]  ;;  %v6022_v29 = vld [vmem:[%s7052_s25 + $0x60] sm:$0xf] }
  0x88   : > { %6784 = vmatpush3.bf16.msra.mxu0 %v3999_v58  ;;  %v2595_v44 = vsel %vm7125_vm7, %v2590_v36, %v2594_v20  ;;  %v2613_v46 = vor.u32 %v2612_v18, %v2608_v37  ;;  %v2618_v47 = vrot.slane %v2616_v38, 5  ;;  %v2623_v53 = vrot.slane %v2621_v41, 4  ;;  %v6023_v34 = vld [vmem:[%s7052_s25 + $0x64] sm:$0xf]  ;;  %v6024_v41 = vld [vmem:[%s7052_s25 + $0x68] sm:$0x1] }
  0x89   : > { %v6052_v50 = vcombine.low %v2585_v40, %v2595_v44  ;;  %v2604_v51 = vrot.slane %v2603_v24, 4  ;;  %v2626_v54 = vrot.slane %v2624_v43, 5  ;;  %v2632_v60 = vrot.slane %v2630_v48, 5  ;;  %v6025_v43 = vld [vmem:[%s7052_s25 + $0x6c] sm:$0xf] }
  0x8a   : > { %v2614_v59 = vrot.slane %v2613_v46, 4  ;;  %v2634_v61 = vshrl.u32 %v6014_v35, 16  ;;  %v2640_v58 = vshll.u32 %v6015_v39, 16  ;;  %v2645_v1 = vshrl.u32 %v6016_v49, 16  ;;  %v6026_v48 = vld [vmem:[%s7052_s25 + $0x70] sm:$0xf] }
  0x8b   : > { %6721 = vmatprep.mubr.msk.bf16.mxu0 %vm378_vm1, %v6052_v50  ;;  %v2609_v62 = vsel %vm7125_vm7, %v2604_v51, %v2608_v37  ;;  %v2627_v63 = vor.u32 %v2626_v54, %v2623_v53  ;;  %v2648_v2 = vshll.u32 %v6016_v49, 16  ;;  %v2654_v6 = vshll.u32 %v6017_v57, 16 }
  0x8c   : > { %6688 = vmatmul.mubr.msk.bf16.gmra.mxu1 %vm378_vm1, %v6941_v45  ;;  %v2619_v3 = vsel %vm7125_vm7, %v2614_v59, %v2618_v47  ;;  %v2636_v4 = vrot.slane %v2634_v61, 4  ;;  %v2642_v5 = vrot.slane %v2640_v58, 5  ;;  %v2647_v9 = vrot.slane %v2645_v1, 4 }
  0x8d   : > { %v6053_v56 = vcombine.low %v2609_v62, %v2619_v3  ;;  %6691 = vmatprep.mubr.msk.bf16.mxu1 %vm378_vm1, %v6942_v52  ;;  %v2628_v8 = vrot.slane %v2627_v63, 4  ;;  %v2650_v10 = vrot.slane %v2648_v2, 5  ;;  %v2656_v14 = vrot.slane %v2654_v6, 5  ;;  %v6945_v63 = vld [vmem:[%s7052_s25 + $0x60] sm:$0xff]   ;;  %v6027_v3 = vld [vmem:[%s7052_s25 + $0x74] sm:$0x1] }
  0x8e   : > { %v2637_v12 = vor.u32 %v2636_v4, %v2632_v60  ;;  %v2658_v15 = vshrl.u32 %v6017_v57, 16  ;;  %v2664_v16 = vshll.u32 %v6018_v0, 16  ;;  %v2669_v25 = vshrl.u32 %v6019_v7, 16  ;;  %v6946_v6 = vld [vmem:[%s7052_s25 + $0x6c] sm:$0xff]  }
  0x8f   : > { %6722 = vmatmul.mubr.msk.bf16.gmra.mxu0 %vm378_vm1, %v6053_v56  ;;  %v2633_v17 = vsel %vm7125_vm7, %v2628_v8, %v2632_v60  ;;  %v2651_v20 = vor.u32 %v2650_v10, %v2647_v9  ;;  %v2672_v21 = vshll.u32 %v6019_v7, 16  ;;  %v2678_v19 = vshll.u32 %v6020_v11, 16  ;;  %v6028_v9 = vld [vmem:[%s7052_s25 + $0x78] sm:$0xf] }
  0x90   : > { %v2638_v26 = vrot.slane %v2637_v12, 4  ;;  %v2660_v27 = vrot.slane %v2658_v15, 4  ;;  %v2666_v28 = vrot.slane %v2664_v16, 5  ;;  %v2671_v31 = vrot.slane %v2669_v25, 4 }
  0x91   : > { %v2652_v30 = vrot.slane %v2651_v20, 4  ;;  %v2674_v32 = vrot.slane %v2672_v21, 5  ;;  %v2682_v33 = vshrl.u32 %v6020_v11, 16  ;;  %v2680_v37 = vrot.slane %v2678_v19, 5 }
  0x92   : > { %v2643_v35 = vsel %vm7125_vm7, %v2638_v26, %v2642_v5  ;;  %v2661_v36 = vor.u32 %v2660_v27, %v2656_v14  ;;  %v2688_v18 = vshll.u32 %v6021_v23, 16  ;;  %v2693_v46 = vshrl.u32 %v6022_v29, 16 }
  0x93   : > { %v6054_v38 = vcombine.low %v2633_v17, %v2643_v35  ;;  %v2657_v39 = vsel %vm7125_vm7, %v2652_v30, %v2656_v14  ;;  %v2675_v40 = vor.u32 %v2674_v32, %v2671_v31  ;;  %v2684_v24 = vrot.slane %v2682_v33, 4  ;;  %v6029_v14 = vld [vmem:[%s7052_s25 + $0x7c] sm:$0xf]  ;;  %v6031_v30 = vld [vmem:[%s7052_s25 + $0x84] sm:$0xf] }
  0x94   : > { %6692 = vmatmul.mubr.msk.bf16.gmra.mxu1 %vm378_vm1, %v6943_v13  ;;  %v2662_v44 = vrot.slane %v2661_v36, 4  ;;  %v2690_v45 = vrot.slane %v2688_v18, 5  ;;  %v2696_v47 = vshll.u32 %v6022_v29, 16  ;;  %v2702_v51 = vshll.u32 %v6023_v34, 16  ;;  %v7482_v31 = vld [vmem:[%s8747_s1 + $0x1c] sm:$0xf] }
  0x95   : > { %6725 = vmatprep.mubr.msk.bf16.mxu0 %vm378_vm1, %v6054_v38  ;;  %6695 = vmatprep.mubr.msk.bf16.mxu1 %vm378_vm1, %v6944_v22  ;;  %v2676_v49 = vrot.slane %v2675_v40, 4  ;;  %v2685_v50 = vor.u32 %v2684_v24, %v2680_v37  ;;  %v2706_v52 = vshrl.u32 %v6023_v34, 16  ;;  %v2695_v54 = vrot.slane %v2693_v46, 4  ;;  %v6030_v22 = vld [vmem:[%s7052_s25 + $0x80] sm:$0x1]  ;;  %v6948_v46 = vld [vmem:[%s7052_s25 + $0x84] sm:$0xff]  }
  0x96   : > { %v2667_v53 = vsel %vm7125_vm7, %v2662_v44, %v2666_v28  ;;  %v2698_v57 = vrot.slane %v2696_v47, 5  ;;  %v2712_v59 = vshll.u32 %v6024_v41, 16  ;;  %v2704_v62 = vrot.slane %v2702_v51, 5  ;;  %v6032_v36 = vld [vmem:[%s7052_s25 + $0x88] sm:$0xf]  ;;  %6895 = vmatprep.subr.msk.bf16.mxu1 %vm427_vm0, %v7482_v31 }
  0x97   : > { %v6055_v60 = vcombine.low %v2657_v39, %v2667_v53  ;;  %v2681_v61 = vsel %vm7125_vm7, %v2676_v49, %v2680_v37  ;;  %v2686_v58 = vrot.slane %v2685_v50, 4  ;;  %v2708_v1 = vrot.slane %v2706_v52, 4  ;;  %v6947_v39 = vld [vmem:[%s7052_s25 + $0x78] sm:$0xff]   ;;  %v6033_v24 = vld [vmem:[%s7052_s25 + $0x8c] sm:$0x1] }
  0x98   : > { %v2699_v0 = vor.u32 %v2698_v57, %v2695_v54  ;;  %v2714_v2 = vrot.slane %v2712_v59, 5  ;;  %v2717_v4 = vshrl.u32 %v6025_v43, 16  ;;  %v2720_v7 = vshll.u32 %v6025_v43, 16  ;;  %v6034_v41 = vld [vmem:[%s7052_s25 + $0x90] sm:$0xf] }
  0x99   : > { %6726 = vmatmul.mubr.msk.bf16.gmra.mxu0 %vm378_vm1, %v6055_v60  ;;  %v2691_v5 = vsel %vm7125_vm7, %v2686_v58, %v2690_v45  ;;  %v2726_v56 = vshll.u32 %v6026_v48, 16  ;;  %v2730_v8 = vshrl.u32 %v6026_v48, 16  ;;  %v2709_v12 = vor.u32 %v2708_v1, %v2704_v62  ;;  %v7501_v52 = vld [vmem:[%s8747_s1 + $0x20] sm:$0xf]  ;;  %v6035_v60 = vld [vmem:[%s7052_s25 + $0x94] sm:$0xf] }
  0x9a   : > { %v6056_v10 = vcombine.low %v2681_v61, %v2691_v5  ;;  %v2700_v11 = vrot.slane %v2699_v0, 4  ;;  %v2719_v13 = vrot.slane %v2717_v4, 4  ;;  %v2722_v15 = vrot.slane %v2720_v7, 5  ;;  %6896 = vmatprep.subr.msk.bf16.mxu0 %vm427_vm0, %v7501_v52  ;;  %v6036_v0 = vld [vmem:[%s7052_s25 + $0x98] sm:$0x1] }
  0x9b   : > { %v2728_v16 = vrot.slane %v2726_v56, 5  ;;  %v2732_v17 = vrot.slane %v2730_v8, 4  ;;  %v2736_v20 = vshll.u32 %v6027_v3, 16  ;;  %v2710_v25 = vrot.slane %v2709_v12, 4  ;;  %v6037_v1 = vld [vmem:[%s7052_s25 + $0x9c] sm:$0xf] }
  0x9c   : > { %6729 = vmatprep.mubr.msk.bf16.mxu0 %vm378_vm1, %v6056_v10  ;;  %6696 = vmatmul.mubr.msk.bf16.gmra.mxu1 %vm378_vm1, %v6945_v63  ;;  %v2705_v23 = vsel %vm7125_vm7, %v2700_v11, %v2704_v62  ;;  %v2741_v21 = vshrl.u32 %v6028_v9, 16  ;;  %v2744_v26 = vshll.u32 %v6028_v9, 16  ;;  %v2723_v27 = vor.u32 %v2722_v15, %v2719_v13 }
  0x9d   : > { %6699 = vmatprep.mubr.msk.bf16.mxu1 %vm378_vm1, %v6946_v6  ;;  %v2733_v28 = vor.u32 %v2732_v17, %v2728_v16  ;;  %v2738_v19 = vrot.slane %v2736_v20, 5  ;;  %v2750_v29 = vshll.u32 %v6029_v14, 16  ;;  %v2715_v32 = vsel %vm7125_vm7, %v2710_v25, %v2714_v2  ;;  %v6950_v20 = vld [vmem:[%s7052_s25 + $0x9c] sm:$0xff]  }
  0x9e   : > { %v2743_v33 = vrot.slane %v2741_v21, 4  ;;  %v2746_v34 = vrot.slane %v2744_v26, 5  ;;  %v2754_v35 = vshrl.u32 %v6029_v14, 16  ;;  %v6057_v37 = vcombine.low %v2705_v23, %v2715_v32 }
  0x9f   : > { %v2724_v18 = vrot.slane %v2723_v27, 4  ;;  %v2734_v38 = vrot.slane %v2733_v28, 4  ;;  %v2752_v40 = vrot.slane %v2750_v29, 5  ;;  %v2760_v45 = vshll.u32 %v6030_v22, 16  ;;  %v6038_v22 = vld [vmem:[%s7052_s25 + $0xa0] sm:$0xf] }
  0xa0   : > { %v2747_v43 = vor.u32 %v2746_v34, %v2743_v33  ;;  %v2756_v44 = vrot.slane %v2754_v35, 4  ;;  %v2765_v47 = vshrl.u32 %v6031_v30, 16  ;;  %v2768_v50 = vshll.u32 %v6031_v30, 16  ;;  %v6039_v29 = vld [vmem:[%s7052_s25 + $0xa4] sm:$0x1] }
  0xa1   : > { %6730 = vmatmul.mubr.msk.bf16.gmra.mxu0 %vm378_vm1, %v6057_v37  ;;  %v2729_v48 = vsel %vm7125_vm7, %v2724_v18, %v2728_v16  ;;  %v2739_v49 = vsel %vm7125_vm7, %v2734_v38, %v2738_v19  ;;  %v2774_v51 = vshll.u32 %v6032_v36, 16  ;;  %v2762_v59 = vrot.slane %v2760_v45, 5  ;;  %v6949_v16 = vld [vmem:[%s7052_s25 + $0x90] sm:$0xff]  }
  0xa2   : > { %v6058_v53 = vcombine.low %v2729_v48, %v2739_v49  ;;  %v2748_v54 = vrot.slane %v2747_v43, 4  ;;  %v2757_v57 = vor.u32 %v2756_v44, %v2752_v40  ;;  %v2767_v61 = vrot.slane %v2765_v47, 4  ;;  %v6042_v48 = vld [vmem:[%s7052_s25 + $0xb0] sm:$0x1] }
  0xa3   : > { %v2770_v58 = vrot.slane %v2768_v50, 5  ;;  %v2776_v62 = vrot.slane %v2774_v51, 5  ;;  %v2778_v63 = vshrl.u32 %v6032_v36, 16  ;;  %v2784_v4 = vshll.u32 %v6033_v24, 16  ;;  %v6040_v36 = vld [vmem:[%s7052_s25 + $0xa8] sm:$0xf] }
  0xa4   : > { %6733 = vmatprep.mubr.msk.bf16.mxu0 %vm378_vm1, %v6058_v53  ;;  %6700 = vmatmul.mubr.msk.bf16.gmra.mxu1 %vm378_vm1, %v6947_v39  ;;  %v2753_v2 = vsel %vm7125_vm7, %v2748_v54, %v2752_v40  ;;  %v2758_v3 = vrot.slane %v2757_v57, 4  ;;  %v2789_v5 = vshrl.u32 %v6034_v41, 16  ;;  %v2792_v56 = vshll.u32 %v6034_v41, 16  ;;  %v6041_v40 = vld [vmem:[%s7052_s25 + $0xac] sm:$0xf] }
  0xa5   : > { %6703 = vmatprep.mubr.msk.bf16.mxu1 %vm378_vm1, %v6948_v46  ;;  %v2771_v6 = vor.u32 %v2770_v58, %v2767_v61  ;;  %v2780_v7 = vrot.slane %v2778_v63, 4  ;;  %v2798_v8 = vshll.u32 %v6035_v60, 16  ;;  %v2786_v10 = vrot.slane %v2784_v4, 5  ;;  %v6951_v53 = vld [vmem:[%s7052_s25 + $0xa8] sm:$0xff]   ;;  %v6044_v63 = vld [vmem:[%s7052_s25 + $0xb8] sm:$0xf] }
  0xa6   : > { %v2763_v9 = vsel %vm7125_vm7, %v2758_v3, %v2762_v59  ;;  %v2791_v11 = vrot.slane %v2789_v5, 4  ;;  %v2802_v12 = vshrl.u32 %v6035_v60, 16  ;;  %v2794_v17 = vrot.slane %v2792_v56, 5  ;;  %v6043_v59 = vld [vmem:[%s7052_s25 + $0xb4] sm:$0xf] }
  0xa7   : > { %v6059_v13 = vcombine.low %v2753_v2, %v2763_v9  ;;  %v2772_v14 = vrot.slane %v2771_v6, 4  ;;  %v2781_v15 = vor.u32 %v2780_v7, %v2776_v62  ;;  %v2800_v23 = vrot.slane %v2798_v8, 5  ;;  %v6952_v6 = vld [vmem:[%s7052_s25 + $0xb4] sm:$0xff]   ;;  %v6045_v7 = vld [vmem:[%s7052_s25 + $0xbc] sm:$0x1] }
  0xa8   : > { %v2804_v25 = vrot.slane %v2802_v12, 4  ;;  %v2808_v21 = vshll.u32 %v6036_v0, 16  ;;  %v2813_v26 = vshrl.u32 %v6037_v1, 16  ;;  %v2795_v19 = vor.u32 %v2794_v17, %v2791_v11 }
  0xa9   : > { %6734 = vmatmul.mubr.msk.bf16.gmra.mxu0 %vm378_vm1, %v6059_v13  ;;  %v2777_v27 = vsel %vm7125_vm7, %v2772_v14, %v2776_v62  ;;  %v2782_v28 = vrot.slane %v2781_v15, 4  ;;  %v2816_v30 = vshll.u32 %v6037_v1, 16  ;;  %v2822_v35 = vshll.u32 %v6038_v22, 16  ;;  %v6046_v13 = vld [vmem:[%s7052_s25 + $0xc0] sm:$0xf] }
  0xaa   : > { %v2805_v32 = vor.u32 %v2804_v25, %v2800_v23  ;;  %v2810_v33 = vrot.slane %v2808_v21, 5  ;;  %v2815_v34 = vrot.slane %v2813_v26, 4  ;;  %v2796_v18 = vrot.slane %v2795_v19, 4  ;;  %v6048_v26 = vld [vmem:[%s7052_s25 + $0xc8] sm:$0x1] }
  0xab   : > { %v2787_v37 = vsel %vm7125_vm7, %v2782_v28, %v2786_v10  ;;  %v2818_v38 = vrot.slane %v2816_v30, 5  ;;  %v2826_v39 = vshrl.u32 %v6038_v22, 16  ;;  %v2824_v43 = vrot.slane %v2822_v35, 5  ;;  %v6082_v30 = vld [vmem:[%s7052_s25 + $0xc] sm:$0xe] }
  0xac   : > { %v6060_v24 = vcombine.low %v2777_v27, %v2787_v37  ;;  %6704 = vmatmul.mubr.msk.bf16.gmra.mxu1 %vm378_vm1, %v6949_v16  ;;  %v2806_v41 = vrot.slane %v2805_v32, 4  ;;  %v2832_v44 = vshll.u32 %v6039_v29, 16  ;;  %v2801_v45 = vsel %vm7125_vm7, %v2796_v18, %v2800_v23  ;;  %v6083_v32 = vld [vmem:[%s7052_s25 + $0x10] sm:$0xf]  ;;  %v6084_v37 = vld [vmem:[%s7052_s25 + $0x14] sm:$0x1] }
  0xad   : > { %6707 = vmatprep.mubr.msk.bf16.mxu1 %vm378_vm1, %v6950_v20  ;;  %v2819_v46 = vor.u32 %v2818_v38, %v2815_v34  ;;  %v2828_v47 = vrot.slane %v2826_v39, 4  ;;  %v2837_v49 = vshrl.u32 %v6040_v36, 16  ;;  %v2840_v54 = vshll.u32 %v6040_v36, 16  ;;  %v6047_v20 = vld [vmem:[%s7052_s25 + $0xc4] sm:$0xf] }
  0xae   : > { %6737 = vmatprep.mubr.msk.bf16.mxu0 %vm378_vm1, %v6060_v24  ;;  %v2811_v50 = vsel %vm7125_vm7, %v2806_v41, %v2810_v33  ;;  %v2834_v51 = vrot.slane %v2832_v44, 5  ;;  %v2846_v57 = vshll.u32 %v6041_v40, 16  ;;  %v2850_v2 = vshrl.u32 %v6041_v40, 16  ;;  %v6085_v24 = vld [vmem:[%s7052_s25 + $0x18] sm:$0xe] }
  0xaf   : > { %v6061_v60 = vcombine.low %v2801_v45, %v2811_v50  ;;  %v2820_v61 = vrot.slane %v2819_v46, 4  ;;  %v2829_v58 = vor.u32 %v2828_v47, %v2824_v43  ;;  %v2839_v62 = vrot.slane %v2837_v49, 4  ;;  %v6086_v47 = vld [vmem:[%s7052_s25 + $0x1c] sm:$0xf] }
  0xb0   : > { %v2842_v0 = vrot.slane %v2840_v54, 5  ;;  %v2848_v1 = vrot.slane %v2846_v57, 5  ;;  %v2856_v3 = vshll.u32 %v6042_v48, 16  ;;  %v2861_v56 = vshrl.u32 %v6043_v59, 16  ;;  %v6087_v48 = vld [vmem:[%s7052_s25 + $0x20] sm:$0x1] }
  0xb1   : > { %6738 = vmatmul.mubr.msk.bf16.gmra.mxu0 %vm378_vm1, %v6061_v60  ;;  %v2825_v4 = vsel %vm7125_vm7, %v2820_v61, %v2824_v43  ;;  %v2830_v5 = vrot.slane %v2829_v58, 4  ;;  %v2864_v8 = vshll.u32 %v6043_v59, 16  ;;  %v2852_v10 = vrot.slane %v2850_v2, 4  ;;  %v6953_v43 = vld [vmem:[%s7052_s25 + $0xc0] sm:$0xff]   ;;  %v6089_v58 = vld [vmem:[%s7052_s25 + $0x28] sm:$0xf] }
  0xb2   : > { %v2843_v9 = vor.u32 %v2842_v0, %v2839_v62  ;;  %v2858_v11 = vrot.slane %v2856_v3, 5  ;;  %v2870_v12 = vshll.u32 %v6044_v63, 16  ;;  %v2863_v15 = vrot.slane %v2861_v56, 4  ;;  %v6088_v54 = vld [vmem:[%s7052_s25 + $0x24] sm:$0xe] }
  0xb3   : > { %v2835_v14 = vsel %vm7125_vm7, %v2830_v5, %v2834_v51  ;;  %v2866_v16 = vrot.slane %v2864_v8, 5  ;;  %v2874_v17 = vshrl.u32 %v6044_v63, 16  ;;  %v2853_v25 = vor.u32 %v2852_v10, %v2848_v1  ;;  %v6090_v2 = vld [vmem:[%s7052_s25 + $0x2c] sm:$0x1]  ;;  %v6091_v3 = vld [vmem:[%s7052_s25 + $0x30] sm:$0xe] }
  0xb4   : > { %v6062_v22 = vcombine.low %v2825_v4, %v2835_v14  ;;  %6708 = vmatmul.mubr.msk.bf16.gmra.mxu1 %vm378_vm1, %v6951_v53  ;;  %v2844_v23 = vrot.slane %v2843_v9, 4  ;;  %v2872_v21 = vrot.slane %v2870_v12, 5  ;;  %v2880_v19 = vshll.u32 %v6045_v7, 16  ;;  %v6093_v12 = vld [vmem:[%s7052_s25 + $0x38] sm:$0x1] }
  0xb5   : > { %6711 = vmatprep.mubr.msk.bf16.mxu1 %vm378_vm1, %v6952_v6  ;;  %v2867_v27 = vor.u32 %v2866_v16, %v2863_v15  ;;  %v2876_v28 = vrot.slane %v2874_v17, 4  ;;  %v2885_v29 = vshrl.u32 %v6046_v13, 16  ;;  %v2854_v34 = vrot.slane %v2853_v25, 4  ;;  %v6954_v16 = vld [vmem:[%s7052_s25 + $0x18] sm:$0xff]  }
  0xb6   : > { %6741 = vmatprep.mubr.msk.bf16.mxu0 %vm378_vm1, %v6062_v22  ;;  %v2849_v33 = vsel %vm7125_vm7, %v2844_v23, %v2848_v1  ;;  %v2888_v35 = vshll.u32 %v6046_v13, 16  ;;  %v2894_v36 = vshll.u32 %v6047_v20, 16  ;;  %v2882_v39 = vrot.slane %v2880_v19, 5  ;;  %v6094_v13 = vld [vmem:[%s7052_s25 + $0x3c] sm:$0xe] }
  0xb7   : > { %v2868_v18 = vrot.slane %v2867_v27, 4  ;;  %v2877_v38 = vor.u32 %v2876_v28, %v2872_v21  ;;  %v2887_v40 = vrot.slane %v2885_v29, 4  ;;  %v2859_v41 = vsel %vm7125_vm7, %v2854_v34, %v2858_v11  ;;  %v6092_v11 = vld [vmem:[%s7052_s25 + $0x34] sm:$0xf]  ;;  %v6095_v22 = vld [vmem:[%s7052_s25 + $0x40] sm:$0xf] }
  0xb8   : > { %v2890_v44 = vrot.slane %v2888_v35, 5  ;;  %v2896_v45 = vrot.slane %v2894_v36, 5  ;;  %v2898_v46 = vshrl.u32 %v6047_v20, 16  ;;  %v6063_v49 = vcombine.low %v2849_v33, %v2859_v41  ;;  %v6096_v23 = vld [vmem:[%s7052_s25 + $0x44] sm:$0x1] }
  0xb9   : > { %v2873_v50 = vsel %vm7125_vm7, %v2868_v18, %v2872_v21  ;;  %v2878_v51 = vrot.slane %v2877_v38, 4  ;;  %v2904_v53 = vshll.u32 %v6048_v26, 16  ;;  %v6130_v60 = vrot.slane %v6082_v30, 9  ;;  %v6098_v28 = vld [vmem:[%s7052_s25 + $0x4c] sm:$0xf] }
  0xba   : > { %v2891_v57 = vor.u32 %v2890_v44, %v2887_v40  ;;  %v2900_v59 = vrot.slane %v2898_v46, 4  ;;  %v3364_v61 = vrot.slane %v6083_v32, 5  ;;  %6742 = vmatmul.mubr.msk.bf16.gmra.mxu0 %vm378_vm1, %v6063_v49  ;;  %v3367_v0 = vrot.slane %v6084_v37, 5  ;;  %v6099_v32 = vld [vmem:[%s7052_s25 + $0x50] sm:$0x1] }
  0xbb   : > { %v2883_v62 = vsel %vm7125_vm7, %v2878_v51, %v2882_v39  ;;  %v2906_v63 = vrot.slane %v2904_v53, 5  ;;  %v6131_v1 = vrot.slane %v6085_v24, 9  ;;  %v3371_v8 = vrot.slane %v6086_v47, 5  ;;  %v6100_v37 = vld [vmem:[%s7052_s25 + $0x54] sm:$0xe] }
  0xbc   : > { %v6064_v4 = vcombine.low %v2873_v50, %v2883_v62  ;;  %6712 = vmatmul.mubr.msk.bf16.gmra.mxu1 %vm378_vm1, %v6953_v43  ;;  %v2892_v5 = vrot.slane %v2891_v57, 4  ;;  %v2901_v6 = vor.u32 %v2900_v59, %v2896_v45  ;;  %v3365_v7 = vsel %vm7111_vm6, %v6130_v60, %v3364_v61  ;;  %v6101_v18 = vld [vmem:[%s7052_s25 + $0x58] sm:$0xf]  ;;  %v6102_v41 = vld [vmem:[%s7052_s25 + $0x5c] sm:$0x1]  ;;  %v6955_v59 = vld [vmem:[%s7052_s25 + $0x24] sm:$0xff]  }
  0xbd   : > { %v3366_v56 = vrot.slane %v3364_v61, 4  ;;  %v3374_v9 = vrot.slane %v6087_v48, 5  ;;  %v4789_v10 = vsel %vm427_vm0, %v7482_v31, 0  ;;  %v7584_v17 = vsel %vm427_vm0, %v7501_v52, 0  ;;  %v6097_v31 = vld [vmem:[%s7052_s25 + $0x48] sm:$0xe] }
  0xbe   : > { %6745 = vmatprep.mubr.msk.bf16.mxu0 %vm378_vm1, %v6064_v4  ;;  %v2897_v14 = vsel %vm7125_vm7, %v2892_v5, %v2896_v45  ;;  %v2902_v15 = vrot.slane %v2901_v6, 4  ;;  %v6132_v20 = vrot.slane %v6088_v54, 9  ;;  %v3372_v21 = vsel %vm7111_vm6, %v6131_v1, %v3371_v8  ;;  %v6103_v43 = vld [vmem:[%s7052_s25 + $0x60] sm:$0xe]  ;;  %v6104_v53 = vld [vmem:[%s7052_s25 + $0x64] sm:$0xf] }
  0xbf   : > { %v3368_v25 = vsel %vm7111_vm6, %v3366_v56, %v3367_v0  ;;  %v3373_v26 = vrot.slane %v3371_v8, 4  ;;  %v3378_v27 = vrot.slane %v6089_v58, 5  ;;  %v3381_v29 = vrot.slane %v6090_v2, 5  ;;  %v6105_v54 = vld [vmem:[%s7052_s25 + $0x68] sm:$0x1] }
  0xc0   : > { %v2907_v19 = vsel %vm7125_vm7, %v2902_v15, %v2906_v63  ;;  %v6147_v52 = vcombine.low %v3365_v7, %v3368_v25  ;;  %v6133_v30 = vrot.slane %v6091_v3, 9  ;;  %v3385_v39 = vrot.slane %v6092_v11, 5  ;;  %v6106_v57 = vld [vmem:[%s7052_s25 + $0x6c] sm:$0xe]  ;;  %v6107_v63 = vld [vmem:[%s7052_s25 + $0x70] sm:$0xf] }
  0xc1   : > { %v6065_v33 = vcombine.low %v2897_v14, %v2907_v19  ;;  %v3375_v34 = vsel %vm7111_vm6, %v3373_v26, %v3374_v9  ;;  %v3379_v35 = vsel %vm7111_vm6, %v6132_v20, %v3378_v27  ;;  %v3380_v36 = vrot.slane %v3378_v27, 4  ;;  %v6108_v0 = vld [vmem:[%s7052_s25 + $0x74] sm:$0x1]  ;;  %v6109_v1 = vld [vmem:[%s7052_s25 + $0x78] sm:$0xe] }
  0xc2   : > { %6751 = vmatprep.mubr.msk.bf16.mxu1 %vm378_vm1, %v6147_v52  ;;  %v6148_v38 = vcombine.low %v3372_v21, %v3375_v34  ;;  %v3388_v40 = vrot.slane %v6093_v12, 5  ;;  %v6134_v24 = vrot.slane %v6094_v13, 9  ;;  %v3392_v45 = vrot.slane %v6095_v22, 5  ;;  %v6110_v6 = vld [vmem:[%s7052_s25 + $0x7c] sm:$0xf]  ;;  %v6956_v12 = vld [vmem:[%s7052_s25 + $0x30] sm:$0xff]  }
  0xc3   : > { %6746 = vmatmul.mubr.msk.bf16.gmra.mxu0 %vm378_vm1, %v6065_v33  ;;  %v3382_v44 = vsel %vm7111_vm6, %v3380_v36, %v3381_v29  ;;  %v3395_v46 = vrot.slane %v6096_v23, 5  ;;  %v6135_v47 = vrot.slane %v6097_v31, 9  ;;  %v7613_v49 = vsel %vm7111_vm6, %v6133_v30, %v3385_v39  ;;  %v6112_v11 = vld [vmem:[%s7052_s25 + $0x84] sm:$0xe]  ;;  %v6113_v20 = vld [vmem:[%s7052_s25 + $0x88] sm:$0xf] }
  0xc4   : > { %6785 = vmatprep.mubr.msk.bf16.mxu0 %vm378_vm1, %v6954_v16  ;;  %6752 = vmatmul.mubr.msk.bf16.vlgmr.msra.gmra.mxu1 %vm378_vm1, %v6148_v38  ;;  %v6149_v48 = vcombine.low %v3379_v35, %v3382_v44  ;;  %v3387_v50 = vrot.slane %v3385_v39, 4  ;;  %v3399_v51 = vrot.slane %v6098_v28, 5  ;;  %v3393_v60 = vsel %vm7111_vm6, %v6134_v24, %v3392_v45  ;;  %v6114_v21 = vld [vmem:[%s7052_s25 + $0x8c] sm:$0x1]  ;;  %v6115_v52 = vld [vmem:[%s7052_s25 + $0x90] sm:$0xe] }
  0xc5   : > { %6818 = vmatpush3.bf16.msra.mxu1 %v4789_v10  ;;  %v3394_v61 = vrot.slane %v3392_v45, 4  ;;  %v3402_v58 = vrot.slane %v6099_v32, 5  ;;  %v6136_v62 = vrot.slane %v6100_v37, 9  ;;  %v3406_v5 = vrot.slane %v6101_v18, 5  ;;  %v6111_v10 = vld [vmem:[%s7052_s25 + $0x80] sm:$0x1] }
  0xc6   : > { %6755 = vmatprep.mubr.msk.bf16.mxu1 %vm378_vm1, %v6149_v48  ;;  %v3389_v2 = vsel %vm7111_vm6, %v3387_v50, %v3388_v40  ;;  %v7629_v3 = vsel %vm7111_vm6, %v6135_v47, %v3399_v51  ;;  %v3401_v4 = vrot.slane %v3399_v51, 4  ;;  %v3409_v8 = vrot.slane %v6102_v41, 5  ;;  %v6116_v35 = vld [vmem:[%s7052_s25 + $0x94] sm:$0xf]  ;;  %v7666_v36 = vld [vmem:[%s7052_s25 + $0x98] sm:$0x1] }
  0xc7   : > { %v6150_v7 = vcombine.low %v7613_v49, %v3389_v2  ;;  %v3396_v56 = vsel %vm7111_vm6, %v3394_v61, %v3395_v46  ;;  %v6137_v9 = vrot.slane %v6103_v43, 9  ;;  %v7644_v15 = vsel %vm7111_vm6, %v6136_v62, %v3406_v5  ;;  %v6118_v37 = vld [vmem:[%s7052_s25 + $0x9c] sm:$0xe]  ;;  %v6119_v41 = vld [vmem:[%s7052_s25 + $0xa0] sm:$0xf] }
  0xc8   : > { %v6151_v13 = vcombine.low %v3393_v60, %v3396_v56  ;;  %v7640_v14 = vsel %vm7111_vm6, %v3401_v4, %v3402_v58  ;;  %v3408_v16 = vrot.slane %v3406_v5, 4  ;;  %v3413_v23 = vrot.slane %v6104_v53, 5  ;;  %v6120_v43 = vld [vmem:[%s7052_s25 + $0xa4] sm:$0x1]  ;;  %v6121_v44 = vld [vmem:[%s7052_s25 + $0xa8] sm:$0xe] }
  0xc9   : > { %v6152_v22 = vcombine.low %v7629_v3, %v7640_v14  ;;  %v3416_v31 = vrot.slane %v6105_v54, 5  ;;  %v6138_v25 = vrot.slane %v6106_v57, 9  ;;  %v3420_v27 = vrot.slane %v6107_v63, 5  ;;  %v6122_v49 = vld [vmem:[%s7052_s25 + $0xac] sm:$0xf]  ;;  %v6957_v61 = vld [vmem:[%s7052_s25 + $0x3c] sm:$0xff]  }
  0xca   : > { %v7652_v26 = vsel %vm7111_vm6, %v3408_v16, %v3409_v8  ;;  %v3423_v28 = vrot.slane %v6108_v0, 5  ;;  %v6139_v19 = vrot.slane %v6109_v1, 9  ;;  %v7660_v30 = vsel %vm7111_vm6, %v6137_v9, %v3413_v23  ;;  %v6124_v60 = vld [vmem:[%s7052_s25 + $0xb4] sm:$0xe]  ;;  %v6125_v2 = vld [vmem:[%s7052_s25 + $0xb8] sm:$0xf] }
  0xcb   : > { %6786 = vmatmul.mubr.msk.bf16.vlgmr.msra.gmra.mxu0 %vm378_vm1, %v6955_v59  ;;  %v6153_v29 = vcombine.low %v7644_v15, %v7652_v26  ;;  %v3415_v32 = vrot.slane %v3413_v23, 4  ;;  %v3427_v34 = vrot.slane %v6110_v6, 5  ;;  %v7673_v18 = vsel %vm7111_vm6, %v6138_v25, %v3420_v27  ;;  %v6123_v59 = vld [vmem:[%s7052_s25 + $0xb0] sm:$0x1]  ;;  %v6958_v4 = vld [vmem:[%s7052_s25 + $0x48] sm:$0xff]   ;;  %v6959_v26 = vld [vmem:[%s7052_s25 + $0x54] sm:$0xff]  }
  0xcc   : > { %6852 = vmatpush3.bf16.msra.mxu0 %v7584_v17  ;;  %6789 = vmatprep.mubr.msk.bf16.mxu0 %vm378_vm1, %v6956_v12  ;;  %v3422_v38 = vrot.slane %v3420_v27, 4  ;;  %v3430_v40 = vrot.slane %v6111_v10, 5  ;;  %v6140_v24 = vrot.slane %v6112_v11, 9  ;;  %v3434_v48 = vrot.slane %v6113_v20, 5  ;;  %v6126_v9 = vld [vmem:[%s7052_s25 + $0xbc] sm:$0x1] }
  0xcd   : > { %6756 = vmatmul.mubr.msk.bf16.gmra.mxu1 %vm378_vm1, %v6150_v7  ;;  %v7683_v17 = vsel %vm7111_vm6, %v3415_v32, %v3416_v31  ;;  %v7687_v45 = vsel %vm7111_vm6, %v6139_v19, %v3427_v34  ;;  %v3429_v46 = vrot.slane %v3427_v34, 4  ;;  %v3437_v54 = vrot.slane %v6114_v21, 5  ;;  %v6127_v20 = vld [vmem:[%s7052_s25 + $0xc0] sm:$0xe]  ;;  %v6325_v15 = vld [vmem:[%s7052_s25 + $0x18] sm:$0xe] }
  0xce   : > { %6759 = vmatprep.mubr.msk.bf16.mxu1 %vm378_vm1, %v6151_v13  ;;  %v6154_v50 = vcombine.low %v7660_v30, %v7683_v17  ;;  %v7697_v51 = vsel %vm7111_vm6, %v3422_v38, %v3423_v28  ;;  %v6141_v57 = vrot.slane %v6115_v52, 9  ;;  %v7714_v0 = vsel %vm7111_vm6, %v6140_v24, %v3434_v48  ;;  %v6128_v28 = vld [vmem:[%s7052_s25 + $0xc4] sm:$0xf]  ;;  %v6249_v14 = vld [vmem:[%s7052_s25 + $0x2c] sm:$0x1] }
  0xcf   : > { %v6155_v58 = vcombine.low %v7673_v18, %v7697_v51  ;;  %v7708_v62 = vsel %vm7111_vm6, %v3429_v46, %v3430_v40  ;;  %v3436_v1 = vrot.slane %v3434_v48, 4  ;;  %v3441_v7 = vrot.slane %v6116_v35, 5  ;;  %v6250_v51 = vld [vmem:[%s7052_s25 + $0x30] sm:$0xf] }
  0xd0   : > { %v3444_v56 = vrot.slane %v7666_v36, 5  ;;  %v6142_v8 = vrot.slane %v6118_v37, 9  ;;  %v3448_v12 = vrot.slane %v6119_v41, 5  ;;  %v3451_v13 = vrot.slane %v6120_v43, 5  ;;  %v6129_v41 = vld [vmem:[%s7052_s25 + $0xc8] sm:$0x1] }
  0xd1   : > { %v7728_v11 = vsel %vm7111_vm6, %v3436_v1, %v3437_v54  ;;  %v6143_v16 = vrot.slane %v6121_v44, 9  ;;  %v7737_v25 = vsel %vm7111_vm6, %v6141_v57, %v3441_v7  ;;  %v3443_v21 = vrot.slane %v3441_v7, 4  ;;  %v6244_v43 = vld [vmem:[%s7052_s25 + $0x18] sm:$0xf]  ;;  %v6245_v57 = vld [vmem:[%s7052_s25 + $0x1c] sm:$0xf] }
  0xd2   : > { %v3455_v27 = vrot.slane %v6122_v49, 5  ;;  %v7745_v52 = vsel %vm7111_vm6, %v6142_v8, %v3448_v12  ;;  %v3450_v32 = vrot.slane %v3448_v12, 4  ;;  %v3458_v34 = vrot.slane %v6123_v59, 5  ;;  %v6960_v8 = vld [vmem:[%s7052_s25 + $0x60] sm:$0xff]  }
  0xd3   : > { %6790 = vmatmul.mubr.msk.bf16.gmra.mxu0 %vm378_vm1, %v6957_v61  ;;  %v6144_v35 = vrot.slane %v6124_v60, 9  ;;  %v7752_v37 = vsel %vm7111_vm6, %v3443_v21, %v3444_v56  ;;  %v3462_v24 = vrot.slane %v6125_v2, 5  ;;  %v3465_v49 = vrot.slane %v6126_v9, 5  ;;  %v6246_v61 = vld [vmem:[%s7052_s25 + $0x20] sm:$0x1] }
  0xd4   : > { %v7662_v33 = vpop.f32.mrf.mxu0  ;;  %6793 = vmatprep.mubr.msk.bf16.mxu0 %vm378_vm1, %v6958_v4  ;;  %v7756_v38 = vsel %vm7111_vm6, %v6143_v16, %v3455_v27  ;;  %v3457_v40 = vrot.slane %v3455_v27, 4  ;;  %v7770_v48 = vsel %vm7111_vm6, %v3450_v32, %v3451_v13  ;;  %v6145_v54 = vrot.slane %v6127_v20, 9  ;;  %v6326_v56 = vld [vmem:[%s7052_s25 + $0x1c] sm:$0xf]  ;;  %v6327_v21 = vld [vmem:[%s7052_s25 + $0x20] sm:$0x1] }
  0xd5   : > { %v7675_v39 = vpop.f32.mrf.mxu1  ;;  %6760 = vmatmul.mubr.msk.bf16.gmra.mxu1 %vm378_vm1, %v6152_v22  ;;  %v7787_v59 = vsel %vm7111_vm6, %v6144_v35, %v3462_v24  ;;  %v3464_v60 = vrot.slane %v3462_v24, 4  ;;  %v3469_v2 = vrot.slane %v6128_v28, 5  ;;  %v3472_v4 = vrot.slane %v6129_v41, 5 }
  0xd6   : > { %v7689_v47 = vpop.f32.mrf.mxu0  ;;  %6763 = vmatprep.mubr.msk.bf16.mxu1 %vm378_vm1, %v6153_v29  ;;  %v7783_v22 = vsel %vm7111_vm6, %v3457_v40, %v3458_v34  ;;  %v4307_v7 = vshrl.u32 %v6244_v43, 16  ;;  %v4310_v13 = vshll.u32 %v6244_v43, 16  ;;  %v4316_v16 = vshll.u32 %v6245_v57, 16 }
  0xd7   : > { %v7699_v53 = vpop.f32.mrf.mxu1  ;;  %v7802_v12 = vsel %vm7111_vm6, %v3464_v60, %v3465_v49  ;;  %v4320_v20 = vshrl.u32 %v6245_v57, 16  ;;  %v7811_v32 = vsel %vm7111_vm6, %v6145_v54, %v3469_v2  ;;  %v3471_v34 = vrot.slane %v3469_v2, 4  ;;  %v6247_v57 = vld [vmem:[%s7052_s25 + $0x24] sm:$0xf] }
  0xd8   : > { %v7710_v63 = vpop.f32.mrf.mxu0  ;;  %v4309_v35 = vrot.slane %v4307_v7, 4  ;;  %v4312_v24 = vrot.slane %v4310_v13, 5  ;;  %v4318_v41 = vrot.slane %v4316_v16, 5  ;;  %v4326_v49 = vshll.u32 %v6246_v61, 16  ;;  %v6248_v7 = vld [vmem:[%s7052_s25 + $0x28] sm:$0xf] }
  0xd9   : > { %v7720_v6 = vpop.f32.mrf.mxu1  ;;  %v4322_v43 = vrot.slane %v4320_v20, 4  ;;  %v7821_v28 = vsel %vm7111_vm6, %v3471_v34, %v3472_v4  ;;  %v6373_v54 = vrot.slane %v6325_v15, 9  ;;  %v5146_v29 = vrot.slane %v6326_v56, 5  ;;  %v6328_v34 = vld [vmem:[%s7052_s25 + $0x24] sm:$0xe] }
  0xda   : > { %v7724_v10 = vpop.f32.mrf.mxu0  ;;  %v5149_v2 = vrot.slane %v6327_v21, 5  ;;  %v4328_v20 = vrot.slane %v4326_v49, 5  ;;  %v4334_v21 = vshll.u32 %v6247_v57, 16  ;;  %v6330_v49 = vld [vmem:[%s7052_s25 + $0x2c] sm:$0x1]  ;;  %v4350_v18 = vshll.u32 %v6249_v14, 16 }
  0xdb   : > { %v7731_v23 = vpop.f32.mrf.mxu1  ;;  %6794 = vmatmul.mubr.msk.bf16.gmra.mxu0 %vm378_vm1, %v6959_v26  ;;  %v4313_v26 = vor.u32 %v4312_v24, %v4309_v35  ;;  %v4323_v16 = vor.u32 %v4322_v43, %v4318_v41  ;;  %v7838_v4 = vsel %vm7111_vm6, %v6373_v54, %v5146_v29  ;;  %v5148_v56 = vrot.slane %v5146_v29, 4  ;;  %v6329_v35 = vld [vmem:[%s7052_s25 + $0x28] sm:$0xf]  ;;  %v6961_v29 = vld [vmem:[%s7052_s25 + $0x6c] sm:$0xff]  }
  0xdc   : > { %8754 = vst [vmem:[#allocation3_spill] sm:$0xff] %v7731_v23  ;;  %v7741_v19 = vpop.f32.mrf.mxu0  ;;  %6797 = vmatprep.mubr.msk.bf16.mxu0 %vm378_vm1, %v6960_v8  ;;  %v4331_v8 = vshrl.u32 %v6247_v57, 16  ;;  %v4340_v24 = vshll.u32 %v6248_v7, 16  ;;  %v4344_v43 = vshrl.u32 %v6248_v7, 16  ;;  %v4336_v44 = vrot.slane %v4334_v21, 5 }
  0xdd   : > { %v7748_v36 = vpop.f32.mrf.mxu1  ;;  %6764 = vmatmul.mubr.msk.bf16.gmra.mxu1 %vm378_vm1, %v6154_v50  ;;  %v4314_v17 = vrot.slane %v4313_v26, 4  ;;  %v4324_v50 = vrot.slane %v4323_v16, 4  ;;  %v7854_v57 = vsel %vm7111_vm6, %v5148_v56, %v5149_v2  ;;  %v6251_v2 = vld [vmem:[%s7052_s25 + $0x34] sm:$0xf] }
  0xde   : > { %8755 = vst [vmem:[#allocation4_spill] sm:$0xff] %v7748_v36  ;;  %v7766_v46 = vpop.f32.mrf.mxu0  ;;  %6767 = vmatprep.mubr.msk.bf16.mxu1 %vm378_vm1, %v6155_v58  ;;  %v4333_v61 = vrot.slane %v4331_v8, 4  ;;  %v6962_v58 = vld [vmem:[%s7052_s25 + $0x78] sm:$0xff]   ;;  %v4342_v5 = vrot.slane %v4340_v24, 5  ;;  %v4346_v21 = vrot.slane %v4344_v43, 4 }
  0xdf   : > { %v7777_v3 = vpop.f32.mrf.mxu1  ;;  %v4319_v26 = vsel %vm7125_vm7, %v4314_v17, %v4318_v41  ;;  %v4329_v7 = vsel %vm7125_vm7, %v4324_v50, %v4328_v20  ;;  %v5153_v41 = vrot.slane %v6329_v35, 5  ;;  %v5156_v17 = vrot.slane %v6330_v49, 5  ;;  %v6252_v20 = vld [vmem:[%s7052_s25 + $0x38] sm:$0x1] }
  0xe0   : > { %8756 = vst [vmem:[#allocation5_spill] sm:$0xff] %v7777_v3  ;;  %v7792_v1 = vpop.f32.mrf.mxu0  ;;  %v7869_v8 = vcombine.low %v4319_v26, %v4329_v7  ;;  %v4337_v14 = vor.u32 %v4336_v44, %v4333_v61  ;;  %v4355_v50 = vshrl.u32 %v6250_v51, 16  ;;  %v4358_v26 = vshll.u32 %v6250_v51, 16  ;;  %v6331_v44 = vld [vmem:[%s7052_s25 + $0x30] sm:$0xe] }
  0xe1   : > { %v7798_v9 = vpop.f32.mrf.mxu1  ;;  %v4364_v7 = vshll.u32 %v6251_v2, 16  ;;  %v5155_v35 = vrot.slane %v5153_v41, 4  ;;  %v4368_v49 = vshrl.u32 %v6251_v2, 16  ;;  %v8765_v2 = vcombine.low %v7714_v0, %v7728_v11 }
  0xe2   : > { %8757 = vst [vmem:[#allocation6_spill] sm:$0xff] %v7798_v9  ;;  %v7805_v27 = vpop.f32.mrf.mxu0  ;;  %v4338_v16 = vrot.slane %v4337_v14, 4  ;;  %v4357_v43 = vrot.slane %v4355_v50, 4 }
  0xe3   : > { %v7813_v40 = vpop.f32.mrf.mxu1  ;;  %6798 = vmatmul.mubr.msk.bf16.gmra.mxu0 %vm378_vm1, %v6961_v29  ;;  %v6332_v29 = vld [vmem:[%s7052_s25 + $0x34] sm:$0xf] }
  0xe4   : > { %8758 = vst [vmem:[#allocation7_spill] sm:$0xff] %v7813_v40  ;;  %v7817_v60 = vpop.f32.mrf.mxu0  ;;  %v4347_v40 = vor.u32 %v4346_v21, %v4342_v5  ;;  %6801 = vmatprep.mubr.msk.bf16.mxu0 %vm378_vm1, %v6962_v58  ;;  %v4343_v58 = vsel %vm7125_vm7, %v4338_v16, %v4342_v5  ;;  %v4360_v21 = vrot.slane %v4358_v26, 5  ;;  %v6375_v5 = vrot.slane %v6331_v44, 9  ;;  %v6963_v16 = vld [vmem:[%s7052_s25 + $0x84] sm:$0xff]  }
  0xe5   : > { %v7825_v13 = vpop.f32.mrf.mxu1 }
  0xe6   : > { %8759 = vst [vmem:[#allocation8_spill] sm:$0xff] %v7825_v13  ;;  %v7834_v15 = vpop.f32.mrf.mxu0  ;;  %v6374_v13 = vrot.slane %v6328_v34, 9  ;;  %v4348_v14 = vrot.slane %v4347_v40, 4  ;;  %v6253_v40 = vld [vmem:[%s7052_s25 + $0x3c] sm:$0xf]  ;;  %v4361_v11 = vor.u32 %v4360_v21, %v4357_v43 }
  0xe7   : > { %v7846_v30 = vpop.f32.mrf.mxu1 }
  0xe8   : > { %8760 = vst [vmem:[#allocation9_spill] sm:$0xff] %v7846_v30  ;;  %v7850_v54 = vpop.f32.mrf.mxu0  ;;  %v4352_v30 = vrot.slane %v4350_v18, 5  ;;  %v7883_v34 = vsel %vm7111_vm6, %v6374_v13, %v5153_v41  ;;  %v8764_v18 = vcombine.low %v7687_v45, %v7708_v62  ;;  %v4366_v13 = vrot.slane %v4364_v7, 5  ;;  %v6333_v41 = vld [vmem:[%s7052_s25 + $0x38] sm:$0x1] }
  0xe9   : > { %v7858_v31 = vpop.f32.mrf.mxu1  ;;  %v7903_v45 = vsel %vm7111_vm6, %v5155_v35, %v5156_v17  ;;  %v4370_v62 = vrot.slane %v4368_v49, 4  ;;  %v5163_v49 = vrot.slane %v6333_v41, 5  ;;  %v4362_v3 = vrot.slane %v4361_v11, 4  ;;  %v6334_v41 = vld [vmem:[%s7052_s25 + $0x3c] sm:$0xe] }
  0xea   : > { %8761 = vst [vmem:[#allocation10_spill] sm:$0xff] %v7858_v31  ;;  %v7867_v56 = vpop.f32.mrf.mxu0  ;;  %6768 = vmatmul.mubr.msk.bf16.gmra.mxu1 %vm378_vm1, %v8764_v18  ;;  %v4374_v18 = vshll.u32 %v6252_v20, 16  ;;  %v4353_v7 = vsel %vm7125_vm7, %v4348_v14, %v4352_v30 }
  0xeb   : > { %v7871_v31 = vpop.f32.mrf.mxu1  ;;  %6771 = vmatprep.mubr.msk.bf16.mxu1 %vm378_vm1, %v8765_v2  ;;  %v5160_v2 = vrot.slane %v6332_v29, 5  ;;  %v7917_v20 = vcombine.low %v4343_v58, %v4353_v7  ;;  %v4371_v44 = vor.u32 %v4370_v62, %v4366_v13  ;;  %v4379_v29 = vshrl.u32 %v6253_v40, 16  ;;  %6802 = vmatmul.mubr.msk.bf16.gmra.mxu0 %vm378_vm1, %v6963_v16 }
  0xec   : > { %8762 = vst [vmem:[#allocation11_spill] sm:$0xff] %v7871_v31  ;;  %v7875_v24 = vpop.f32.mrf.mxu0  ;;  %v4376_v35 = vrot.slane %v4374_v18, 5  ;;  %v6255_v31 = vld [vmem:[%s7052_s25 + $0x44] sm:$0x1]  ;;  %v4382_v58 = vshll.u32 %v6253_v40, 16  ;;  %v4367_v11 = vsel %vm7125_vm7, %v4362_v3, %v4366_v13  ;;  %v6376_v16 = vrot.slane %v6334_v41, 9 }
  0xed   : > { %v7879_v61 = vpop.f32.mrf.mxu1  ;;  %v7924_v30 = vsel %vm7111_vm6, %v6375_v5, %v5160_v2  ;;  %v5162_v43 = vrot.slane %v5160_v2, 4  ;;  %v4372_v21 = vrot.slane %v4371_v44, 4  ;;  %v4381_v2 = vrot.slane %v4379_v29, 4  ;;  %v6256_v13 = vld [vmem:[%s7052_s25 + $0x48] sm:$0xf] }
  0xee   : > { %8763 = vst [vmem:[#allocation12_spill] sm:$0xff] %v7879_v61  ;;  %v7890_v51 = vpop.f32.mrf.mxu0  ;;  %v6964_v61 = vld [vmem:[%s7052_s25 + $0x90] sm:$0xff]   ;;  %v4398_v0 = vshll.u32 %v6255_v31, 16  ;;  %v4384_v44 = vrot.slane %v4382_v58, 5 }
  0xef   : > { %v7899_v50 = vpop.f32.mrf.mxu1  ;;  %v7934_v5 = vsel %vm7111_vm6, %v5162_v43, %v5163_v49  ;;  %6805 = vmatprep.mubr.msk.bf16.mxu0 %vm378_vm1, %v6964_v61  ;;  %v8769_v49 = vcombine.low %v7737_v25, %v7752_v37 }
  0xf0   : > { %8766 = vst [vmem:[#allocation13_spill] sm:$0xff] %v7899_v50  ;;  %v7907_v26 = vpop.f32.mrf.mxu0  ;;  %v6254_v50 = vld [vmem:[%s7052_s25 + $0x40] sm:$0xf]  ;;  %v4400_v29 = vrot.slane %v4398_v0, 5  ;;  %v4403_v0 = vshrl.u32 %v6256_v13, 16 }
  0xf1   : > { %v7915_v17 = vpop.f32.mrf.mxu1  ;;  %v4388_v7 = vshll.u32 %v6254_v50, 16  ;;  %v4392_v62 = vshrl.u32 %v6254_v50, 16  ;;  %v4377_v50 = vsel %vm7125_vm7, %v4372_v21, %v4376_v35  ;;  %v8770_v21 = vcombine.low %v7745_v52, %v7770_v48 }
  0xf2   : > { %8767 = vst [vmem:[#allocation14_spill] sm:$0xff] %v7915_v17  ;;  %v7920_v9 = vpop.f32.mrf.mxu0  ;;  %v6335_v17 = vld [vmem:[%s7052_s25 + $0x40] sm:$0xf]  ;;  %6772 = vmatmul.mubr.msk.bf16.gmra.mxu1 %vm378_vm1, %v8769_v49  ;;  %v7949_v43 = vcombine.low %v4367_v11, %v4377_v50  ;;  %v6257_v50 = vld [vmem:[%s7052_s25 + $0x4c] sm:$0xf] }
  0xf3   : > { %v7926_v14 = vpop.f32.mrf.mxu1  ;;  %v4390_v3 = vrot.slane %v4388_v7, 5  ;;  %v4394_v35 = vrot.slane %v4392_v62, 4  ;;  %6775 = vmatprep.mubr.msk.bf16.mxu1 %vm378_vm1, %v8770_v21  ;;  %v4385_v7 = vor.u32 %v4384_v44, %v4381_v2  ;;  %v5167_v25 = vrot.slane %v6335_v17, 5  ;;  %v6965_v49 = vld [vmem:[%s7052_s25 + $0x9c] sm:$0xff]   ;;  %v6966_v62 = vld [vmem:[%s7052_s25 + $0xa8] sm:$0xff]  }
  0xf4   : > { %8768 = vst [vmem:[#allocation15_spill] sm:$0xff] %v7926_v14  ;;  %v6651_v18 = vpop.f32.mrf.mxu0  ;;  %v6336_v14 = vld [vmem:[%s7052_s25 + $0x44] sm:$0x1]  ;;  %v4405_v44 = vrot.slane %v4403_v0, 4  ;;  %6806 = vmatmul.mubr.msk.bf16.gmra.mxu0 %vm378_vm1, %v6965_v49 }
  0xf5   : > { %v6617_v40 = vpop.f32.mrf.mxu1  ;;  %v5170_v37 = vrot.slane %v6336_v14, 5  ;;  %v4386_v52 = vrot.slane %v4385_v7, 4  ;;  %v7963_v48 = vsel %vm7111_vm6, %v6376_v16, %v5167_v25  ;;  %v5169_v17 = vrot.slane %v5167_v25, 4  ;;  %v6258_v16 = vld [vmem:[%s7052_s25 + $0x50] sm:$0x1]  ;;  %6809 = vmatprep.mubr.msk.bf16.mxu0 %vm378_vm1, %v6966_v62 }
  0xf6   : > { %v1387_v31 = vadd.f32 %v6617_v40, %v7662_v33  ;;  %v1827_v61 = vpop.f32.mrf.mxu0  ;;  %v4395_v40 = vor.u32 %v4394_v35, %v4390_v3  ;;  %v4406_v14 = vshll.u32 %v6256_v13, 16  ;;  %v4412_v13 = vshll.u32 %v6257_v50, 16  ;;  %v6338_v25 = vld [vmem:[%s7052_s25 + $0x4c] sm:$0xf] }
  0xf7   : > { %v1258_v58 = vpop.f32.mrf.mxu1  ;;  %v4391_v35 = vsel %vm7125_vm7, %v4386_v52, %v4390_v3  ;;  %v7972_v21 = vsel %vm7111_vm6, %v5169_v17, %v5170_v37  ;;  %v6339_v37 = vld [vmem:[%s7052_s25 + $0x50] sm:$0x1]  ;;  %v6259_v17 = vld [vmem:[%s7052_s25 + $0x54] sm:$0xf]  ;;  %v4422_v62 = vshll.u32 %v6258_v16, 16 }
  0xf8   : > { %v7956_v36 = vadd.f32 %v6651_v18, %v1387_v31  ;;  %v1385_v33 = vadd.f32 %v1258_v58, %v7689_v47  ;;  %v6652_v11 = vpop.f32.mrf.mxu0  ;;  %v4396_v2 = vrot.slane %v4395_v40, 4  ;;  %v4408_v58 = vrot.slane %v4406_v14, 5 }
  0xf9   : > { %v6618_v23 = vpop.f32.mrf.mxu1  ;;  %v6393_v3 = vcombine.low %v7963_v48, %v7972_v21  ;;  %v4414_v49 = vrot.slane %v4412_v13, 5  ;;  %v4424_v16 = vrot.slane %v4422_v62, 5  ;;  %v6260_v13 = vld [vmem:[%s7052_s25 + $0x58] sm:$0xf] }
  0xfa   : > { %v7965_v41 = vadd.f32 %v1827_v61, %v1385_v33  ;;  %v1388_v18 = vadd.f32 %v6618_v23, %v7710_v63  ;;  %v1830_v47 = vpop.f32.mrf.mxu0  ;;  %v6337_v61 = vld [vmem:[%s7052_s25 + $0x48] sm:$0xe]  ;;  %v4401_v7 = vsel %vm7125_vm7, %v4396_v2, %v4400_v29  ;;  %v4409_v52 = vor.u32 %v4408_v58, %v4405_v44  ;;  %v6967_v58 = vld [vmem:[%s7052_s25 + $0xb4] sm:$0xff]  }
  0xfb   : > { %v1261_v31 = vpop.f32.mrf.mxu1  ;;  %v7987_v0 = vcombine.low %v4391_v35, %v4401_v7  ;;  %v8772_v2 = vcombine.low %v7787_v59, %v7802_v12 }
  0xfc   : > { %v7977_v63 = vadd.f32 %v6652_v11, %v1388_v18  ;;  %v1386_v23 = vadd.f32 %v1261_v31, %v7724_v10  ;;  %v6655_v40 = vpop.f32.mrf.mxu0  ;;  %v4416_v11 = vshrl.u32 %v6257_v50, 16  ;;  %v8771_v10 = vcombine.low %v7756_v38, %v7783_v22  ;;  %6810 = vmatmul.mubr.msk.bf16.gmra.mxu0 %vm378_vm1, %v6967_v58 }
  0xfd   : > { %v6621_v33 = vpop.f32.mrf.mxu1  ;;  %v6377_v18 = vrot.slane %v6337_v61, 9  ;;  %v4410_v31 = vrot.slane %v4409_v52, 4  ;;  %v5174_v38 = vrot.slane %v6338_v25, 5  ;;  %v5177_v22 = vrot.slane %v6339_v37, 5  ;;  %v6261_v52 = vld [vmem:[%s7052_s25 + $0x5c] sm:$0x1] }
  0xfe   : > { %6776 = vmatmul.mubr.msk.bf16.gmra.mxu1 %vm378_vm1, %v8771_v10  ;;  %v7994_v29 = vadd.f32 %v1830_v47, %v1386_v23  ;;  %v1391_v14 = vadd.f32 %v6621_v33, %v7741_v19  ;;  %v1843_v44 = vpop.f32.mrf.mxu0  ;;  %v4418_v35 = vrot.slane %v4416_v11, 4  ;;  %v4427_v61 = vshrl.u32 %v6259_v17, 16  ;;  %v6968_v23 = vld [vmem:[%s7052_s25 + $0xc0] sm:$0xff]  }
  0xff   : > { %6779 = vmatprep.mubr.msk.bf16.mxu1 %vm378_vm1, %v8772_v2  ;;  %v1274_v50 = vpop.f32.mrf.mxu1  ;;  %v4415_v7 = vsel %vm7125_vm7, %v4410_v31, %v4414_v49  ;;  %v8011_v25 = vsel %vm7111_vm6, %v6377_v18, %v5174_v38  ;;  %v5176_v37 = vrot.slane %v5174_v38, 4  ;;  %v4430_v10 = vshll.u32 %v6259_v17, 16  ;;  %v6341_v31 = vld [vmem:[%s7052_s25 + $0x58] sm:$0xf]  ;;  %v6342_v38 = vld [vmem:[%s7052_s25 + $0x5c] sm:$0x1]  ;;  %6813 = vmatprep.mubr.msk.bf16.mxu0 %vm378_vm1, %v6968_v23 }
 0x100   : > { %v8002_v47 = vadd.f32 %v6655_v40, %v1391_v14  ;;  %v1389_v19 = vadd.f32 %v1274_v50, %v7766_v46  ;;  %v6656_v12 = vpop.f32.mrf.mxu0  ;;  %v4419_v33 = vor.u32 %v4418_v35, %v4414_v49  ;;  %v4429_v11 = vrot.slane %v4427_v61, 4  ;;  %v6340_v14 = vld [vmem:[%s7052_s25 + $0x54] sm:$0xe] }
 0x101   : > { %v6622_v59 = vpop.f32.mrf.mxu1  ;;  %v8020_v49 = vsel %vm7111_vm6, %v5176_v37, %v5177_v22  ;;  %v4436_v50 = vshll.u32 %v6260_v13, 16  ;;  %v4440_v18 = vshrl.u32 %v6260_v13, 16  ;;  %v4432_v35 = vrot.slane %v4430_v10, 5 }
 0x102   : > { %v8013_v40 = vadd.f32 %v1843_v44, %v1389_v19  ;;  %v1392_v46 = vadd.f32 %v6622_v59, %v7792_v1  ;;  %v4420_v2 = vrot.slane %v4419_v33, 4  ;;  %v6394_v17 = vcombine.low %v8011_v25, %v8020_v49  ;;  %v6262_v19 = vld [vmem:[%s7052_s25 + $0x60] sm:$0xf]  ;;  %v1846_v22 = vpop.f32.mrf.mxu0 }
 0x103   : > { %v1277_v62 = vpop.f32.mrf.mxu1  ;;  %v4438_v61 = vrot.slane %v4436_v50, 5  ;;  %v4442_v59 = vrot.slane %v4440_v18, 4  ;;  %v4446_v58 = vshll.u32 %v6261_v52, 16  ;;  %v6378_v23 = vrot.slane %v6340_v14, 9 }
 0x104   : > { %v8024_v44 = vadd.f32 %v6656_v12, %v1392_v46  ;;  %v1390_v1 = vadd.f32 %v1277_v62, %v7805_v27  ;;  %v4425_v13 = vsel %vm7125_vm7, %v4420_v2, %v4424_v16  ;;  %v6263_v12 = vld [vmem:[%s7052_s25 + $0x64] sm:$0xf]  ;;  %v8773_v27 = vcombine.low %v7811_v32, %v7821_v28  ;;  %v6969_v2 = vld [vmem:[%s7052_s25 + $0xcc] sm:$0xff]  }
 0x105   : > { %v8041_v37 = vcombine.low %v4415_v7, %v4425_v13  ;;  %v4433_v46 = vor.u32 %v4432_v35, %v4429_v11  ;;  %v4443_v10 = vor.u32 %v4442_v59, %v4438_v61  ;;  %v4448_v16 = vrot.slane %v4446_v58, 5  ;;  %v6343_v59 = vld [vmem:[%s7052_s25 + $0x60] sm:$0xe]  ;;  %6814 = vmatmul.mubr.msk.bf16.gmra.mxu0 %vm378_vm1, %v6969_v2 }
 0x106   : > { %6780 = vmatmul.mubr.msk.bf16.gmra.mxu1 %vm378_vm1, %v8773_v27  ;;  %v8039_v33 = vadd.f32 %v1846_v22, %v1390_v1  ;;  %v5181_v62 = vrot.slane %v6341_v31, 5  ;;  %v5184_v52 = vrot.slane %v6342_v38, 5  ;;  %v4451_v28 = vshrl.u32 %v6262_v19, 16  ;;  %v6625_v1 = vpop.f32.mrf.mxu1  ;;  %v6659_v22 = vpop.f32.mrf.mxu0  ;;  %v6264_v38 = vld [vmem:[%s7052_s25 + $0x68] sm:$0x1] }
 0x107   : > { %6819 = vmatprep.mubr.msk.bf16.mxu1 %vm378_vm1, %v7869_v8  ;;  %v4434_v50 = vrot.slane %v4433_v46, 4  ;;  %v4454_v32 = vshll.u32 %v6262_v19, 16  ;;  %v4460_v18 = vshll.u32 %v6263_v12, 16  ;;  %v4444_v7 = vrot.slane %v4443_v10, 4 }
 0x108   : > { %v8048_v11 = vsel %vm7111_vm6, %v6378_v23, %v5181_v62  ;;  %v5183_v8 = vrot.slane %v5181_v62, 4  ;;  %v4464_v14 = vshrl.u32 %v6263_v12, 16  ;;  %v1395_v31 = vadd.f32 %v6625_v1, %v7817_v60  ;;  %v1290_v46 = vpop.f32.mrf.mxu1  ;;  %v1859_v23 = vpop.f32.mrf.mxu0  ;;  %v6344_v60 = vld [vmem:[%s7052_s25 + $0x64] sm:$0xf]  ;;  %v6345_v62 = vld [vmem:[%s7052_s25 + $0x68] sm:$0x1] }
 0x109   : > { %v4439_v35 = vsel %vm7125_vm7, %v4434_v50, %v4438_v61  ;;  %v4453_v13 = vrot.slane %v4451_v28, 4  ;;  %v4456_v19 = vrot.slane %v4454_v32, 5  ;;  %v4449_v58 = vsel %vm7125_vm7, %v4444_v7, %v4448_v16  ;;  %v6265_v32 = vld [vmem:[%s7052_s25 + $0x6c] sm:$0xf] }
 0x10a   : > { %v8059_v27 = vsel %vm7111_vm6, %v5183_v8, %v5184_v52  ;;  %v4462_v12 = vrot.slane %v4460_v18, 5  ;;  %v4466_v10 = vrot.slane %v4464_v14, 4  ;;  %v8064_v61 = vadd.f32 %v6659_v22, %v1395_v31  ;;  %v6626_v18 = vpop.f32.mrf.mxu1  ;;  %v6660_v1 = vpop.f32.mrf.mxu0 }
 0x10b   : > { %v8066_v50 = vcombine.low %v4439_v35, %v4449_v58  ;;  %v6395_v28 = vcombine.low %v8048_v11, %v8059_v27  ;;  %v1393_v16 = vadd.f32 %v1290_v46, %v7834_v15  ;;  %v8774_v52 = vcombine.low %v7838_v4, %v7854_v57 }
 0x10c   : > { %v4457_v7 = vor.u32 %v4456_v19, %v4453_v13  ;;  %v4467_v2 = vor.u32 %v4466_v10, %v4462_v12  ;;  %v4470_v22 = vshll.u32 %v6264_v38, 16  ;;  %v6379_v8 = vrot.slane %v6343_v59, 9  ;;  %v1293_v57 = vpop.f32.mrf.mxu1  ;;  %v6266_v19 = vld [vmem:[%s7052_s25 + $0x70] sm:$0xf]  ;;  %v1862_v10 = vpop.f32.mrf.mxu0 }
 0x10d   : > { %6853 = vmatprep.mubr.msk.bf16.mxu0 %vm378_vm1, %v8774_v52  ;;  %v8078_v14 = vadd.f32 %v1859_v23, %v1393_v16  ;;  %v1396_v15 = vadd.f32 %v6626_v18, %v7850_v54  ;;  %v5188_v31 = vrot.slane %v6344_v60, 5  ;;  %v5191_v4 = vrot.slane %v6345_v62, 5  ;;  %v6267_v23 = vld [vmem:[%s7052_s25 + $0x74] sm:$0x1]  ;;  %v6347_v18 = vld [vmem:[%s7052_s25 + $0x70] sm:$0xf] }
 0x10e   : > { %6820 = vmatmul.mubr.msk.bf16.vlgmr.msra.gmra.mxu1 %vm378_vm1, %v7917_v20  ;;  %v4458_v35 = vrot.slane %v4457_v7, 4  ;;  %v4468_v13 = vrot.slane %v4467_v2, 4  ;;  %v4472_v38 = vrot.slane %v4470_v22, 5  ;;  %v4475_v59 = vshrl.u32 %v6265_v32, 16 }
 0x10f   : > { %6823 = vmatprep.mubr.msk.bf16.mxu1 %vm378_vm1, %v7949_v43  ;;  %v8084_v20 = vadd.f32 %v6660_v1, %v1396_v15  ;;  %v1394_v58 = vadd.f32 %v1293_v57, %v7867_v56  ;;  %v8089_v54 = vsel %vm7111_vm6, %v6379_v8, %v5188_v31  ;;  %v5190_v46 = vrot.slane %v5188_v31, 4  ;;  %v6346_v43 = vld [vmem:[%s7052_s25 + $0x6c] sm:$0xe]  ;;  %v6348_v56 = vld [vmem:[%s7052_s25 + $0x74] sm:$0x1] }
 0x110   : > { %v4463_v60 = vsel %vm7125_vm7, %v4458_v35, %v4462_v12  ;;  %v4473_v62 = vsel %vm7125_vm7, %v4468_v13, %v4472_v38  ;;  %v4477_v16 = vrot.slane %v4475_v59, 4  ;;  %v4478_v52 = vshll.u32 %v6265_v32, 16  ;;  %v6268_v8 = vld [vmem:[%s7052_s25 + $0x78] sm:$0xf] }
 0x111   : > { %v8099_v1 = vadd.f32 %v1862_v10, %v1394_v58  ;;  %v8101_v7 = vcombine.low %v4463_v60, %v4473_v62  ;;  %v8105_v2 = vsel %vm7111_vm6, %v5190_v46, %v5191_v4  ;;  %v4484_v22 = vshll.u32 %v6266_v19, 16  ;;  %v6269_v58 = vld [vmem:[%s7052_s25 + $0x7c] sm:$0xf]  ;;  %v6629_v46 = vpop.f32.mrf.mxu1  ;;  %v6663_v10 = vpop.f32.mrf.mxu0 }
 0x112   : > { %v6396_v12 = vcombine.low %v8089_v54, %v8105_v2  ;;  %v4480_v15 = vrot.slane %v4478_v52, 5  ;;  %v4488_v31 = vshrl.u32 %v6266_v19, 16  ;;  %v4494_v57 = vshll.u32 %v6267_v23, 16 }
 0x113   : > { %v8775_v32 = vcombine.low %v7883_v34, %v7903_v45  ;;  %v4486_v35 = vrot.slane %v4484_v22, 5  ;;  %v6380_v13 = vrot.slane %v6346_v43, 9  ;;  %v5195_v38 = vrot.slane %v6347_v18, 5  ;;  %v1306_v52 = vpop.f32.mrf.mxu1  ;;  %v1875_v18 = vpop.f32.mrf.mxu0 }
 0x114   : > { %v5198_v59 = vrot.slane %v6348_v56, 5  ;;  %v8776_v4 = vcombine.low %v7924_v30, %v7934_v5  ;;  %v4481_v19 = vor.u32 %v4480_v15, %v4477_v16  ;;  %v4490_v23 = vrot.slane %v4488_v31, 4  ;;  %v6270_v56 = vld [vmem:[%s7052_s25 + $0x80] sm:$0x1] }
 0x115   : > { %6854 = vmatmul.mubr.msk.bf16.vlgmr.msra.gmra.mxu0 %vm378_vm1, %v8775_v32  ;;  %v4496_v60 = vrot.slane %v4494_v57, 5  ;;  %v4499_v62 = vshrl.u32 %v6268_v8, 16  ;;  %v1399_v34 = vadd.f32 %v6629_v46, %v7875_v24  ;;  %v8124_v45 = vsel %vm7111_vm6, %v6380_v13, %v5195_v38  ;;  %v6349_v57 = vld [vmem:[%s7052_s25 + $0x78] sm:$0xe]  ;;  %v6350_v32 = vld [vmem:[%s7052_s25 + $0x7c] sm:$0xf]  ;;  %v6664_v46 = vpop.f32.mrf.mxu0 }
 0x116   : > { %6857 = vmatprep.mubr.msk.bf16.mxu0 %vm378_vm1, %v8776_v4  ;;  %6824 = vmatmul.mubr.msk.bf16.gmra.mxu1 %vm378_vm1, %v7987_v0  ;;  %v5197_v30 = vrot.slane %v5195_v38, 4  ;;  %v4502_v5 = vshll.u32 %v6268_v8, 16  ;;  %v4482_v43 = vrot.slane %v4481_v19, 4  ;;  %v4491_v16 = vor.u32 %v4490_v23, %v4486_v35  ;;  %v6630_v4 = vpop.f32.mrf.mxu1 }
 0x117   : > { %6827 = vmatprep.mubr.msk.bf16.mxu1 %vm378_vm1, %v8041_v37  ;;  %v4501_v22 = vrot.slane %v4499_v62, 4  ;;  %v4508_v0 = vshll.u32 %v6269_v58, 16  ;;  %v8129_v15 = vadd.f32 %v6663_v10, %v1399_v34  ;;  %v1397_v31 = vadd.f32 %v1306_v52, %v7890_v51  ;;  %v6351_v62 = vld [vmem:[%s7052_s25 + $0x80] sm:$0x1] }
 0x118   : > { %v8133_v24 = vsel %vm7111_vm6, %v5197_v30, %v5198_v59  ;;  %v4504_v8 = vrot.slane %v4502_v5, 5  ;;  %v4487_v37 = vsel %vm7125_vm7, %v4482_v43, %v4486_v35  ;;  %v4492_v13 = vrot.slane %v4491_v16, 4  ;;  %v1309_v34 = vpop.f32.mrf.mxu1  ;;  %v6271_v16 = vld [vmem:[%s7052_s25 + $0x84] sm:$0xf] }
 0x119   : > { %v6397_v38 = vcombine.low %v8124_v45, %v8133_v24  ;;  %v4510_v10 = vrot.slane %v4508_v0, 5  ;;  %v8142_v19 = vadd.f32 %v1875_v18, %v1397_v31  ;;  %v1400_v59 = vadd.f32 %v6630_v4, %v7907_v26  ;;  %v6352_v31 = vld [vmem:[%s7052_s25 + $0x84] sm:$0xe]  ;;  %v6354_v4 = vld [vmem:[%s7052_s25 + $0x8c] sm:$0x1] }
 0x11a   : > { %v4505_v51 = vor.u32 %v4504_v8, %v4501_v22  ;;  %v4512_v23 = vshrl.u32 %v6269_v58, 16  ;;  %v4497_v35 = vsel %vm7125_vm7, %v4492_v13, %v4496_v60  ;;  %v4518_v30 = vshll.u32 %v6270_v56, 16  ;;  %v6272_v22 = vld [vmem:[%s7052_s25 + $0x88] sm:$0xf]  ;;  %v6273_v60 = vld [vmem:[%s7052_s25 + $0x8c] sm:$0x1]  ;;  %v1878_v56 = vpop.f32.mrf.mxu0 }
 0x11b   : > { %v6381_v5 = vrot.slane %v6349_v57, 9  ;;  %v5202_v43 = vrot.slane %v6350_v32, 5  ;;  %v6300_v52 = vcombine.low %v4487_v37, %v4497_v35  ;;  %v8153_v26 = vadd.f32 %v6664_v46, %v1400_v59  ;;  %v6353_v8 = vld [vmem:[%s7052_s25 + $0x88] sm:$0xf] }
 0x11c   : > { %v1398_v58 = vadd.f32 %v1309_v34, %v7920_v9  ;;  %v4506_v18 = vrot.slane %v4505_v51, 4  ;;  %v4514_v0 = vrot.slane %v4512_v23, 4  ;;  %v4520_v48 = vrot.slane %v4518_v30, 5  ;;  %v6274_v23 = vld [vmem:[%s7052_s25 + $0x90] sm:$0xf]  ;;  %v6633_v34 = vpop.f32.mrf.mxu1 }
 0x11d   : > { %6858 = vmatmul.mubr.msk.bf16.gmra.mxu0 %vm378_vm1, %v6393_v3  ;;  %v8164_v21 = vsel %vm7111_vm6, %v6381_v5, %v5202_v43  ;;  %v5204_v3 = vrot.slane %v5202_v43, 4  ;;  %v5205_v49 = vrot.slane %v6351_v62, 5  ;;  %v4526_v32 = vshll.u32 %v6271_v16, 16 }
 0x11e   : > { %6861 = vmatprep.mubr.msk.bf16.mxu0 %vm378_vm1, %v6394_v17  ;;  %6828 = vmatmul.mubr.msk.bf16.gmra.mxu1 %vm378_vm1, %v8066_v50  ;;  %v8169_v9 = vadd.f32 %v1878_v56, %v1398_v58  ;;  %v4511_v25 = vsel %vm7125_vm7, %v4506_v18, %v4510_v10  ;;  %v4523_v17 = vshrl.u32 %v6271_v16, 16  ;;  %v4515_v57 = vor.u32 %v4514_v0, %v4510_v10  ;;  %v1322_v56 = vpop.f32.mrf.mxu1 }
 0x11f   : > { %6831 = vmatprep.mubr.msk.bf16.mxu1 %vm378_vm1, %v8101_v7  ;;  %v4532_v37 = vshll.u32 %v6272_v22, 16  ;;  %v4536_v13 = vshrl.u32 %v6272_v22, 16  ;;  %v8179_v50 = vsel %vm7111_vm6, %v5204_v3, %v5205_v49  ;;  %v4542_v59 = vshll.u32 %v6273_v60, 16  ;;  %v6667_v7 = vpop.f32.mrf.mxu0  ;;  %v6275_v3 = vld [vmem:[%s7052_s25 + $0x94] sm:$0xf] }
 0x120   : > { %v4525_v46 = vrot.slane %v4523_v17, 4  ;;  %v6382_v51 = vrot.slane %v6352_v31, 9  ;;  %v4516_v62 = vrot.slane %v4515_v57, 4  ;;  %v6398_v35 = vcombine.low %v8164_v21, %v8179_v50  ;;  %v6634_v27 = vpop.f32.mrf.mxu1  ;;  %v6359_v21 = vld [vmem:[%s7052_s25 + $0xa0] sm:$0xf] }
 0x121   : > { %v4528_v10 = vrot.slane %v4526_v32, 5  ;;  %v4534_v30 = vrot.slane %v4532_v37, 5  ;;  %v1403_v5 = vadd.f32 %v6633_v34, %v7675_v39  ;;  %v4538_v43 = vrot.slane %v4536_v13, 4  ;;  %v1891_v0 = vpop.f32.mrf.mxu0  ;;  %v6276_v13 = vld [vmem:[%s7052_s25 + $0x98] sm:$0x1]  ;;  %v8777_v34 = vld [vmem:[#allocation3_spill] sm:$0xff] }
 0x122   : > { %v4544_v16 = vrot.slane %v4542_v59, 5  ;;  %v5209_v58 = vrot.slane %v6353_v8, 5  ;;  %v4521_v18 = vsel %vm7125_vm7, %v4516_v62, %v4520_v48  ;;  %v5212_v60 = vrot.slane %v6354_v4, 5  ;;  %v6355_v59 = vld [vmem:[%s7052_s25 + $0x90] sm:$0xe] }
 0x123   : > { %v4529_v22 = vor.u32 %v4528_v10, %v4525_v46  ;;  %v4547_v31 = vshrl.u32 %v6274_v23, 16  ;;  %v6301_v49 = vcombine.low %v4511_v25, %v4521_v18  ;;  %v8192_v39 = vadd.f32 %v6667_v7, %v1403_v5  ;;  %v6357_v10 = vld [vmem:[%s7052_s25 + $0x98] sm:$0x1]  ;;  %v6360_v50 = vld [vmem:[%s7052_s25 + $0xa4] sm:$0x1] }
 0x124   : > { %v4539_v17 = vor.u32 %v4538_v43, %v4534_v30  ;;  %v8196_v8 = vsel %vm7111_vm6, %v6382_v51, %v5209_v58  ;;  %v5211_v57 = vrot.slane %v5209_v58, 4  ;;  %v1401_v11 = vadd.f32 %v1322_v56, %v7699_v53 }
 0x125   : > { %6862 = vmatmul.mubr.msk.bf16.gmra.mxu0 %vm378_vm1, %v6395_v28  ;;  %v4530_v48 = vrot.slane %v4529_v22, 4  ;;  %v6668_v28 = vpop.f32.mrf.mxu0  ;;  %v4549_v25 = vrot.slane %v4547_v31, 4  ;;  %v1404_v37 = vadd.f32 %v6634_v27, %v7720_v6  ;;  %v4550_v54 = vshll.u32 %v6274_v23, 16  ;;  %v6356_v6 = vld [vmem:[%s7052_s25 + $0x94] sm:$0xf] }
 0x126   : > { %6865 = vmatprep.mubr.msk.bf16.mxu0 %vm378_vm1, %v6396_v12  ;;  %6832 = vmatmul.mubr.msk.bf16.gmra.mxu1 %vm378_vm1, %v6300_v52  ;;  %v4540_v32 = vrot.slane %v4539_v17, 4  ;;  %v4556_v2 = vshll.u32 %v6275_v3, 16  ;;  %v8211_v12 = vsel %vm7111_vm6, %v5211_v57, %v5212_v60  ;;  %v8213_v4 = vadd.f32 %v1891_v0, %v1401_v11  ;;  %v1325_v52 = vpop.f32.mrf.mxu1 }
 0x127   : > { %6835 = vmatprep.mubr.msk.bf16.mxu1 %vm378_vm1, %v6301_v49  ;;  %v4535_v53 = vsel %vm7125_vm7, %v4530_v48, %v4534_v30  ;;  %v4560_v46 = vshrl.u32 %v6275_v3, 16  ;;  %v6399_v23 = vcombine.low %v8196_v8, %v8211_v12  ;;  %v8221_v62 = vadd.f32 %v6668_v28, %v1404_v37  ;;  %v6277_v30 = vld [vmem:[%s7052_s25 + $0x9c] sm:$0xf]  ;;  %v1894_v43 = vpop.f32.mrf.mxu0  ;;  %v6278_v3 = vld [vmem:[%s7052_s25 + $0xa0] sm:$0xf] }
 0x128   : > { %v4545_v51 = vsel %vm7125_vm7, %v4540_v32, %v4544_v16  ;;  %v1402_v7 = vadd.f32 %v1325_v52, %v8777_v34  ;;  %v4552_v58 = vrot.slane %v4550_v54, 5  ;;  %v4558_v18 = vrot.slane %v4556_v2, 5  ;;  %v6279_v28 = vld [vmem:[%s7052_s25 + $0xa4] sm:$0x1]  ;;  %v6358_v54 = vld [vmem:[%s7052_s25 + $0x9c] sm:$0xe] }
 0x129   : > { %v6302_v5 = vcombine.low %v4535_v53, %v4545_v51  ;;  %v4562_v22 = vrot.slane %v4560_v46, 4  ;;  %v4566_v56 = vshll.u32 %v6276_v13, 16  ;;  %v6383_v0 = vrot.slane %v6355_v59, 9  ;;  %v6637_v13 = vpop.f32.mrf.mxu1  ;;  %v6671_v45 = vpop.f32.mrf.mxu0  ;;  %v8778_v53 = vld [vmem:[#allocation4_spill] sm:$0xff] }
 0x12a   : > { %v8226_v60 = vadd.f32 %v1894_v43, %v1402_v7  ;;  %v5216_v16 = vrot.slane %v6356_v6, 5  ;;  %v4553_v31 = vor.u32 %v4552_v58, %v4549_v25  ;;  %v5219_v17 = vrot.slane %v6357_v10, 5 }
 0x12b   : > { %v4563_v49 = vor.u32 %v4562_v22, %v4558_v18  ;;  %v4571_v48 = vshrl.u32 %v6277_v30, 16  ;;  %v4568_v57 = vrot.slane %v4566_v56, 5  ;;  %v4574_v32 = vshll.u32 %v6277_v30, 16  ;;  %v1338_v7 = vpop.f32.mrf.mxu1  ;;  %v1907_v10 = vpop.f32.mrf.mxu0  ;;  %v6280_v22 = vld [vmem:[%s7052_s25 + $0xa8] sm:$0xf] }
 0x12c   : > { %v5217_v11 = vsel %vm7111_vm6, %v6383_v0, %v5216_v16  ;;  %v5218_v27 = vrot.slane %v5216_v16, 4  ;;  %v4554_v25 = vrot.slane %v4553_v31, 4  ;;  %v1407_v52 = vadd.f32 %v6637_v13, %v8778_v53  ;;  %v6281_v13 = vld [vmem:[%s7052_s25 + $0xac] sm:$0xf]  ;;  %v6282_v53 = vld [vmem:[%s7052_s25 + $0xb0] sm:$0x1] }
 0x12d   : > { %6866 = vmatmul.mubr.msk.bf16.gmra.mxu0 %vm378_vm1, %v6397_v38  ;;  %v4564_v37 = vrot.slane %v4563_v49, 4  ;;  %v4573_v24 = vrot.slane %v4571_v48, 4  ;;  %v4580_v38 = vshll.u32 %v6278_v3, 16  ;;  %v4576_v46 = vrot.slane %v4574_v32, 5  ;;  %v6638_v31 = vpop.f32.mrf.mxu1  ;;  %v8779_v48 = vld [vmem:[#allocation5_spill] sm:$0xff] }
 0x12e   : > { %6869 = vmatprep.mubr.msk.bf16.mxu0 %vm378_vm1, %v6398_v35  ;;  %6836 = vmatmul.mubr.msk.bf16.gmra.mxu1 %vm378_vm1, %v6302_v5  ;;  %v5220_v2 = vsel %vm7111_vm6, %v5218_v27, %v5219_v17  ;;  %v4584_v59 = vshrl.u32 %v6278_v3, 16  ;;  %v4559_v35 = vsel %vm7125_vm7, %v4554_v25, %v4558_v18  ;;  %v8251_v5 = vadd.f32 %v6671_v45, %v1407_v52  ;;  %v6672_v18 = vpop.f32.mrf.mxu0 }
 0x12f   : > { %v4569_v6 = vsel %vm7125_vm7, %v4564_v37, %v4568_v57  ;;  %v6400_v51 = vcombine.low %v5217_v11, %v5220_v2  ;;  %v4582_v34 = vrot.slane %v4580_v38, 5  ;;  %v4577_v43 = vor.u32 %v4576_v46, %v4573_v24  ;;  %v8780_v11 = vld [vmem:[#allocation6_spill] sm:$0xff]  ;;  %v8781_v46 = vld [vmem:[#allocation7_spill] sm:$0xff] }
 0x130   : > { %v6303_v30 = vcombine.low %v4559_v35, %v4569_v6  ;;  %v4586_v58 = vrot.slane %v4584_v59, 4  ;;  %v4590_v56 = vshll.u32 %v6279_v28, 16  ;;  %v6384_v0 = vrot.slane %v6358_v54, 9  ;;  %v1341_v28 = vpop.f32.mrf.mxu1  ;;  %v1910_v12 = vpop.f32.mrf.mxu0 }
 0x131   : > { %v5223_v16 = vrot.slane %v6359_v21, 5  ;;  %v5226_v3 = vrot.slane %v6360_v50, 5  ;;  %v4578_v49 = vrot.slane %v4577_v43, 4  ;;  %v1405_v57 = vadd.f32 %v1338_v7, %v8779_v48  ;;  %v6361_v21 = vld [vmem:[%s7052_s25 + $0xa8] sm:$0xe] }
 0x132   : > { %6839 = vmatprep.mubr.msk.bf16.mxu1 %vm378_vm1, %v6303_v30  ;;  %v4587_v17 = vor.u32 %v4586_v58, %v4582_v34  ;;  %v1408_v27 = vadd.f32 %v6638_v31, %v8780_v11  ;;  %v4592_v32 = vrot.slane %v4590_v56, 5  ;;  %v4595_v45 = vshrl.u32 %v6280_v22, 16  ;;  %v6362_v50 = vld [vmem:[%s7052_s25 + $0xac] sm:$0xf]  ;;  %v6283_v30 = vld [vmem:[%s7052_s25 + $0xb4] sm:$0xf]  ;;  %v6641_v48 = vpop.f32.mrf.mxu1 }
 0x133   : > { %v5224_v25 = vsel %vm7111_vm6, %v6384_v0, %v5223_v16  ;;  %v5225_v37 = vrot.slane %v5223_v16, 4  ;;  %v4583_v24 = vsel %vm7125_vm7, %v4578_v49, %v4582_v34  ;;  %v8266_v54 = vadd.f32 %v1907_v10, %v1405_v57  ;;  %v6363_v10 = vld [vmem:[%s7052_s25 + $0xb0] sm:$0x1]  ;;  %v6284_v31 = vld [vmem:[%s7052_s25 + $0xb8] sm:$0xf]  ;;  %v6675_v57 = vpop.f32.mrf.mxu0 }
 0x134   : > { %v4588_v38 = vrot.slane %v4587_v17, 4  ;;  %v8268_v2 = vadd.f32 %v6672_v18, %v1408_v27  ;;  %v1406_v8 = vadd.f32 %v1341_v28, %v8781_v46  ;;  %v4598_v59 = vshll.u32 %v6280_v22, 16  ;;  %v1354_v46 = vpop.f32.mrf.mxu1 }
 0x135   : > { %6870 = vmatmul.mubr.msk.bf16.gmra.mxu0 %vm378_vm1, %v6399_v23  ;;  %v5227_v52 = vsel %vm7111_vm6, %v5225_v37, %v5226_v3  ;;  %v4597_v23 = vrot.slane %v4595_v45, 4  ;;  %v4604_v34 = vshll.u32 %v6281_v13, 16  ;;  %v4608_v7 = vshrl.u32 %v6281_v13, 16  ;;  %v8782_v37 = vld [vmem:[#allocation8_spill] sm:$0xff]  ;;  %v6285_v13 = vld [vmem:[%s7052_s25 + $0xbc] sm:$0x1] }
 0x136   : > { %6873 = vmatprep.mubr.msk.bf16.mxu0 %vm378_vm1, %v6400_v51  ;;  %v4593_v35 = vsel %vm7125_vm7, %v4588_v38, %v4592_v32  ;;  %v6401_v6 = vcombine.low %v5224_v25, %v5227_v52  ;;  %v8281_v43 = vadd.f32 %v1910_v12, %v1406_v8  ;;  %v4600_v58 = vrot.slane %v4598_v59, 5  ;;  %v6364_v52 = vld [vmem:[%s7052_s25 + $0xb4] sm:$0xe]  ;;  %v1923_v8 = vpop.f32.mrf.mxu0 }
 0x137   : > { %v6304_v51 = vcombine.low %v4583_v24, %v4593_v35  ;;  %v4614_v56 = vshll.u32 %v6282_v53, 16  ;;  %v4606_v0 = vrot.slane %v4604_v34, 5  ;;  %v4610_v16 = vrot.slane %v4608_v7, 4  ;;  %v6366_v35 = vld [vmem:[%s7052_s25 + $0xbc] sm:$0x1] }
 0x138   : > { %v6385_v22 = vrot.slane %v6361_v21, 9  ;;  %v5230_v3 = vrot.slane %v6362_v50, 5  ;;  %v4601_v18 = vor.u32 %v4600_v58, %v4597_v23  ;;  %v5233_v17 = vrot.slane %v6363_v10, 5  ;;  %v6365_v50 = vld [vmem:[%s7052_s25 + $0xb8] sm:$0xf]  ;;  %v6676_v58 = vpop.f32.mrf.mxu0 }
 0x139   : > { %6840 = vmatmul.mubr.msk.bf16.gmra.mxu1 %vm378_vm1, %v6304_v51  ;;  %v4616_v49 = vrot.slane %v4614_v56, 5  ;;  %v4619_v11 = vshrl.u32 %v6283_v30, 16  ;;  %v4611_v27 = vor.u32 %v4610_v16, %v4606_v0  ;;  %v1411_v28 = vadd.f32 %v6641_v48, %v8782_v37  ;;  %v6642_v51 = vpop.f32.mrf.mxu1  ;;  %v6286_v48 = vld [vmem:[%s7052_s25 + $0xc0] sm:$0xf] }
 0x13a   : > { %v5231_v32 = vsel %vm7111_vm6, %v6385_v22, %v5230_v3  ;;  %v5232_v25 = vrot.slane %v5230_v3, 4  ;;  %v4602_v45 = vrot.slane %v4601_v18, 4  ;;  %v4622_v38 = vshll.u32 %v6283_v30, 16 }
 0x13b   : > { %v4621_v24 = vrot.slane %v4619_v11, 4  ;;  %v4628_v53 = vshll.u32 %v6284_v31, 16  ;;  %v4612_v12 = vrot.slane %v4611_v27, 4  ;;  %v8293_v59 = vadd.f32 %v6675_v57, %v1411_v28  ;;  %v8783_v27 = vld [vmem:[#allocation9_spill] sm:$0xff] }
 0x13c   : > { %v5234_v23 = vsel %vm7111_vm6, %v5232_v25, %v5233_v17  ;;  %v4632_v21 = vshrl.u32 %v6284_v31, 16  ;;  %v4607_v34 = vsel %vm7125_vm7, %v4602_v45, %v4606_v0  ;;  %v4624_v10 = vrot.slane %v4622_v38, 5  ;;  %v1357_v0 = vpop.f32.mrf.mxu1  ;;  %v8784_v25 = vld [vmem:[#allocation10_spill] sm:$0xff]  ;;  %v8785_v45 = vld [vmem:[#allocation11_spill] sm:$0xff]  ;;  %v1926_v38 = vpop.f32.mrf.mxu0 }
 0x13d   : > { %6874 = vmatmul.mubr.msk.bf16.gmra.mxu0 %vm378_vm1, %v6401_v6  ;;  %v6402_v7 = vcombine.low %v5231_v32, %v5234_v23  ;;  %v4630_v30 = vrot.slane %v4628_v53, 5  ;;  %v4617_v6 = vsel %vm7125_vm7, %v4612_v12, %v4616_v49  ;;  %v4638_v16 = vshll.u32 %v6285_v13, 16  ;;  %v6287_v53 = vld [vmem:[%s7052_s25 + $0xc4] sm:$0xf] }
 0x13e   : > { %v4634_v56 = vrot.slane %v4632_v21, 4  ;;  %v6386_v22 = vrot.slane %v6364_v52, 9  ;;  %v6305_v3 = vcombine.low %v4607_v34, %v4617_v6  ;;  %v4625_v31 = vor.u32 %v4624_v10, %v4621_v24  ;;  %v6369_v6 = vld [vmem:[%s7052_s25 + $0xc8] sm:$0x1] }
 0x13f   : > { %6877 = vmatprep.mubr.msk.bf16.mxu0 %vm378_vm1, %v6402_v7  ;;  %v5237_v18 = vrot.slane %v6365_v50, 5  ;;  %v5240_v17 = vrot.slane %v6366_v35, 5  ;;  %v4640_v11 = vrot.slane %v4638_v16, 5  ;;  %v1409_v32 = vadd.f32 %v1354_v46, %v8783_v27  ;;  %v6288_v46 = vld [vmem:[%s7052_s25 + $0xc8] sm:$0x1] }
 0x140   : > { %v4635_v57 = vor.u32 %v4634_v56, %v4630_v30  ;;  %v1412_v49 = vadd.f32 %v6642_v51, %v8784_v25  ;;  %6843 = vmatprep.mubr.msk.bf16.mxu1 %vm378_vm1, %v6305_v3  ;;  %v4626_v37 = vrot.slane %v4625_v31, 4  ;;  %v1410_v24 = vadd.f32 %v1357_v0, %v8785_v45  ;;  %v6367_v50 = vld [vmem:[%s7052_s25 + $0xc0] sm:$0xe]  ;;  %v6368_v51 = vld [vmem:[%s7052_s25 + $0xc4] sm:$0xf]  ;;  %v6679_v0 = vpop.f32.mrf.mxu0 }
 0x141   : > { %v5238_v28 = vsel %vm7111_vm6, %v6386_v22, %v5237_v18  ;;  %v5239_v13 = vrot.slane %v5237_v18, 4  ;;  %v8310_v12 = vadd.f32 %v1923_v8, %v1409_v32  ;;  %v4643_v21 = vshrl.u32 %v6286_v48, 16  ;;  %v6645_v18 = vpop.f32.mrf.mxu1  ;;  %v6290_v25 = vld [vmem:[%s7052_s25 + $0xd0] sm:$0xf] }
 0x142   : > { %v4636_v52 = vrot.slane %v4635_v57, 4  ;;  %v8312_v23 = vadd.f32 %v6676_v58, %v1412_v49  ;;  %v4631_v35 = vsel %vm7125_vm7, %v4626_v37, %v4630_v30  ;;  %v8320_v7 = vadd.f32 %v1926_v38, %v1410_v24  ;;  %v6289_v57 = vld [vmem:[%s7052_s25 + $0xcc] sm:$0xf]  ;;  %v1939_v24 = vpop.f32.mrf.mxu0 }
 0x143   : > { %v5241_v34 = vsel %vm7111_vm6, %v5239_v13, %v5240_v17  ;;  %v4646_v10 = vshll.u32 %v6286_v48, 16  ;;  %v4645_v56 = vrot.slane %v4643_v21, 4  ;;  %v4652_v16 = vshll.u32 %v6287_v53, 16  ;;  %v1370_v45 = vpop.f32.mrf.mxu1 }
 0x144   : > { %v4641_v8 = vsel %vm7125_vm7, %v4636_v52, %v4640_v11  ;;  %v6403_v58 = vcombine.low %v5238_v28, %v5241_v34  ;;  %v4656_v31 = vshrl.u32 %v6287_v53, 16  ;;  %v4662_v30 = vshll.u32 %v6288_v46, 16  ;;  %v8786_v28 = vld [vmem:[#allocation12_spill] sm:$0xff]  ;;  %v6291_v52 = vld [vmem:[%s7052_s25 + $0xd4] sm:$0x1] }
 0x145   : > { %v6306_v22 = vcombine.low %v4631_v35, %v4641_v8  ;;  %v4648_v3 = vrot.slane %v4646_v10, 5  ;;  %v4654_v17 = vrot.slane %v4652_v16, 5  ;;  %v6387_v48 = vrot.slane %v6367_v50, 9  ;;  %v6646_v8 = vpop.f32.mrf.mxu1 }
 0x146   : > { %6878 = vmatmul.mubr.msk.bf16.gmra.mxu0 %vm378_vm1, %v6403_v58  ;;  %v5244_v27 = vrot.slane %v6368_v51, 5  ;;  %v5247_v32 = vrot.slane %v6369_v6, 5  ;;  %v4658_v49 = vrot.slane %v4656_v31, 4  ;;  %v4664_v37 = vrot.slane %v4662_v30, 5  ;;  %v6370_v51 = vld [vmem:[%s7052_s25 + $0xcc] sm:$0xe]  ;;  %v6680_v58 = vpop.f32.mrf.mxu0 }
 0x147   : > { %6844 = vmatmul.mubr.msk.bf16.gmra.mxu1 %vm378_vm1, %v6306_v22  ;;  %v4649_v11 = vor.u32 %v4648_v3, %v4645_v56  ;;  %v1415_v13 = vadd.f32 %v6645_v18, %v8786_v28  ;;  %v4667_v46 = vshrl.u32 %v6289_v57, 16  ;;  %v4670_v21 = vshll.u32 %v6289_v57, 16  ;;  %v6371_v6 = vld [vmem:[%s7052_s25 + $0xd0] sm:$0xf]  ;;  %v6372_v31 = vld [vmem:[%s7052_s25 + $0xd4] sm:$0x1] }
 0x148   : > { %v5245_v38 = vsel %vm7111_vm6, %v6387_v48, %v5244_v27  ;;  %v5246_v53 = vrot.slane %v5244_v27, 4  ;;  %v4659_v35 = vor.u32 %v4658_v49, %v4654_v17  ;;  %v4676_v10 = vshll.u32 %v6290_v25, 16 }
 0x149   : > { %v4650_v50 = vrot.slane %v4649_v11, 4  ;;  %v8334_v34 = vadd.f32 %v6679_v0, %v1415_v13  ;;  %v4669_v16 = vrot.slane %v4667_v46, 4  ;;  %v4672_v22 = vrot.slane %v4670_v21, 5  ;;  %v1373_v0 = vpop.f32.mrf.mxu1  ;;  %v1942_v13 = vpop.f32.mrf.mxu0 }
 0x14a   : > { %v5248_v56 = vsel %vm7111_vm6, %v5246_v53, %v5247_v32  ;;  %v4680_v3 = vshrl.u32 %v6290_v25, 16  ;;  %v4660_v18 = vrot.slane %v4659_v35, 4  ;;  %v4678_v48 = vrot.slane %v4676_v10, 5  ;;  %v8788_v53 = vld [vmem:[#allocation13_spill] sm:$0xff] }
 0x14b   : > { %8787 = vst [vmem:[#allocation3_spill] sm:$0xff] %v8334_v34  ;;  %v4655_v30 = vsel %vm7125_vm7, %v4650_v50, %v4654_v17  ;;  %v6404_v57 = vcombine.low %v5245_v38, %v5248_v56  ;;  %v4673_v27 = vor.u32 %v4672_v22, %v4669_v16  ;;  %v4686_v49 = vshll.u32 %v6291_v52, 16  ;;  %v6685_v21 = vpop.f32.mrf.mxu1  ;;  %v8789_v56 = vld [vmem:[#allocation14_spill] sm:$0xff]  ;;  %v8790_v22 = vld [vmem:[#allocation15_spill] sm:$0xff] }
 0x14c   : > { %v4682_v11 = vrot.slane %v4680_v3, 4  ;;  %v6388_v28 = vrot.slane %v6370_v51, 9  ;;  %v4665_v34 = vsel %vm7125_vm7, %v4660_v18, %v4664_v37  ;;  %v5251_v32 = vrot.slane %v6371_v6, 5 }
 0x14d   : > { %6881 = vmatprep.mubr.msk.bf16.mxu0 %vm378_vm1, %v6404_v57  ;;  %v5254_v25 = vrot.slane %v6372_v31, 5  ;;  %v1413_v46 = vadd.f32 %v1370_v45, %v8788_v53  ;;  %v6307_v17 = vcombine.low %v4655_v30, %v4665_v34  ;;  %v4674_v50 = vrot.slane %v4673_v27, 4  ;;  %v2253_v37 = vpop.f32.mrf.mxu1  ;;  %v6719_v31 = vpop.f32.mrf.mxu0 }
 0x14e   : > { %v4683_v38 = vor.u32 %v4682_v11, %v4678_v48  ;;  %v4688_v35 = vrot.slane %v4686_v49, 5  ;;  %v5252_v10 = vsel %vm7111_vm6, %v6388_v28, %v5251_v32  ;;  %v5253_v52 = vrot.slane %v5251_v32, 4 }
 0x14f   : > { %v8349_v51 = vadd.f32 %v1939_v24, %v1413_v46  ;;  %v1416_v16 = vadd.f32 %v6646_v8, %v8789_v56  ;;  %6847 = vmatprep.mubr.msk.bf16.mxu1 %vm378_vm1, %v6307_v17  ;;  %v4679_v6 = vsel %vm7125_vm7, %v4674_v50, %v4678_v48  ;;  %v1414_v34 = vadd.f32 %v1373_v0, %v8790_v22  ;;  %v6686_v8 = vpop.f32.mrf.mxu1  ;;  %v3043_v0 = vpop.f32.mrf.mxu0 }
 0x150   : > { %v4684_v45 = vrot.slane %v4683_v38, 4  ;;  %v2382_v3 = vadd.f32 %v6685_v21, %v7956_v36  ;;  %v5255_v30 = vsel %vm7111_vm6, %v5253_v52, %v5254_v25  ;;  %v2380_v24 = vadd.f32 %v2253_v37, %v7965_v41 }
 0x151   : > { %v8359_v18 = vadd.f32 %v6680_v58, %v1416_v16  ;;  %v6405_v27 = vcombine.low %v5252_v10, %v5255_v30  ;;  %v8364_v11 = vadd.f32 %v1942_v13, %v1414_v34  ;;  %v2383_v42 = vadd.f32 %v6686_v8, %v7977_v63  ;;  %v2256_v28 = vpop.f32.mrf.mxu1  ;;  %v6720_v58 = vpop.f32.mrf.mxu0 }
 0x152   : > { %v4689_v57 = vsel %vm7125_vm7, %v4684_v45, %v4688_v35  ;;  %v8366_v48 = vadd.f32 %v6719_v31, %v2382_v3  ;;  %v8368_v36 = vadd.f32 %v3043_v0, %v2380_v24  ;;  %v2381_v41 = vadd.f32 %v2256_v28, %v7994_v29 }
 0x153   : > { %v6308_v49 = vcombine.low %v4679_v6, %v4689_v57  ;;  %6882 = vmatmul.mubr.msk.bf16.gmra.mxu0 %vm378_vm1, %v6405_v27  ;;  %v8374_v55 = vadd.f32 %v6720_v58, %v2383_v42  ;;  %v6689_v13 = vpop.f32.mrf.mxu1  ;;  %v3046_v32 = vpop.f32.mrf.mxu0 }
 0x154   : > { %v2386_v25 = vadd.f32 %v6689_v13, %v8002_v47  ;;  %v8377_v53 = vadd.f32 %v3046_v32, %v2381_v41 }
 0x155   : > { %6848 = vmatmul.mubr.msk.bf16.gmra.mxu1 %vm378_vm1, %v6308_v49  ;;  %v2269_v46 = vpop.f32.mrf.mxu1  ;;  %v6723_v21 = vpop.f32.mrf.mxu0 }
 0x156   : > { %v2384_v63 = vadd.f32 %v2269_v46, %v8013_v40  ;;  %v8380_v17 = vadd.f32 %v6723_v21, %v2386_v25 }
 0x157   : > { %v6690_v50 = vpop.f32.mrf.mxu1  ;;  %v3059_v38 = vpop.f32.mrf.mxu0 }
 0x158   : > { %v2387_v29 = vadd.f32 %v6690_v50, %v8024_v44  ;;  %v8383_v35 = vadd.f32 %v3059_v38, %v2384_v63 }
 0x159   : > { %v2272_v10 = vpop.f32.mrf.mxu1  ;;  %v6724_v52 = vpop.f32.mrf.mxu0 }
 0x15a   : > { %v2385_v56 = vadd.f32 %v2272_v10, %v8039_v33  ;;  %v8386_v16 = vadd.f32 %v6724_v52, %v2387_v29 }
 0x15b   : > { %v6693_v47 = vpop.f32.mrf.mxu1  ;;  %v3062_v37 = vpop.f32.mrf.mxu0 }
 0x15c   : > { %v2390_v6 = vadd.f32 %v6693_v47, %v8064_v61  ;;  %v8389_v45 = vadd.f32 %v3062_v37, %v2385_v56 }
 0x15d   : > { %v2285_v40 = vpop.f32.mrf.mxu1  ;;  %v6727_v3 = vpop.f32.mrf.mxu0 }
 0x15e   : > { %v2388_v22 = vadd.f32 %v2285_v40, %v8078_v14  ;;  %v8393_v31 = vadd.f32 %v6727_v3, %v2390_v6 }
 0x15f   : > { %v6694_v34 = vpop.f32.mrf.mxu1  ;;  %v3075_v24 = vpop.f32.mrf.mxu0 }
 0x160   : > { %v2391_v44 = vadd.f32 %v6694_v34, %v8084_v20  ;;  %v8396_v8 = vadd.f32 %v3075_v24, %v2388_v22 }
 0x161   : > { %v2288_v30 = vpop.f32.mrf.mxu1  ;;  %v6728_v27 = vpop.f32.mrf.mxu0 }
 0x162   : > { %v2389_v33 = vadd.f32 %v2288_v30, %v8099_v1  ;;  %v8399_v0 = vadd.f32 %v6728_v27, %v2391_v44 }
 0x163   : > { %v6697_v57 = vpop.f32.mrf.mxu1  ;;  %v3078_v14 = vpop.f32.mrf.mxu0 }
 0x164   : > { %v2394_v61 = vadd.f32 %v6697_v57, %v8129_v15  ;;  %v8402_v28 = vadd.f32 %v3078_v14, %v2389_v33 }
 0x165   : > { %v2301_v49 = vpop.f32.mrf.mxu1  ;;  %v6731_v58 = vpop.f32.mrf.mxu0 }
 0x166   : > { %v2392_v42 = vadd.f32 %v2301_v49, %v8142_v19  ;;  %v8405_v13 = vadd.f32 %v6731_v58, %v2394_v61 }
 0x167   : > { %v6698_v20 = vpop.f32.mrf.mxu1  ;;  %v3091_v32 = vpop.f32.mrf.mxu0 }
 0x168   : > { %v2395_v41 = vadd.f32 %v6698_v20, %v8153_v26  ;;  %v8408_v46 = vadd.f32 %v3091_v32, %v2392_v42 }
 0x169   : > { %v2304_v1 = vpop.f32.mrf.mxu1  ;;  %v6732_v21 = vpop.f32.mrf.mxu0 }
 0x16a   : > { %v2393_v25 = vadd.f32 %v2304_v1, %v8169_v9  ;;  %v8411_v50 = vadd.f32 %v6732_v21, %v2395_v41 }
 0x16b   : > { %v6701_v15 = vpop.f32.mrf.mxu1  ;;  %v3094_v38 = vpop.f32.mrf.mxu0 }
 0x16c   : > { %v2398_v63 = vadd.f32 %v6701_v15, %v8192_v39  ;;  %8791 = vst [vmem:[#allocation4_spill] sm:$0xff] %v8411_v50  ;;  %v8414_v10 = vadd.f32 %v3094_v38, %v2393_v25 }
 0x16d   : > { %v2317_v19 = vpop.f32.mrf.mxu1  ;;  %v6735_v52 = vpop.f32.mrf.mxu0 }
 0x16e   : > { %v2396_v29 = vadd.f32 %v2317_v19, %v8213_v4  ;;  %8792 = vst [vmem:[#allocation5_spill] sm:$0xff] %v8414_v10  ;;  %v8417_v47 = vadd.f32 %v6735_v52, %v2398_v63 }
 0x16f   : > { %v6702_v26 = vpop.f32.mrf.mxu1  ;;  %v3107_v37 = vpop.f32.mrf.mxu0 }
 0x170   : > { %v2399_v56 = vadd.f32 %v6702_v26, %v8221_v62  ;;  %8793 = vst [vmem:[#allocation6_spill] sm:$0xff] %v8417_v47  ;;  %v8420_v40 = vadd.f32 %v3107_v37, %v2396_v29 }
 0x171   : > { %v2320_v9 = vpop.f32.mrf.mxu1  ;;  %v6736_v22 = vpop.f32.mrf.mxu0 }
 0x172   : > { %v2397_v6 = vadd.f32 %v2320_v9, %v8226_v60  ;;  %8794 = vst [vmem:[#allocation7_spill] sm:$0xff] %v8420_v40  ;;  %v8423_v3 = vadd.f32 %v6736_v22, %v2399_v56 }
 0x173   : > { %v6705_v39 = vpop.f32.mrf.mxu1  ;;  %v3110_v44 = vpop.f32.mrf.mxu0 }
 0x174   : > { %v2402_v34 = vadd.f32 %v6705_v39, %v8251_v5  ;;  %8795 = vst [vmem:[#allocation8_spill] sm:$0xff] %v8423_v3  ;;  %v8426_v24 = vadd.f32 %v3110_v44, %v2397_v6 }
 0x175   : > { %v2333_v4 = vpop.f32.mrf.mxu1  ;;  %v6739_v33 = vpop.f32.mrf.mxu0 }
 0x176   : > { %v2400_v30 = vadd.f32 %v2333_v4, %v8266_v54  ;;  %8796 = vst [vmem:[#allocation9_spill] sm:$0xff] %v8426_v24  ;;  %v8429_v27 = vadd.f32 %v6739_v33, %v2402_v34 }
 0x177   : > { %v6706_v62 = vpop.f32.mrf.mxu1  ;;  %v3123_v61 = vpop.f32.mrf.mxu0 }
 0x178   : > { %v2403_v57 = vadd.f32 %v6706_v62, %v8268_v2  ;;  %8797 = vst [vmem:[#allocation10_spill] sm:$0xff] %v8429_v27  ;;  %v8432_v14 = vadd.f32 %v3123_v61, %v2400_v30 }
 0x179   : > { %v2336_v60 = vpop.f32.mrf.mxu1  ;;  %v6740_v42 = vpop.f32.mrf.mxu0 }
 0x17a   : > { %v2401_v49 = vadd.f32 %v2336_v60, %v8281_v43  ;;  %8798 = vst [vmem:[#allocation11_spill] sm:$0xff] %v8432_v14  ;;  %v8435_v58 = vadd.f32 %v6740_v42, %v2403_v57 }
 0x17b   : > { %v6709_v5 = vpop.f32.mrf.mxu1  ;;  %v3126_v41 = vpop.f32.mrf.mxu0 }
 0x17c   : > { %v2406_v20 = vadd.f32 %v6709_v5, %v8293_v59  ;;  %8799 = vst [vmem:[#allocation12_spill] sm:$0xff] %v8435_v58  ;;  %v8438_v32 = vadd.f32 %v3126_v41, %v2401_v49  ;;  %v8801_v59 = vld [vmem:[#allocation3_spill] sm:$0xff] }
 0x17d   : > { %v2349_v54 = vpop.f32.mrf.mxu1  ;;  %v6743_v21 = vpop.f32.mrf.mxu0 }
 0x17e   : > { %v2404_v1 = vadd.f32 %v2349_v54, %v8310_v12  ;;  %8800 = vst [vmem:[#allocation13_spill] sm:$0xff] %v8438_v32  ;;  %v8442_v63 = vadd.f32 %v6743_v21, %v2406_v20 }
 0x17f   : > { %v6710_v2 = vpop.f32.mrf.mxu1  ;;  %v3139_v38 = vpop.f32.mrf.mxu0 }
 0x180   : > { %v2407_v25 = vadd.f32 %v6710_v2, %v8312_v23  ;;  %v8445_v26 = vadd.f32 %v3139_v38, %v2404_v1 }
 0x181   : > { %v2352_v15 = vpop.f32.mrf.mxu1  ;;  %v6744_v56 = vpop.f32.mrf.mxu0 }
 0x182   : > { %v2405_v43 = vadd.f32 %v2352_v15, %v8320_v7  ;;  %v8448_v9 = vadd.f32 %v6744_v56, %v2407_v25 }
 0x183   : > { %v6713_v19 = vpop.f32.mrf.mxu1  ;;  %v3142_v23 = vpop.f32.mrf.mxu0 }
 0x184   : > { %v2410_v29 = vadd.f32 %v6713_v19, %v8801_v59  ;;  %v8451_v39 = vadd.f32 %v3142_v23, %v2405_v43 }
 0x185   : > { %v2365_v52 = vpop.f32.mrf.mxu1  ;;  %v6747_v22 = vpop.f32.mrf.mxu0 }
 0x186   : > { %v2408_v12 = vadd.f32 %v2365_v52, %v8349_v51  ;;  %v8454_v4 = vadd.f32 %v6747_v22, %v2410_v29 }
 0x187   : > { %v6714_v37 = vpop.f32.mrf.mxu1  ;;  %v3155_v30 = vpop.f32.mrf.mxu0 }
 0x188   : > { %v2411_v6 = vadd.f32 %v6714_v37, %v8359_v18  ;;  %v8458_v62 = vadd.f32 %v3155_v30, %v2408_v12 }
 0x189   : > { %v2368_v7 = vpop.f32.mrf.mxu1  ;;  %v6748_v33 = vpop.f32.mrf.mxu0 }
 0x18a   : > { %v2409_v34 = vadd.f32 %v2368_v7, %v8364_v11  ;;  %v8462_v57 = vadd.f32 %v6748_v33, %v2411_v6 }
 0x18b   : > { %v8456_v44 = vpop.f32.mrf.mxu1  ;;  %v3158_v18 = vpop.f32.mrf.mxu0 }
 0x18c   : > { %v8466_v61 = vadd.f32 %v3158_v18, %v2409_v34 }
 0x18d   : > { %v8460_v51 = vpop.f32.mrf.mxu1  ;;  %v8470_v11 = vpop.f32.mrf.mxu0 }
 0x18f   : > { %v8464_v60 = vpop.f32.mrf.mxu1  ;;  %v8472_v5 = vpop.f32.mrf.mxu0 }
 0x191   : > { %v8468_v49 = vpop.f32.mrf.mxu1  ;;  %v8476_v20 = vpop.f32.mrf.mxu0 }
 0x193   : > { %v8474_v42 = vpop.f32.mrf.mxu1  ;;  %v8480_v41 = vpop.f32.mrf.mxu0 }
 0x195   : > { %v8478_v54 = vpop.f32.mrf.mxu1  ;;  %v8484_v2 = vpop.f32.mrf.mxu0 }
 0x197   : > { %v8482_v1 = vpop.f32.mrf.mxu1  ;;  %v8488_v15 = vpop.f32.mrf.mxu0 }
 0x199   : > { %v8486_v25 = vpop.f32.mrf.mxu1  ;;  %v8492_v43 = vpop.f32.mrf.mxu0 }
 0x19b   : > { %v8490_v21 = vpop.f32.mrf.mxu1  ;;  %v8496_v38 = vpop.f32.mrf.mxu0 }
 0x19d   : > { %v8494_v19 = vpop.f32.mrf.mxu1  ;;  %v8500_v29 = vpop.f32.mrf.mxu0 }
 0x19f   : > { %v8498_v59 = vpop.f32.mrf.mxu1  ;;  %v8504_v56 = vpop.f32.mrf.mxu0 }
 0x1a1   : > { %v8502_v52 = vpop.f32.mrf.mxu1  ;;  %v8508_v37 = vpop.f32.mrf.mxu0 }
 0x1a3   : > { %v8506_v12 = vpop.f32.mrf.mxu1  ;;  %v8512_v6 = vpop.f32.mrf.mxu0 }
 0x1a5   : > { %v8510_v23 = vpop.f32.mrf.mxu1  ;;  %v8516_v22 = vpop.f32.mrf.mxu0 }
 0x1a7   : > { %v8514_v7 = vpop.f32.mrf.mxu1  ;;  %v8520_v30 = vpop.f32.mrf.mxu0 }
 0x1a8   : > { %8802 = vst [vmem:[#allocation14_spill] sm:$0xff] %v8514_v7  ;;  %8804 = vst [vmem:[#allocation3_spill] sm:$0xff] %v8520_v30 }
 0x1a9   : > { %v8518_v34 = vpop.f32.mrf.mxu1  ;;  %v8524_v18 = vpop.f32.mrf.mxu0 }
 0x1aa   : > { %8803 = vst [vmem:[#allocation15_spill] sm:$0xff] %v8518_v34  ;;  %8806 = vst [vmem:[#allocation17_spill] sm:$0xff] %v8524_v18 }
 0x1ab   : > { %v8522_v33 = vpop.f32.mrf.mxu1  ;;  %v8528_v58 = vpop.f32.mrf.mxu0 }
 0x1ac   : > { %8805 = vst [vmem:[#allocation16_spill] sm:$0xff] %v8522_v33  ;;  %8808 = vst [vmem:[#allocation19_spill] sm:$0xff] %v8528_v58 }
 0x1ad   : > { %v8526_v32 = vpop.f32.mrf.mxu1  ;;  %v8532_v27 = vpop.f32.mrf.mxu0 }
 0x1ae   : > { %8807 = vst [vmem:[#allocation18_spill] sm:$0xff] %v8526_v32  ;;  %8810 = vst [vmem:[#allocation21_spill] sm:$0xff] %v8532_v27 }
 0x1af   : > { %v8530_v14 = vpop.f32.mrf.mxu1  ;;  %v8536_v3 = vpop.f32.mrf.mxu0 }
 0x1b0   : > { %8809 = vst [vmem:[#allocation20_spill] sm:$0xff] %v8530_v14  ;;  %8812 = vst [vmem:[#allocation23_spill] sm:$0xff] %v8536_v3 }
 0x1b1   : > { %v8534_v24 = vpop.f32.mrf.mxu1  ;;  %v8540_v47 = vpop.f32.mrf.mxu0 }
 0x1b2   : > { %8811 = vst [vmem:[#allocation22_spill] sm:$0xff] %v8534_v24  ;;  %8814 = vst [vmem:[#allocation25_spill] sm:$0xff] %v8540_v47 }
 0x1b3   : > { %v8538_v40 = vpop.f32.mrf.mxu1  ;;  %v8544_v33 = vpop.f32.mrf.mxu0 }
 0x1b4   : > { %8813 = vst [vmem:[#allocation24_spill] sm:$0xff] %v8538_v40  ;;  %8816 = vst [vmem:[#allocation27_spill] sm:$0xff] %v8544_v33 }
 0x1b5   : > { %v8542_v34 = vpop.f32.mrf.mxu1  ;;  %v8548_v32 = vpop.f32.mrf.mxu0 }
 0x1b6   : > { %8815 = vst [vmem:[#allocation26_spill] sm:$0xff] %v8542_v34  ;;  %8818 = vst [vmem:[#allocation29_spill] sm:$0xff] %v8548_v32 }
 0x1b7   : > { %v8546_v18 = vpop.f32.mrf.mxu1  ;;  %v8552_v14 = vpop.f32.mrf.mxu0 }
 0x1b8   : > { %8817 = vst [vmem:[#allocation28_spill] sm:$0xff] %v8546_v18  ;;  %8820 = vst [vmem:[#allocation31_spill] sm:$0xff] %v8552_v14 }
 0x1b9   : > { %v8550_v58 = vpop.f32.mrf.mxu1  ;;  %v8555_v3 = vpop.f32.mrf.mxu0 }
 0x1ba   : > { %8819 = vst [vmem:[#allocation30_spill] sm:$0xff] %v8550_v58  ;;  %8821 = vst [vmem:[#allocation32_spill] sm:$0xff] %v8555_v3 }
 0x1bb   : > { %v8558_v10 = vpop.f32.mrf.mxu0 }
 0x1bc   : > { %8822 = vst [vmem:[#allocation33_spill] sm:$0xff] %v8558_v10 }
 0x1bd   : > { %v6811_v18 = vpop.f32.mrf.mxu0 }
 0x1be   : > { %v6777_v27 = vpop.f32.mrf.mxu1 }
 0x1bf   : > { %v3762_v24 = vadd.f32 %v6777_v27, %v8442_v63  ;;  %v4131_v14 = vpop.f32.mrf.mxu0 }
 0x1c0   : > { %v3705_v40 = vpop.f32.mrf.mxu1 }
 0x1c1   : > { %v3760_v47 = vadd.f32 %v3705_v40, %v8445_v26  ;;  %v8561_v32 = vadd.f32 %v6811_v18, %v3762_v24  ;;  %v6812_v63 = vpop.f32.mrf.mxu0  ;;  %v3738_v24 = vadd.f32 %v8456_v44, %v8366_v48  ;;  %v3739_v48 = vadd.f32 %v8464_v60, %v8374_v55 }
 0x1c2   : > { %v6778_v34 = vpop.f32.mrf.mxu1  ;;  %v3742_v55 = vadd.f32 %v8474_v42, %v8380_v17  ;;  %v3743_v17 = vadd.f32 %v8482_v1, %v8386_v16 }
 0x1c3   : > { %v3763_v33 = vadd.f32 %v6778_v34, %v8448_v9  ;;  %v8564_v50 = vadd.f32 %v4131_v14, %v3760_v47  ;;  %v4134_v10 = vpop.f32.mrf.mxu0  ;;  %v3736_v14 = vadd.f32 %v8460_v51, %v8368_v36  ;;  %v3737_v36 = vadd.f32 %v8468_v49, %v8377_v53  ;;  %v8600_v53 = vld [vmem:[%s8748_s2] ss:$0 sm:$0xff] }
 0x1c4   : > { %v3708_v30 = vpop.f32.mrf.mxu1 }
 0x1c5   : > { %v3761_v58 = vadd.f32 %v3708_v30, %v8451_v39  ;;  %v8567_v40 = vadd.f32 %v6812_v63, %v3763_v33  ;;  %v6815_v30 = vpop.f32.mrf.mxu0 }
 0x1c6   : > { %v6781_v7 = vpop.f32.mrf.mxu1 }
 0x1c7   : > { %v3766_v27 = vadd.f32 %v6781_v7, %v8454_v4  ;;  %v8572_v34 = vadd.f32 %v4134_v10, %v3761_v58  ;;  %v4147_v33 = vpop.f32.mrf.mxu0 }
 0x1c8   : > { %v3721_v3 = vpop.f32.mrf.mxu1 }
 0x1c9   : > { %v3764_v26 = vadd.f32 %v3721_v3, %v8458_v62  ;;  %v8577_v4 = vadd.f32 %v6815_v30, %v3766_v27  ;;  %v4164_v62 = vadd.f32 %v8470_v11, %v3738_v24  ;;  %v6816_v58 = vpop.f32.mrf.mxu0  ;;  %v4165_v11 = vadd.f32 %v8476_v20, %v3739_v48 }
 0x1ca   : > { %v6782_v9 = vpop.f32.mrf.mxu1  ;;  %v4168_v30 = vadd.f32 %v8484_v2, %v3742_v55 }
 0x1cb   : > { %v3767_v39 = vadd.f32 %v6782_v9, %v8462_v57  ;;  %v8583_v10 = vadd.f32 %v4147_v33, %v3764_v26  ;;  %v4162_v57 = vadd.f32 %v8472_v5, %v3736_v14  ;;  %v4150_v18 = vpop.f32.mrf.mxu0  ;;  %v3740_v26 = vadd.f32 %v8478_v54, %v8383_v35 }
 0x1cc   : > { %v3724_v47 = vpop.f32.mrf.mxu1  ;;  %v4163_v9 = vadd.f32 %v8480_v41, %v3737_v36 }
 0x1cd   : > { %v3765_v7 = vadd.f32 %v3724_v47, %v8466_v61  ;;  %v8588_v51 = vadd.f32 %v6816_v58, %v3767_v39  ;;  %v4166_v14 = vadd.f32 %v8488_v15, %v3740_v26  ;;  %v3746_v15 = vadd.f32 %v8490_v21, %v8393_v31 }
 0x1ce   : > { %v6821_v3 = vpop.f32.mrf.mxu1 }
 0x1cf   : > { %v4954_v61 = vadd.f32 %v6821_v3, %v4164_v62  ;;  %v8593_v60 = vadd.f32 %v4150_v18, %v3765_v7  ;;  %v3741_v7 = vadd.f32 %v8486_v25, %v8389_v45  ;;  %v4169_v62 = vadd.f32 %v8492_v43, %v3743_v17 }
 0x1d0   : > { %v4825_v44 = vpop.f32.mrf.mxu1  ;;  %v4172_v55 = vadd.f32 %v8500_v29, %v3746_v15 }
 0x1d1   : > { %v4952_v63 = vadd.f32 %v4825_v44, %v4162_v57  ;;  %v4167_v36 = vadd.f32 %v8496_v38, %v3741_v7  ;;  %v3748_v7 = vadd.f32 %v8510_v23, %v8408_v46 }
 0x1d2   : > { %v6822_v27 = vpop.f32.mrf.mxu1 }
 0x1d3   : > { %v4955_v24 = vadd.f32 %v6822_v27, %v4165_v11 }
 0x1d4   : > { %v4828_v49 = vpop.f32.mrf.mxu1 }
 0x1d5   : > { %v6855_v5 = vpop.f32.mrf.mxu0  ;;  %v4953_v47 = vadd.f32 %v4828_v49, %v4163_v9 }
 0x1d6   : > { %v5520_v20 = vadd.f32 %v6855_v5, %v4954_v61  ;;  %v6825_v39 = vpop.f32.mrf.mxu1  ;;  %v3744_v61 = vadd.f32 %v8494_v19, %v8396_v8 }
 0x1d7   : > { %v5391_v42 = vpop.f32.mrf.mxu0  ;;  %v4958_v3 = vadd.f32 %v6825_v39, %v4168_v30  ;;  %v3750_v30 = vadd.f32 %v8506_v12, %v8405_v13 }
 0x1d8   : > { %v5623_v35 = vadd.f32 %v8600_v53, %v5520_v20  ;;  %v5518_v54 = vadd.f32 %v5391_v42, %v4952_v63  ;;  %v4841_v41 = vpop.f32.mrf.mxu1  ;;  %v3747_v63 = vadd.f32 %v8498_v59, %v8399_v0  ;;  %v4170_v9 = vadd.f32 %v8504_v56, %v3744_v61 }
 0x1d9   : > { %v6856_v16 = vpop.f32.mrf.mxu0  ;;  %v4956_v57 = vadd.f32 %v4841_v41, %v4166_v14  ;;  %v3745_v20 = vadd.f32 %v8502_v52, %v8402_v28 }
 0x1da   : > { %v5655_v1 = vmax.f32 %v5623_v35, 0.0  ;;  %v5621_v2 = vadd.f32 %v8600_v53, %v5518_v54  ;;  %v5521_v33 = vadd.f32 %v6856_v16, %v4955_v24  ;;  %v6826_v25 = vpop.f32.mrf.mxu1  ;;  %v4173_v39 = vadd.f32 %v8508_v37, %v3747_v63  ;;  %v8830_v63 = vld [vmem:[#allocation16_spill] sm:$0xff] }
 0x1db   : > { %v5394_v45 = vpop.f32.mrf.mxu0  ;;  %v4959_v11 = vadd.f32 %v6826_v25, %v4169_v62  ;;  %v4171_v14 = vadd.f32 %v8512_v6, %v3745_v20  ;;  %v8831_v20 = vld [vmem:[#allocation19_spill] sm:$0xff] }
 0x1dc   : > { %5687 = vst [vmem:[%s8614_s19 + $0x10] sm:$0xff] %v5655_v1  ;;  %v5653_v48 = vmax.f32 %v5621_v2, 0.0  ;;  %v5624_v58 = vadd.f32 %v8600_v53, %v5521_v33  ;;  %v5519_v44 = vadd.f32 %v5394_v45, %v4953_v47  ;;  %v4844_v27 = vpop.f32.mrf.mxu1  ;;  %v4176_v2 = vadd.f32 %v8516_v22, %v3750_v30  ;;  %v8823_v33 = vld [vmem:[#allocation4_spill] sm:$0xff] }
 0x1dd   : > { %v6859_v18 = vpop.f32.mrf.mxu0  ;;  %v4957_v49 = vadd.f32 %v4844_v27, %v4167_v36 }
 0x1de   : > { %5685 = vst [vmem:[%s8614_s19] sm:$0xff] %v5653_v48  ;;  %v5656_v43 = vmax.f32 %v5624_v58, 0.0  ;;  %v5622_v31 = vadd.f32 %v8600_v53, %v5519_v44  ;;  %v5524_v21 = vadd.f32 %v6859_v18, %v4958_v3  ;;  %v6829_v5 = vpop.f32.mrf.mxu1  ;;  %v8824_v3 = vld [vmem:[#allocation14_spill] sm:$0xff]  ;;  %v8825_v48 = vld [vmem:[#allocation3_spill] sm:$0xff]  ;;  %v8826_v44 = vld [vmem:[#allocation5_spill] sm:$0xff] }
 0x1df   : > { %v5407_v26 = vpop.f32.mrf.mxu0  ;;  %v4962_v42 = vadd.f32 %v6829_v5, %v4172_v55  ;;  %v3751_v62 = vadd.f32 %v8824_v3, %v8823_v33  ;;  %v4174_v58 = vadd.f32 %v8825_v48, %v3748_v7  ;;  %v8829_v55 = vld [vmem:[#allocation6_spill] sm:$0xff]  ;;  %v8838_v33 = vld [vmem:[#allocation9_spill] sm:$0xff] }
 0x1e0   : > { %5688 = vst [vmem:[%s8614_s19 + $0x18] sm:$0xff] %v5656_v43  ;;  %v5654_v38 = vmax.f32 %v5622_v31, 0.0  ;;  %v5627_v8 = vadd.f32 %v8600_v53, %v5524_v21  ;;  %v5522_v19 = vadd.f32 %v5407_v26, %v4956_v57  ;;  %v4857_v17 = vpop.f32.mrf.mxu1  ;;  %v8827_v57 = vld [vmem:[#allocation15_spill] sm:$0xff]  ;;  %v8828_v21 = vld [vmem:[#allocation17_spill] sm:$0xff]  ;;  %v3754_v26 = vadd.f32 %v8830_v63, %v8829_v55  ;;  %v8839_v3 = vld [vmem:[#allocation22_spill] sm:$0xff] }
 0x1e1   : > { %v6860_v24 = vpop.f32.mrf.mxu0  ;;  %v4960_v47 = vadd.f32 %v4857_v17, %v4170_v9  ;;  %v3749_v36 = vadd.f32 %v8827_v57, %v8826_v44  ;;  %v8832_v17 = vld [vmem:[#allocation7_spill] sm:$0xff]  ;;  %v8840_v48 = vld [vmem:[#allocation25_spill] sm:$0xff] }
 0x1e2   : > { %5686 = vst [vmem:[%s8614_s19 + $0x8] sm:$0xff] %v5654_v38  ;;  %v5659_v29 = vmax.f32 %v5627_v8, 0.0  ;;  %v5625_v0 = vadd.f32 %v8600_v53, %v5522_v19  ;;  %v5525_v59 = vadd.f32 %v6860_v24, %v4959_v11  ;;  %v6830_v54 = vpop.f32.mrf.mxu1  ;;  %v4177_v11 = vadd.f32 %v8828_v21, %v3751_v62  ;;  %v8843_v21 = vld [vmem:[#allocation24_spill] sm:$0xff] }
 0x1e3   : > { %v5410_v35 = vpop.f32.mrf.mxu0  ;;  %v4963_v1 = vadd.f32 %v6830_v54, %v4173_v39  ;;  %v4175_v24 = vadd.f32 %v8831_v20, %v3749_v36  ;;  %v3753_v62 = vadd.f32 %v8839_v3, %v8838_v33 }
 0x1e4   : > { %5691 = vst [vmem:[%s8614_s19 + $0x30] sm:$0xff] %v5659_v29  ;;  %v5657_v56 = vmax.f32 %v5625_v0, 0.0  ;;  %v5628_v28 = vadd.f32 %v8600_v53, %v5525_v59  ;;  %v5523_v52 = vadd.f32 %v5410_v35, %v4957_v49  ;;  %v4860_v41 = vpop.f32.mrf.mxu1  ;;  %v8833_v29 = vld [vmem:[#allocation18_spill] sm:$0xff] }
 0x1e5   : > { %v6863_v16 = vpop.f32.mrf.mxu0  ;;  %v4961_v25 = vadd.f32 %v4860_v41, %v4171_v14  ;;  %v3752_v0 = vadd.f32 %v8833_v29, %v8832_v17 }
 0x1e6   : > { %5689 = vst [vmem:[%s8614_s19 + $0x20] sm:$0xff] %v5657_v56  ;;  %v5660_v37 = vmax.f32 %v5628_v28, 0.0  ;;  %v5626_v13 = vadd.f32 %v8600_v53, %v5523_v52  ;;  %v5528_v12 = vadd.f32 %v6863_v16, %v4962_v42  ;;  %v6833_v45 = vpop.f32.mrf.mxu1  ;;  %v8834_v56 = vld [vmem:[#allocation21_spill] sm:$0xff]  ;;  %v8835_v52 = vld [vmem:[#allocation8_spill] sm:$0xff] }
 0x1e7   : > { %v5423_v15 = vpop.f32.mrf.mxu0  ;;  %v4966_v31 = vadd.f32 %v6833_v45, %v4176_v2  ;;  %v4180_v28 = vadd.f32 %v8834_v56, %v3754_v26 }
 0x1e8   : > { %5692 = vst [vmem:[%s8614_s19 + $0x38] sm:$0xff] %v5660_v37  ;;  %v5658_v6 = vmax.f32 %v5626_v13, 0.0  ;;  %v5631_v46 = vadd.f32 %v8600_v53, %v5528_v12  ;;  %v5526_v23 = vadd.f32 %v5423_v15, %v4960_v47  ;;  %v4873_v18 = vpop.f32.mrf.mxu1  ;;  %v8836_v47 = vld [vmem:[#allocation20_spill] sm:$0xff] }
 0x1e9   : > { %v6864_v61 = vpop.f32.mrf.mxu0  ;;  %v4964_v9 = vadd.f32 %v4873_v18, %v4174_v58  ;;  %v3755_v14 = vadd.f32 %v8836_v47, %v8835_v52 }
 0x1ea   : > { %5690 = vst [vmem:[%s8614_s19 + $0x28] sm:$0xff] %v5658_v6  ;;  %v5663_v22 = vmax.f32 %v5631_v46, 0.0  ;;  %v5629_v27 = vadd.f32 %v8600_v53, %v5526_v23  ;;  %v5529_v43 = vadd.f32 %v6864_v61, %v4963_v1  ;;  %v6834_v38 = vpop.f32.mrf.mxu1  ;;  %v8837_v1 = vld [vmem:[#allocation23_spill] sm:$0xff] }
 0x1eb   : > { %v5426_v5 = vpop.f32.mrf.mxu0  ;;  %v4967_v54 = vadd.f32 %v6834_v38, %v4177_v11  ;;  %v4178_v2 = vadd.f32 %v8837_v1, %v3752_v0  ;;  %v4181_v58 = vadd.f32 %v8840_v48, %v3755_v14  ;;  %v8849_v14 = vld [vmem:[#allocation31_spill] sm:$0xff] }
 0x1ec   : > { %5695 = vst [vmem:[%s8614_s19 + $0x50] sm:$0xff] %v5663_v22  ;;  %v5661_v8 = vmax.f32 %v5629_v27, 0.0  ;;  %v5632_v19 = vadd.f32 %v8600_v53, %v5529_v43  ;;  %v5527_v49 = vadd.f32 %v5426_v5, %v4961_v25  ;;  %v4876_v42 = vpop.f32.mrf.mxu1  ;;  %v8841_v27 = vld [vmem:[#allocation27_spill] sm:$0xff] }
 0x1ed   : > { %v6867_v59 = vpop.f32.mrf.mxu0  ;;  %v4965_v12 = vadd.f32 %v4876_v42, %v4175_v24  ;;  %v4179_v43 = vadd.f32 %v8841_v27, %v3753_v62  ;;  %v8852_v62 = vld [vmem:[#allocation32_spill] sm:$0xff] }
 0x1ee   : > { %5693 = vst [vmem:[%s8614_s19 + $0x40] sm:$0xff] %v5661_v8  ;;  %v5664_v39 = vmax.f32 %v5632_v19, 0.0  ;;  %v5630_v30 = vadd.f32 %v8600_v53, %v5527_v49  ;;  %v5532_v35 = vadd.f32 %v6867_v59, %v4966_v31  ;;  %v6837_v16 = vpop.f32.mrf.mxu1  ;;  %v8842_v31 = vld [vmem:[#allocation10_spill] sm:$0xff]  ;;  %v8844_v19 = vld [vmem:[#allocation11_spill] sm:$0xff]  ;;  %v8846_v59 = vld [vmem:[#allocation29_spill] sm:$0xff] }
 0x1ef   : > { %v5439_v7 = vpop.f32.mrf.mxu0  ;;  %v4970_v25 = vadd.f32 %v6837_v16, %v4180_v28  ;;  %v3758_v11 = vadd.f32 %v8843_v21, %v8842_v31  ;;  %v8845_v49 = vld [vmem:[#allocation26_spill] sm:$0xff]  ;;  %v8850_v16 = vld [vmem:[#allocation13_spill] sm:$0xff] }
 0x1f0   : > { %5696 = vst [vmem:[%s8614_s19 + $0x58] sm:$0xff] %v5664_v39  ;;  %v5662_v41 = vmax.f32 %v5630_v30, 0.0  ;;  %v5635_v37 = vadd.f32 %v8600_v53, %v5532_v35  ;;  %v5530_v13 = vadd.f32 %v5439_v7, %v4964_v9  ;;  %v4889_v45 = vpop.f32.mrf.mxu1  ;;  %v3756_v9 = vadd.f32 %v8845_v49, %v8844_v19  ;;  %v8847_v39 = vld [vmem:[#allocation12_spill] sm:$0xff] }
 0x1f1   : > { %v6868_v15 = vpop.f32.mrf.mxu0  ;;  %v4968_v22 = vadd.f32 %v4889_v45, %v4178_v2  ;;  %v4184_v42 = vadd.f32 %v8846_v59, %v3758_v11  ;;  %v8848_v30 = vld [vmem:[#allocation28_spill] sm:$0xff] }
 0x1f2   : > { %5694 = vst [vmem:[%s8614_s19 + $0x48] sm:$0xff] %v5662_v41  ;;  %v5667_v6 = vmax.f32 %v5635_v37, 0.0  ;;  %v5633_v46 = vadd.f32 %v8600_v53, %v5530_v13  ;;  %v5533_v23 = vadd.f32 %v6868_v15, %v4967_v54  ;;  %v6838_v57 = vpop.f32.mrf.mxu1  ;;  %v3759_v35 = vadd.f32 %v8848_v30, %v8847_v39  ;;  %v8851_v41 = vld [vmem:[#allocation30_spill] sm:$0xff] }
 0x1f3   : > { %v5442_v44 = vpop.f32.mrf.mxu0  ;;  %v4971_v8 = vadd.f32 %v6838_v57, %v4181_v58  ;;  %v4182_v7 = vadd.f32 %v8849_v14, %v3756_v9  ;;  %v3757_v37 = vadd.f32 %v8851_v41, %v8850_v16  ;;  %v8853_v58 = vld [vmem:[#allocation33_spill] sm:$0xff] }
 0x1f4   : > { %5699 = vst [vmem:[%s8614_s19 + $0x70] sm:$0xff] %v5667_v6  ;;  %v5665_v36 = vmax.f32 %v5633_v46, 0.0  ;;  %v5636_v61 = vadd.f32 %v8600_v53, %v5533_v23  ;;  %v5531_v18 = vadd.f32 %v5442_v44, %v4965_v12  ;;  %v4892_v63 = vpop.f32.mrf.mxu1  ;;  %v4185_v15 = vadd.f32 %v8852_v62, %v3759_v35 }
 0x1f5   : > { %v6871_v55 = vpop.f32.mrf.mxu0  ;;  %v4969_v0 = vadd.f32 %v4892_v63, %v4179_v43  ;;  %v4183_v44 = vadd.f32 %v8853_v58, %v3757_v37 }
 0x1f6   : > { %5697 = vst [vmem:[%s8614_s19 + $0x60] sm:$0xff] %v5665_v36  ;;  %v5668_v26 = vmax.f32 %v5636_v61, 0.0  ;;  %v5634_v5 = vadd.f32 %v8600_v53, %v5531_v18  ;;  %v5536_v38 = vadd.f32 %v6871_v55, %v4970_v25 }
 0x1f7   : > { %v5455_v20 = vpop.f32.mrf.mxu0 }
 0x1f8   : > { %5700 = vst [vmem:[%s8614_s19 + $0x78] sm:$0xff] %v5668_v26  ;;  %v5666_v24 = vmax.f32 %v5634_v5, 0.0  ;;  %v5639_v17 = vadd.f32 %v8600_v53, %v5536_v38  ;;  %v5534_v29 = vadd.f32 %v5455_v20, %v4968_v22 }
 0x1f9   : > { %v6872_v54 = vpop.f32.mrf.mxu0  ;;  %v6841_v47 = vpop.f32.mrf.mxu1 }
 0x1fa   : > { %5698 = vst [vmem:[%s8614_s19 + $0x68] sm:$0xff] %v5666_v24  ;;  %v5671_v56 = vmax.f32 %v5639_v17, 0.0  ;;  %v5637_v28 = vadd.f32 %v8600_v53, %v5534_v29  ;;  %v5537_v52 = vadd.f32 %v6872_v54, %v4971_v8  ;;  %v4974_v12 = vadd.f32 %v6841_v47, %v4184_v42 }
 0x1fb   : > { %v5458_v13 = vpop.f32.mrf.mxu0  ;;  %v4905_v3 = vpop.f32.mrf.mxu1 }
 0x1fc   : > { %5703 = vst [vmem:[%s8614_s19 + $0x90] sm:$0xff] %v5671_v56  ;;  %v5669_v1 = vmax.f32 %v5637_v28, 0.0  ;;  %v5640_v2 = vadd.f32 %v8600_v53, %v5537_v52  ;;  %v5535_v33 = vadd.f32 %v5458_v13, %v4969_v0  ;;  %v4972_v6 = vadd.f32 %v4905_v3, %v4182_v7 }
 0x1fd   : > { %v6875_v45 = vpop.f32.mrf.mxu0  ;;  %v6842_v48 = vpop.f32.mrf.mxu1 }
 0x1fe   : > { %5701 = vst [vmem:[%s8614_s19 + $0x80] sm:$0xff] %v5669_v1  ;;  %v5672_v46 = vmax.f32 %v5640_v2, 0.0  ;;  %v5638_v23 = vadd.f32 %v8600_v53, %v5535_v33  ;;  %v5540_v25 = vadd.f32 %v6875_v45, %v4974_v12  ;;  %v4975_v36 = vadd.f32 %v6842_v48, %v4185_v15 }
 0x1ff   : > { %v5471_v57 = vpop.f32.mrf.mxu0  ;;  %v4908_v27 = vpop.f32.mrf.mxu1 }
 0x200   : > { %5704 = vst [vmem:[%s8614_s19 + $0x98] sm:$0xff] %v5672_v46  ;;  %v5670_v61 = vmax.f32 %v5638_v23, 0.0  ;;  %v5643_v18 = vadd.f32 %v8600_v53, %v5540_v25  ;;  %v5538_v22 = vadd.f32 %v5471_v57, %v4972_v6  ;;  %v4973_v31 = vadd.f32 %v4908_v27, %v4183_v44 }
 0x201   : > { %v6876_v43 = vpop.f32.mrf.mxu0 }
 0x202   : > { %5702 = vst [vmem:[%s8614_s19 + $0x88] sm:$0xff] %v5670_v61  ;;  %v5675_v21 = vmax.f32 %v5643_v18, 0.0  ;;  %v5641_v11 = vadd.f32 %v8600_v53, %v5538_v22  ;;  %v5541_v55 = vadd.f32 %v6876_v43, %v4975_v36 }
 0x203   : > { %v5474_v63 = vpop.f32.mrf.mxu0 }
 0x204   : > { %5707 = vst [vmem:[%s8614_s19 + $0xb0] sm:$0xff] %v5675_v21  ;;  %v5673_v26 = vmax.f32 %v5641_v11, 0.0  ;;  %v5644_v5 = vadd.f32 %v8600_v53, %v5541_v55  ;;  %v5539_v38 = vadd.f32 %v5474_v63, %v4973_v31 }
 0x206   : > { %5705 = vst [vmem:[%s8614_s19 + $0xa0] sm:$0xff] %v5673_v26  ;;  %v5676_v8 = vmax.f32 %v5644_v5, 0.0  ;;  %v5642_v19 = vadd.f32 %v8600_v53, %v5539_v38  ;;  %v6879_v49 = vpop.f32.mrf.mxu0 }
 0x207   : > { %v6845_v20 = vpop.f32.mrf.mxu1 }
 0x208   : > { %5708 = vst [vmem:[%s8614_s19 + $0xb8] sm:$0xff] %v5676_v8  ;;  %v5674_v9 = vmax.f32 %v5642_v19, 0.0  ;;  %v4978_v24 = vadd.f32 %v6845_v20, %v8561_v32  ;;  %v5487_v17 = vpop.f32.mrf.mxu0 }
 0x209   : > { %v4921_v29 = vpop.f32.mrf.mxu1 }
 0x20a   : > { %5706 = vst [vmem:[%s8614_s19 + $0xa8] sm:$0xff] %v5674_v9  ;;  %v5544_v0 = vadd.f32 %v6879_v49, %v4978_v24  ;;  %v4976_v59 = vadd.f32 %v4921_v29, %v8564_v50  ;;  %v6880_v39 = vpop.f32.mrf.mxu0 }
 0x20b   : > { %v6846_v42 = vpop.f32.mrf.mxu1 }
 0x20c   : > { %v5647_v30 = vadd.f32 %v8600_v53, %v5544_v0  ;;  %v5542_v35 = vadd.f32 %v5487_v17, %v4976_v59  ;;  %v4979_v54 = vadd.f32 %v6846_v42, %v8567_v40  ;;  %v5490_v14 = vpop.f32.mrf.mxu0 }
 0x20d   : > { %v4924_v56 = vpop.f32.mrf.mxu1 }
 0x20e   : > { %v5679_v28 = vmax.f32 %v5647_v30, 0.0  ;;  %v5645_v32 = vadd.f32 %v8600_v53, %v5542_v35  ;;  %v5545_v52 = vadd.f32 %v6880_v39, %v4979_v54  ;;  %v4977_v47 = vadd.f32 %v4924_v56, %v8572_v34 }
 0x210   : > { %5711 = vst [vmem:[%s8614_s19 + $0xd0] sm:$0xff] %v5679_v28  ;;  %v5677_v50 = vmax.f32 %v5645_v32, 0.0  ;;  %v5648_v7 = vadd.f32 %v8600_v53, %v5545_v52  ;;  %v5543_v16 = vadd.f32 %v5490_v14, %v4977_v47 }
 0x212   : > { %5709 = vst [vmem:[%s8614_s19 + $0xc0] sm:$0xff] %v5677_v50  ;;  %v5680_v41 = vmax.f32 %v5648_v7, 0.0  ;;  %v5646_v37 = vadd.f32 %v8600_v53, %v5543_v16 }
 0x213   : > { %v6883_v13 = vpop.f32.mrf.mxu0 }
 0x214   : > { %5712 = vst [vmem:[%s8614_s19 + $0xd8] sm:$0xff] %v5680_v41  ;;  %v5678_v40 = vmax.f32 %v5646_v37, 0.0 }
 0x215   : > { %v6849_v12 = vpop.f32.mrf.mxu1  ;;  %v5503_v2 = vpop.f32.mrf.mxu0 }
 0x216   : > { %5710 = vst [vmem:[%s8614_s19 + $0xc8] sm:$0xff] %v5678_v40  ;;  %v4982_v1 = vadd.f32 %v6849_v12, %v8577_v4 }
 0x217   : > { %v4937_v34 = vpop.f32.mrf.mxu1  ;;  %v6884_v15 = vpop.f32.mrf.mxu0 }
 0x218   : > { %v5548_v33 = vadd.f32 %v6883_v13, %v4982_v1  ;;  %v4980_v3 = vadd.f32 %v4937_v34, %v8583_v10 }
 0x219   : > { %v6850_v62 = vpop.f32.mrf.mxu1  ;;  %v5506_v44 = vpop.f32.mrf.mxu0 }
 0x21a   : > { %v5651_v45 = vadd.f32 %v8600_v53, %v5548_v33  ;;  %v5546_v6 = vadd.f32 %v5503_v2, %v4980_v3  ;;  %v4983_v46 = vadd.f32 %v6850_v62, %v8588_v51 }
 0x21b   : > { %v4940_v23 = vpop.f32.mrf.mxu1 }
 0x21c   : > { %v5683_v25 = vmax.f32 %v5651_v45, 0.0  ;;  %v5649_v4 = vadd.f32 %v8600_v53, %v5546_v6  ;;  %v5549_v48 = vadd.f32 %v6884_v15, %v4983_v46  ;;  %v4981_v58 = vadd.f32 %v4940_v23, %v8593_v60 }
 0x21e   : > { %5715 = vst [vmem:[%s8614_s19 + $0xf0] sm:$0xff] %v5683_v25  ;;  %v5681_v10 = vmax.f32 %v5649_v4, 0.0  ;;  %v5652_v57 = vadd.f32 %v8600_v53, %v5549_v48  ;;  %v5547_v36 = vadd.f32 %v5506_v44, %v4981_v58 }
 0x220   : > { %5713 = vst [vmem:[%s8614_s19 + $0xe0] sm:$0xff] %v5681_v10  ;;  %v5684_v61 = vmax.f32 %v5652_v57, 0.0  ;;  %v5650_v18 = vadd.f32 %v8600_v53, %v5547_v36 }
 0x222   : > { %5716 = vst [vmem:[%s8614_s19 + $0xf8] sm:$0xff] %v5684_v61  ;;  %v5682_v51 = vmax.f32 %v5650_v18, 0.0 }
 0x224   : > { %5714 = vst [vmem:[%s8614_s19 + $0xe8] sm:$0xff] %v5682_v51 }
 0x225 PF: > { %s13_s14 = sadd.s32 1, %s6992_s14   ;;  %s8854_s12 = smov %s6988_s13 }
 0x226   : > { %p10_p5 = scmp.ge.s32.totalorder %s13_s14, 4   ;;  %s8855_s13 = smov %s8857_s15 }
 0x228   :  { %12 = sbr.rel (!%p10_p5) target bundleno = 2 (0x2), region = 73 }

</bundles_post_ra>
